<compile_context>
chip_gen: v7x
topology: tpu7x:2x2x1
jax: 0.10.0
libtpu: 0.0.40
codegen_flags: <defaults>
</compile_context>

<pallas_src>
import functools

import jax
import jax.numpy as jnp
from jax.experimental import pallas as pl
from jax.experimental.pallas import tpu as pltpu

PATCH_SIZE = 16
_VMEM_LIMIT = 32 * 1024 * 1024  # fits v5e/v6e/v7x budgets for the tile sizes below


def _round_up(x, m):
    return ((x + m - 1) // m) * m


def _pad2d(a, rows, cols, dtype):
    r, c = a.shape
    a = a.astype(dtype)
    if r != rows or c != cols:
        a = jnp.pad(a, ((0, rows - r), (0, cols - c)))
    return a


# ----------------------------------------------------------------------------
# Kernel 1: tiled GEMM + bias (+ReLU), bf16 operands, f32 accumulation.
# ----------------------------------------------------------------------------
def _gemm_bias_kernel(x_ref, w_ref, b_ref, o_ref, acc_ref, *, relu):
    k = pl.program_id(2)

    @pl.when(k == 0)
    def _():
        acc_ref[...] = jnp.zeros_like(acc_ref)

    acc_ref[...] += jnp.dot(x_ref[...], w_ref[...], preferred_element_type=jnp.float32)

    @pl.when(k == pl.num_programs(2) - 1)
    def _():
        y = acc_ref[...] + b_ref[...]
        if relu:
            y = jnp.maximum(y, 0.0)
        o_ref[...] = y.astype(o_ref.dtype)


def gemm_bias(x, w, b, *, relu=False, out_dtype=jnp.float32,
              tm_max=256, tn_max=256, tk_max=512):
    """(M,K) @ (K,Cout) + b, tiled over (M, Cout, K); pads every dim to lane/
    sublane-friendly tiles (Cout is padded to >=128 so stores stay lane-dense)."""
    M, K = x.shape
    K2, N = w.shape
    assert K == K2

    tm = min(tm_max, _round_up(M, 16))
    n128 = _round_up(N, 128)
    tn = n128 if n128 <= 512 else tn_max
    k128 = _round_up(K, 128)
    tk = k128 if k128 <= 1024 else tk_max

    Mp, Kp, Np = _round_up(M, tm), _round_up(K, tk), _round_up(N, tn)

    xp = _pad2d(x, Mp, Kp, jnp.bfloat16)
    wp = _pad2d(w, Kp, Np, jnp.bfloat16)
    bp = _pad2d(b.reshape(1, N), 1, Np, jnp.float32)

    grid = (Mp // tm, Np // tn, Kp // tk)
    kernel = functools.partial(_gemm_bias_kernel, relu=relu)
    out = pl.pallas_call(
        kernel,
        out_shape=jax.ShapeDtypeStruct((Mp, Np), out_dtype),
        grid=grid,
        in_specs=[
            pl.BlockSpec((tm, tk), lambda i, j, k: (i, k)),
            pl.BlockSpec((tk, tn), lambda i, j, k: (k, j)),
            pl.BlockSpec((1, tn), lambda i, j, k: (0, j)),
        ],
        out_specs=pl.BlockSpec((tm, tn), lambda i, j, k: (i, j)),
        scratch_shapes=[pltpu.VMEM((tm, tn), jnp.float32)],
        compiler_params=pltpu.CompilerParams(
            dimension_semantics=("parallel", "parallel", "arbitrary"),
            vmem_limit_bytes=_VMEM_LIMIT,
        ),
    )(xp, wp, bp)
    return out[:M, :N]


# ----------------------------------------------------------------------------
# Kernel 2: fused  mask.2 GEMM (1x1 conv, 0.25 scale)  ->  softmax over the 9
# neighbour taps  ->  flow-weighted sum.  Everything 2D lane-dense.
#   m1:  (rows, 256)   bf16   hidden mask activations (post-ReLU)
#   w2:  (256, 2304)   bf16   mask.2 weight (column = k*256 + p1*16 + p2)
#   b2:  (1, 2304)     f32
#   uf:  (rows, 18)    f32    3x3 flow taps [ch0 k=0..8 | ch1 k=0..8], unscaled
#   out: (rows, 512)   f32    [ch0 pixels 0..255 | ch1 pixels 0..255]
# ----------------------------------------------------------------------------
def _mask_upsample_kernel(m1_ref, w2_ref, b2_ref, uf_ref, o_ref, *, pp):
    logits = jnp.dot(m1_ref[...], w2_ref[...], preferred_element_type=jnp.float32)
    logits = 0.25 * (logits + b2_ref[...])
    uf = uf_ref[...] * jnp.float32(PATCH_SIZE)

    # softmax over the 9 taps; taps are static 256-wide (128-aligned) lane slices
    mx = logits[:, 0:pp]
    for k in range(1, 9):
        mx = jnp.maximum(mx, logits[:, k * pp:(k + 1) * pp])
    exps = []
    denom = None
    for k in range(9):
        e = jnp.exp(logits[:, k * pp:(k + 1) * pp] - mx)
        exps.append(e)
        denom = e if denom is None else denom + e
    inv = pl.reciprocal(denom, approx=True)

    acc0 = None
    acc1 = None
    for k in range(9):
        wk = exps[k] * inv
        a0 = wk * uf[:, k:k + 1]
        a1 = wk * uf[:, 9 + k:9 + k + 1]
        acc0 = a0 if acc0 is None else acc0 + a0
        acc1 = a1 if acc1 is None else acc1 + a1

    o_ref[:, 0:pp] = acc0.astype(o_ref.dtype)
    o_ref[:, pp:2 * pp] = acc1.astype(o_ref.dtype)


def mask_upsample(m1, w2, b2, uf, *, tm_max=256):
    M, c = m1.shape
    pp = PATCH_SIZE * PATCH_SIZE
    assert w2.shape == (c, 9 * pp)

    tm = min(tm_max, _round_up(M, 16))
    Mp = _round_up(M, tm)

    m1p = _pad2d(m1, Mp, c, jnp.bfloat16)
    ufp = _pad2d(uf, Mp, 18, jnp.float32)
    w2b = w2.astype(jnp.bfloat16)
    b2r = b2.reshape(1, 9 * pp).astype(jnp.float32)

    kernel = functools.partial(_mask_upsample_kernel, pp=pp)
    out = pl.pallas_call(
        kernel,
        out_shape=jax.ShapeDtypeStruct((Mp, 2 * pp), jnp.float32),
        grid=(Mp // tm,),
        in_specs=[
            pl.BlockSpec((tm, c), lambda i: (i, 0)),
            pl.BlockSpec((c, 9 * pp), lambda i: (0, 0)),   # weight stays resident
            pl.BlockSpec((1, 9 * pp), lambda i: (0, 0)),
            pl.BlockSpec((tm, 18), lambda i: (i, 0)),
        ],
        out_specs=pl.BlockSpec((tm, 2 * pp), lambda i: (i, 0)),
        compiler_params=pltpu.CompilerParams(
            dimension_semantics=("parallel",),
            vmem_limit_bytes=_VMEM_LIMIT,
        ),
    )(m1p, w2b, b2r, ufp)
    return out[:M]


# ----------------------------------------------------------------------------
# Layout glue (pure JAX)
# ----------------------------------------------------------------------------
def im2col_3x3(x_nhwc):
    # (N, H, W, C) -> (N*H*W, 9*C), K index = (ky*3+kx)*C + c  (padding=1)
    n, h, w, c = x_nhwc.shape
    xp = jnp.pad(x_nhwc, ((0, 0), (1, 1), (1, 1), (0, 0)))
    taps = [xp[:, ky:ky + h, kx:kx + w, :] for ky in range(3) for kx in range(3)]
    col = jnp.stack(taps, axis=3)  # (N, H, W, 9, C)
    return col.reshape(n * h * w, 9 * c)


def unfold_taps_3x3(flow_nhwc):
    # (N, H, W, 2) -> (N*H*W, 9, 2): F.unfold(flow, (3,3), padding=1) semantics
    n, h, w, c = flow_nhwc.shape
    fp = jnp.pad(flow_nhwc, ((0, 0), (1, 1), (1, 1), (0, 0)))
    taps = [fp[:, ky:ky + h, kx:kx + w, :] for ky in range(3) for kx in range(3)]
    return jnp.stack(taps, axis=3).reshape(n * h * w, 9, c)


# ----------------------------------------------------------------------------
# UpscaleRAFT forward
# ----------------------------------------------------------------------------
def upscale_raft_forward(imgf_nchw, params):
    n, cin, h, w = imgf_nchw.shape
    p = PATCH_SIZE
    hidden = params["conv1_w"].shape[1]

    x = jnp.transpose(imgf_nchw, (0, 2, 3, 1)).astype(jnp.bfloat16)  # NHWC
    # TODO(synk): replace the JAX-side im2col with an in-kernel shifted-block
    # K-grid (9 accumulating matmuls over shifted NHWC tiles) to avoid
    # materializing the 9x-expanded activations in HBM.
    x_cols = im2col_3x3(x)  # (M, 9*Cin) bf16

    # Fused conv1 + mask.0 (both 3x3 convs followed by ReLU): one GEMM.
    w_cat = jnp.concatenate([params["conv1_w"], params["mask1_w"]], axis=1)
    b_cat = jnp.concatenate([params["conv1_b"], params["mask1_b"]], axis=0)
    y = gemm_bias(x_cols, w_cat, b_cat, relu=True, out_dtype=jnp.float32)
    h1 = y[:, :hidden]       # (M, hidden)
    m1 = y[:, hidden:]       # (M, 256)

    # flow = conv2(h1), 3x3, Cout=2 (Cout is zero-padded to 128 inside gemm_bias
    # so the store path stays lane-dense; sliced back here).
    h1_cols = im2col_3x3(h1.reshape(n, h, w, hidden))
    flow = gemm_bias(h1_cols, params["conv2_w"], params["conv2_b"],
                     relu=False, out_dtype=jnp.float32)      # (M, 2)
    flow_nhwc = flow.reshape(n, h, w, 2)

    # 3x3 neighbourhood taps of flow -> (M, 18): [ch0 taps 0..8 | ch1 taps 0..8]
    taps = unfold_taps_3x3(flow_nhwc)                        # (M, 9, 2)
    uf = jnp.concatenate([taps[:, :, 0], taps[:, :, 1]], axis=1)

    # Fused: mask.2 (1x1 conv, 0.25) + softmax over 9 + flow-weighted sum.
    up = mask_upsample(m1, params["mask2_w"], params["mask2_b"], uf)  # (M, 512)

    up = up.reshape(n, h, w, 2, p, p)
    up = jnp.transpose(up, (0, 3, 1, 4, 2, 5))               # (N, 2, H, P, W, P)
    return up.reshape(n, 2, h * p, w * p)


# ----------------------------------------------------------------------------
# Deterministic synthetic parameters + pure-JAX (f32) reference
# ----------------------------------------------------------------------------
def init_params(key, input_dim, hidden_dim):
    ks = jax.random.split(key, 8)

    def wgt(k, shape, fan_in):
        return jax.random.normal(k, shape, jnp.float32) / jnp.sqrt(float(fan_in))

    params = {}
    params["conv1_w"] = wgt(ks[0], (3, 3, input_dim, hidden_dim), 9 * input_dim).reshape(
        9 * input_dim, hidden_dim
    )
    params["conv1_b"] = 0.01 * jax.random.normal(ks[1], (hidden_dim,), jnp.float32)
    params["conv2_w"] = wgt(ks[2], (3, 3, hidden_dim, 2), 9 * hidden_dim).reshape(
        9 * hidden_dim, 2
    )
    params["conv2_b"] = 0.01 * jax.random.normal(ks[3], (2,), jnp.float32)
    params["mask1_w"] = wgt(ks[4], (3, 3, input_dim, 256), 9 * input_dim).reshape(
        9 * input_dim, 256
    )
    params["mask1_b"] = 0.01 * jax.random.normal(ks[5], (256,), jnp.float32)
    params["mask2_w"] = wgt(ks[6], (256, PATCH_SIZE**2 * 9), 256)
    params["mask2_b"] = 0.01 * jax.random.normal(ks[7], (PATCH_SIZE**2 * 9,), jnp.float32)
    return params


def reference_forward(imgf_nchw, params):
    n, cin, h, w = imgf_nchw.shape
    p = PATCH_SIZE
    pp = p * p
    hw = h * w
    x = jnp.transpose(imgf_nchw, (0, 2, 3, 1)).astype(jnp.float32)
    x_cols = im2col_3x3(x)
    h1 = jax.nn.relu(x_cols @ params["conv1_w"] + params["conv1_b"])
    h1_cols = im2col_3x3(h1.reshape(n, h, w, -1))
    flow = (h1_cols @ params["conv2_w"] + params["conv2_b"]).reshape(n, h, w, 2)
    m1 = jax.nn.relu(x_cols @ params["mask1_w"] + params["mask1_b"])
    mask = 0.25 * (m1 @ params["mask2_w"] + params["mask2_b"])
    sm = jax.nn.softmax(mask.reshape(n * hw, 9, pp), axis=1)
    uf = unfold_taps_3x3(flow) * float(p)      # (N*HW, 9, 2)
    up = jnp.einsum("mkp,mkc->mcp", sm, uf)    # (N*HW, 2, PP)
    up = up.reshape(n, h, w, 2, p, p)
    up = jnp.transpose(up, (0, 3, 1, 4, 2, 5))
    return up.reshape(n, 2, h * p, w * p)


if __name__ == "__main__":
    N, INPUT_DIM, H, W = 2, 64, 4, 4
    HIDDEN_DIM = 32

    key = jax.random.PRNGKey(0)
    k_params, k_input = jax.random.split(key)
    params = init_params(k_params, INPUT_DIM, HIDDEN_DIM)
    imgf = jax.random.normal(k_input, (N, INPUT_DIM, H, W), jnp.float32)

    out = jax.jit(lambda x: upscale_raft_forward(x, params))(imgf)
    out = jax.block_until_ready(out)

    assert out.shape == (N, 2, H * PATCH_SIZE, W * PATCH_SIZE)
    ref = reference_forward(imgf, params)
    # bf16 MXU operands with f32 accumulation -> slightly looser tolerance than pure f32.
    if not jnp.allclose(out, ref, atol=5e-2, rtol=5e-2):
        max_err = float(jnp.max(jnp.abs(out - ref)))
        raise AssertionError(f"Pallas output does not match JAX reference (max_err={max_err})")
    print("KERNEL_OK")
</pallas_src>

<mosaic_0001>
module attributes {stable_mosaic.version = 11 : i64} {
  func.func @_gemm_bias_kernel(%arg0: i32, %arg1: i32, %arg2: i32, %arg3: memref<32x640xbf16, #tpu.memory_space<vmem>>, %arg4: memref<640x384xbf16, #tpu.memory_space<vmem>>, %arg5: memref<1x384xf32, #tpu.memory_space<vmem>>, %arg6: memref<32x384xf32, #tpu.memory_space<vmem>>, %arg7: memref<32x384xf32, #tpu.memory_space<vmem>>) attributes {dimension_semantics = [#tpu.dimension_semantics<parallel>, #tpu.dimension_semantics<parallel>, #tpu.dimension_semantics<arbitrary>], iteration_bounds = array<i64: 1, 1, 1>, scalar_prefetch = 0 : i64, scratch_operands = 1 : i64, tpu.core_type = #tpu.core_type<tc>, window_params = [{transform_indices = @transform_0, window_bounds = array<i64: 32, 640>}, {transform_indices = @transform_1, window_bounds = array<i64: 640, 384>}, {transform_indices = @transform_2, window_bounds = array<i64: 1, 384>}, {transform_indices = @transform_3, window_bounds = array<i64: 32, 384>}]} {
    %c0_i32 = arith.constant 0 : i32
    %0 = arith.cmpi eq, %arg2, %c0_i32 : i32
    %1 = arith.extui %0 : i1 to i32
    %c0_i32_0 = arith.constant 0 : i32
    %2 = arith.cmpi ne, %1, %c0_i32_0 : i32
    scf.if %2 {
      %cst_10 = arith.constant 0.000000e+00 : f32
      %12 = vector.broadcast %cst_10 : f32 to vector<32x384xf32>
      %c0_11 = arith.constant 0 : index
      %c0_12 = arith.constant 0 : index
      %13 = vector.load %arg7[%c0_11, %c0_12] : memref<32x384xf32, #tpu.memory_space<vmem>>, vector<32x384xf32>
      tpu.vector_store %arg7[%c0_11, %c0_12], %12 {strides = array<i32>} : memref<32x384xf32, #tpu.memory_space<vmem>>, vector<32x384xf32>,
    } else {
    }
    %c0 = arith.constant 0 : index
    %c0_1 = arith.constant 0 : index
    %3 = vector.load %arg7[%c0, %c0_1] : memref<32x384xf32, #tpu.memory_space<vmem>>, vector<32x384xf32>
    %c0_2 = arith.constant 0 : index
    %c0_3 = arith.constant 0 : index
    %4 = vector.load %arg3[%c0_2, %c0_3] : memref<32x640xbf16, #tpu.memory_space<vmem>>, vector<32x640xbf16>
    %c0_4 = arith.constant 0 : index
    %c0_5 = arith.constant 0 : index
    %5 = vector.load %arg4[%c0_4, %c0_5] : memref<640x384xbf16, #tpu.memory_space<vmem>>, vector<640x384xbf16>
    %cst = arith.constant dense<0.000000e+00> : vector<32x384xf32>
    %6 = tpu.matmul %4, %5, %cst {dimension_numbers = #tpu.dot_dimension_numbers<[1], [0], [0], [1], [0, 0, 1, 1], [], []>} : vector<32x640xbf16>, vector<640x384xbf16>, vector<32x384xf32> -> vector<32x384xf32>
    %7 = arith.addf %3, %6 : vector<32x384xf32>
    %c0_6 = arith.constant 0 : index
    %c0_7 = arith.constant 0 : index
    %8 = vector.load %arg7[%c0_6, %c0_7] : memref<32x384xf32, #tpu.memory_space<vmem>>, vector<32x384xf32>
    tpu.vector_store %arg7[%c0_6, %c0_7], %7 {strides = array<i32>} : memref<32x384xf32, #tpu.memory_space<vmem>>, vector<32x384xf32>,
    %c0_i32_8 = arith.constant 0 : i32
    %9 = arith.cmpi eq, %arg2, %c0_i32_8 : i32
    %10 = arith.extui %9 : i1 to i32
    %c0_i32_9 = arith.constant 0 : i32
    %11 = arith.cmpi ne, %10, %c0_i32_9 : i32
    scf.if %11 {
      %c0_10 = arith.constant 0 : index
      %c0_11 = arith.constant 0 : index
      %12 = vector.load %arg7[%c0_10, %c0_11] : memref<32x384xf32, #tpu.memory_space<vmem>>, vector<32x384xf32>
      %c0_12 = arith.constant 0 : index
      %c0_13 = arith.constant 0 : index
      %13 = vector.load %arg5[%c0_12, %c0_13] : memref<1x384xf32, #tpu.memory_space<vmem>>, vector<1x384xf32>
      %14 = vector.broadcast %13 : vector<1x384xf32> to vector<32x384xf32>
      %15 = arith.addf %12, %14 : vector<32x384xf32>
      %cst_14 = arith.constant 0.000000e+00 : f32
      %16 = vector.broadcast %cst_14 : f32 to vector<32x384xf32>
      %17 = arith.maximumf %15, %16 : vector<32x384xf32>
      %c0_15 = arith.constant 0 : index
      %c0_16 = arith.constant 0 : index
      %18 = vector.load %arg6[%c0_15, %c0_16] : memref<32x384xf32, #tpu.memory_space<vmem>>, vector<32x384xf32>
      tpu.vector_store %arg6[%c0_15, %c0_16], %17 {strides = array<i32>} : memref<32x384xf32, #tpu.memory_space<vmem>>, vector<32x384xf32>,
    } else {
    }
    return
  }
  func.func @transform_0(%arg0: i32, %arg1: i32, %arg2: i32) -> (i32, i32) {
    %c0_i32 = arith.constant 0 : i32
    return %arg0, %arg2 : i32, i32
  }
  func.func @transform_1(%arg0: i32, %arg1: i32, %arg2: i32) -> (i32, i32) {
    %c0_i32 = arith.constant 0 : i32
    return %arg2, %arg1 : i32, i32
  }
  func.func @transform_2(%arg0: i32, %arg1: i32, %arg2: i32) -> (i32, i32) {
    %c0_i32 = arith.constant 0 : i32
    %c0_i32_0 = arith.constant 0 : i32
    return %c0_i32, %arg1 : i32, i32
  }
  func.func @transform_3(%arg0: i32, %arg1: i32, %arg2: i32) -> (i32, i32) {
    %c0_i32 = arith.constant 0 : i32
    return %arg0, %arg1 : i32, i32
  }
}

module attributes {stable_mosaic.version = 11 : i64} {
  func.func @_gemm_bias_kernel(%arg0: i32, %arg1: i32, %arg2: i32, %arg3: memref<32x384xbf16, #tpu.memory_space<vmem>>, %arg4: memref<384x128xbf16, #tpu.memory_space<vmem>>, %arg5: memref<1x128xf32, #tpu.memory_space<vmem>>, %arg6: memref<32x128xf32, #tpu.memory_space<vmem>>, %arg7: memref<32x128xf32, #tpu.memory_space<vmem>>) attributes {dimension_semantics = [#tpu.dimension_semantics<parallel>, #tpu.dimension_semantics<parallel>, #tpu.dimension_semantics<arbitrary>], iteration_bounds = array<i64: 1, 1, 1>, scalar_prefetch = 0 : i64, scratch_operands = 1 : i64, tpu.core_type = #tpu.core_type<tc>, window_params = [{transform_indices = @transform_0, window_bounds = array<i64: 32, 384>}, {transform_indices = @transform_1, window_bounds = array<i64: 384, 128>}, {transform_indices = @transform_2, window_bounds = array<i64: 1, 128>}, {transform_indices = @transform_3, window_bounds = array<i64: 32, 128>}]} {
    %c0_i32 = arith.constant 0 : i32
    %0 = arith.cmpi eq, %arg2, %c0_i32 : i32
    %1 = arith.extui %0 : i1 to i32
    %c0_i32_0 = arith.constant 0 : i32
    %2 = arith.cmpi ne, %1, %c0_i32_0 : i32
    scf.if %2 {
      %cst_10 = arith.constant 0.000000e+00 : f32
      %12 = vector.broadcast %cst_10 : f32 to vector<32x128xf32>
      %c0_11 = arith.constant 0 : index
      %c0_12 = arith.constant 0 : index
      %13 = vector.load %arg7[%c0_11, %c0_12] : memref<32x128xf32, #tpu.memory_space<vmem>>, vector<32x128xf32>
      tpu.vector_store %arg7[%c0_11, %c0_12], %12 {strides = array<i32>} : memref<32x128xf32, #tpu.memory_space<vmem>>, vector<32x128xf32>,
    } else {
    }
    %c0 = arith.constant 0 : index
    %c0_1 = arith.constant 0 : index
    %3 = vector.load %arg7[%c0, %c0_1] : memref<32x128xf32, #tpu.memory_space<vmem>>, vector<32x128xf32>
    %c0_2 = arith.constant 0 : index
    %c0_3 = arith.constant 0 : index
    %4 = vector.load %arg3[%c0_2, %c0_3] : memref<32x384xbf16, #tpu.memory_space<vmem>>, vector<32x384xbf16>
    %c0_4 = arith.constant 0 : index
    %c0_5 = arith.constant 0 : index
    %5 = vector.load %arg4[%c0_4, %c0_5] : memref<384x128xbf16, #tpu.memory_space<vmem>>, vector<384x128xbf16>
    %cst = arith.constant dense<0.000000e+00> : vector<32x128xf32>
    %6 = tpu.matmul %4, %5, %cst {dimension_numbers = #tpu.dot_dimension_numbers<[1], [0], [0], [1], [0, 0, 1, 1], [], []>} : vector<32x384xbf16>, vector<384x128xbf16>, vector<32x128xf32> -> vector<32x128xf32>
    %7 = arith.addf %3, %6 : vector<32x128xf32>
    %c0_6 = arith.constant 0 : index
    %c0_7 = arith.constant 0 : index
    %8 = vector.load %arg7[%c0_6, %c0_7] : memref<32x128xf32, #tpu.memory_space<vmem>>, vector<32x128xf32>
    tpu.vector_store %arg7[%c0_6, %c0_7], %7 {strides = array<i32>} : memref<32x128xf32, #tpu.memory_space<vmem>>, vector<32x128xf32>,
    %c0_i32_8 = arith.constant 0 : i32
    %9 = arith.cmpi eq, %arg2, %c0_i32_8 : i32
    %10 = arith.extui %9 : i1 to i32
    %c0_i32_9 = arith.constant 0 : i32
    %11 = arith.cmpi ne, %10, %c0_i32_9 : i32
    scf.if %11 {
      %c0_10 = arith.constant 0 : index
      %c0_11 = arith.constant 0 : index
      %12 = vector.load %arg7[%c0_10, %c0_11] : memref<32x128xf32, #tpu.memory_space<vmem>>, vector<32x128xf32>
      %c0_12 = arith.constant 0 : index
      %c0_13 = arith.constant 0 : index
      %13 = vector.load %arg5[%c0_12, %c0_13] : memref<1x128xf32, #tpu.memory_space<vmem>>, vector<1x128xf32>
      %14 = vector.broadcast %13 : vector<1x128xf32> to vector<32x128xf32>
      %15 = arith.addf %12, %14 : vector<32x128xf32>
      %c0_14 = arith.constant 0 : index
      %c0_15 = arith.constant 0 : index
      %16 = vector.load %arg6[%c0_14, %c0_15] : memref<32x128xf32, #tpu.memory_space<vmem>>, vector<32x128xf32>
      tpu.vector_store %arg6[%c0_14, %c0_15], %15 {strides = array<i32>} : memref<32x128xf32, #tpu.memory_space<vmem>>, vector<32x128xf32>,
    } else {
    }
    return
  }
  func.func @transform_0(%arg0: i32, %arg1: i32, %arg2: i32) -> (i32, i32) {
    %c0_i32 = arith.constant 0 : i32
    return %arg0, %arg2 : i32, i32
  }
  func.func @transform_1(%arg0: i32, %arg1: i32, %arg2: i32) -> (i32, i32) {
    %c0_i32 = arith.constant 0 : i32
    return %arg2, %arg1 : i32, i32
  }
  func.func @transform_2(%arg0: i32, %arg1: i32, %arg2: i32) -> (i32, i32) {
    %c0_i32 = arith.constant 0 : i32
    %c0_i32_0 = arith.constant 0 : i32
    return %c0_i32, %arg1 : i32, i32
  }
  func.func @transform_3(%arg0: i32, %arg1: i32, %arg2: i32) -> (i32, i32) {
    %c0_i32 = arith.constant 0 : i32
    return %arg0, %arg1 : i32, i32
  }
}

module attributes {stable_mosaic.version = 11 : i64} {
  func.func @_mask_upsample_kernel(%arg0: i32, %arg1: memref<32x256xbf16, #tpu.memory_space<vmem>>, %arg2: memref<256x2304xbf16, #tpu.memory_space<vmem>>, %arg3: memref<1x2304xf32, #tpu.memory_space<vmem>>, %arg4: memref<32x18xf32, #tpu.memory_space<vmem>>, %arg5: memref<32x512xf32, #tpu.memory_space<vmem>>) attributes {dimension_semantics = [#tpu.dimension_semantics<parallel>], iteration_bounds = array<i64: 1>, scalar_prefetch = 0 : i64, scratch_operands = 0 : i64, tpu.core_type = #tpu.core_type<tc>, window_params = [{transform_indices = @transform_0, window_bounds = array<i64: 32, 256>}, {pipeline_mode = #tpu.pipeline_mode<synchronous>, transform_indices = @transform_1, window_bounds = array<i64: 256, 2304>}, {pipeline_mode = #tpu.pipeline_mode<synchronous>, transform_indices = @transform_2, window_bounds = array<i64: 1, 2304>}, {transform_indices = @transform_3, window_bounds = array<i64: 32, 18>}, {transform_indices = @transform_4, window_bounds = array<i64: 32, 512>}]} {
    %c0 = arith.constant 0 : index
    %c0_0 = arith.constant 0 : index
    %0 = vector.load %arg1[%c0, %c0_0] : memref<32x256xbf16, #tpu.memory_space<vmem>>, vector<32x256xbf16>
    %c0_1 = arith.constant 0 : index
    %c0_2 = arith.constant 0 : index
    %1 = vector.load %arg2[%c0_1, %c0_2] : memref<256x2304xbf16, #tpu.memory_space<vmem>>, vector<256x2304xbf16>
    %cst = arith.constant dense<0.000000e+00> : vector<32x2304xf32>
    %2 = tpu.matmul %0, %1, %cst {dimension_numbers = #tpu.dot_dimension_numbers<[1], [0], [0], [1], [0, 0, 1, 1], [], []>} : vector<32x256xbf16>, vector<256x2304xbf16>, vector<32x2304xf32> -> vector<32x2304xf32>
    %c0_3 = arith.constant 0 : index
    %c0_4 = arith.constant 0 : index
    %3 = vector.load %arg3[%c0_3, %c0_4] : memref<1x2304xf32, #tpu.memory_space<vmem>>, vector<1x2304xf32>
    %4 = vector.broadcast %3 : vector<1x2304xf32> to vector<32x2304xf32>
    %5 = arith.addf %2, %4 : vector<32x2304xf32>
    %cst_5 = arith.constant 2.500000e-01 : f32
    %6 = vector.broadcast %cst_5 : f32 to vector<32x2304xf32>
    %7 = arith.mulf %6, %5 : vector<32x2304xf32>
    %c0_6 = arith.constant 0 : index
    %c0_7 = arith.constant 0 : index
    %8 = vector.load %arg4[%c0_6, %c0_7] : memref<32x18xf32, #tpu.memory_space<vmem>>, vector<32x18xf32>
    %cst_8 = arith.constant 1.600000e+01 : f32
    %9 = vector.broadcast %cst_8 : f32 to vector<32x18xf32>
    %10 = arith.mulf %8, %9 : vector<32x18xf32>
    %11 = vector.extract_strided_slice %7 {offsets = [0, 0], sizes = [32, 256], strides = [1, 1]} : vector<32x2304xf32> to vector<32x256xf32>
    %12 = vector.extract_strided_slice %7 {offsets = [0, 256], sizes = [32, 256], strides = [1, 1]} : vector<32x2304xf32> to vector<32x256xf32>
    %13 = arith.maximumf %11, %12 : vector<32x256xf32>
    %14 = vector.extract_strided_slice %7 {offsets = [0, 512], sizes = [32, 256], strides = [1, 1]} : vector<32x2304xf32> to vector<32x256xf32>
    %15 = arith.maximumf %13, %14 : vector<32x256xf32>
    %16 = vector.extract_strided_slice %7 {offsets = [0, 768], sizes = [32, 256], strides = [1, 1]} : vector<32x2304xf32> to vector<32x256xf32>
    %17 = arith.maximumf %15, %16 : vector<32x256xf32>
    %18 = vector.extract_strided_slice %7 {offsets = [0, 1024], sizes = [32, 256], strides = [1, 1]} : vector<32x2304xf32> to vector<32x256xf32>
    %19 = arith.maximumf %17, %18 : vector<32x256xf32>
    %20 = vector.extract_strided_slice %7 {offsets = [0, 1280], sizes = [32, 256], strides = [1, 1]} : vector<32x2304xf32> to vector<32x256xf32>
    %21 = arith.maximumf %19, %20 : vector<32x256xf32>
    %22 = vector.extract_strided_slice %7 {offsets = [0, 1536], sizes = [32, 256], strides = [1, 1]} : vector<32x2304xf32> to vector<32x256xf32>
    %23 = arith.maximumf %21, %22 : vector<32x256xf32>
    %24 = vector.extract_strided_slice %7 {offsets = [0, 1792], sizes = [32, 256], strides = [1, 1]} : vector<32x2304xf32> to vector<32x256xf32>
    %25 = arith.maximumf %23, %24 : vector<32x256xf32>
    %26 = vector.extract_strided_slice %7 {offsets = [0, 2048], sizes = [32, 256], strides = [1, 1]} : vector<32x2304xf32> to vector<32x256xf32>
    %27 = arith.maximumf %25, %26 : vector<32x256xf32>
    %28 = vector.extract_strided_slice %7 {offsets = [0, 0], sizes = [32, 256], strides = [1, 1]} : vector<32x2304xf32> to vector<32x256xf32>
    %29 = arith.subf %28, %27 : vector<32x256xf32>
    %30 = math.exp %29 : vector<32x256xf32>
    %31 = vector.extract_strided_slice %7 {offsets = [0, 256], sizes = [32, 256], strides = [1, 1]} : vector<32x2304xf32> to vector<32x256xf32>
    %32 = arith.subf %31, %27 : vector<32x256xf32>
    %33 = math.exp %32 : vector<32x256xf32>
    %34 = arith.addf %30, %33 : vector<32x256xf32>
    %35 = vector.extract_strided_slice %7 {offsets = [0, 512], sizes = [32, 256], strides = [1, 1]} : vector<32x2304xf32> to vector<32x256xf32>
    %36 = arith.subf %35, %27 : vector<32x256xf32>
    %37 = math.exp %36 : vector<32x256xf32>
    %38 = arith.addf %34, %37 : vector<32x256xf32>
    %39 = vector.extract_strided_slice %7 {offsets = [0, 768], sizes = [32, 256], strides = [1, 1]} : vector<32x2304xf32> to vector<32x256xf32>
    %40 = arith.subf %39, %27 : vector<32x256xf32>
    %41 = math.exp %40 : vector<32x256xf32>
    %42 = arith.addf %38, %41 : vector<32x256xf32>
    %43 = vector.extract_strided_slice %7 {offsets = [0, 1024], sizes = [32, 256], strides = [1, 1]} : vector<32x2304xf32> to vector<32x256xf32>
    %44 = arith.subf %43, %27 : vector<32x256xf32>
    %45 = math.exp %44 : vector<32x256xf32>
    %46 = arith.addf %42, %45 : vector<32x256xf32>
    %47 = vector.extract_strided_slice %7 {offsets = [0, 1280], sizes = [32, 256], strides = [1, 1]} : vector<32x2304xf32> to vector<32x256xf32>
    %48 = arith.subf %47, %27 : vector<32x256xf32>
    %49 = math.exp %48 : vector<32x256xf32>
    %50 = arith.addf %46, %49 : vector<32x256xf32>
    %51 = vector.extract_strided_slice %7 {offsets = [0, 1536], sizes = [32, 256], strides = [1, 1]} : vector<32x2304xf32> to vector<32x256xf32>
    %52 = arith.subf %51, %27 : vector<32x256xf32>
    %53 = math.exp %52 : vector<32x256xf32>
    %54 = arith.addf %50, %53 : vector<32x256xf32>
    %55 = vector.extract_strided_slice %7 {offsets = [0, 1792], sizes = [32, 256], strides = [1, 1]} : vector<32x2304xf32> to vector<32x256xf32>
    %56 = arith.subf %55, %27 : vector<32x256xf32>
    %57 = math.exp %56 : vector<32x256xf32>
    %58 = arith.addf %54, %57 : vector<32x256xf32>
    %59 = vector.extract_strided_slice %7 {offsets = [0, 2048], sizes = [32, 256], strides = [1, 1]} : vector<32x2304xf32> to vector<32x256xf32>
    %60 = arith.subf %59, %27 : vector<32x256xf32>
    %61 = math.exp %60 : vector<32x256xf32>
    %62 = arith.addf %58, %61 : vector<32x256xf32>
    %63 = tpu.reciprocal %62 {approx = true} : vector<32x256xf32> -> vector<32x256xf32>
    %64 = arith.mulf %30, %63 : vector<32x256xf32>
    %65 = vector.extract_strided_slice %10 {offsets = [0, 0], sizes = [32, 1], strides = [1, 1]} : vector<32x18xf32> to vector<32x1xf32>
    %66 = vector.broadcast %65 : vector<32x1xf32> to vector<32x256xf32>
    %67 = arith.mulf %64, %66 : vector<32x256xf32>
    %68 = vector.extract_strided_slice %10 {offsets = [0, 9], sizes = [32, 1], strides = [1, 1]} : vector<32x18xf32> to vector<32x1xf32>
    %69 = vector.broadcast %68 : vector<32x1xf32> to vector<32x256xf32>
    %70 = arith.mulf %64, %69 : vector<32x256xf32>
    %71 = arith.mulf %33, %63 : vector<32x256xf32>
    %72 = vector.extract_strided_slice %10 {offsets = [0, 1], sizes = [32, 1], strides = [1, 1]} : vector<32x18xf32> to vector<32x1xf32>
    %73 = vector.broadcast %72 : vector<32x1xf32> to vector<32x256xf32>
    %74 = arith.mulf %71, %73 : vector<32x256xf32>
    %75 = vector.extract_strided_slice %10 {offsets = [0, 10], sizes = [32, 1], strides = [1, 1]} : vector<32x18xf32> to vector<32x1xf32>
    %76 = vector.broadcast %75 : vector<32x1xf32> to vector<32x256xf32>
    %77 = arith.mulf %71, %76 : vector<32x256xf32>
    %78 = arith.addf %67, %74 : vector<32x256xf32>
    %79 = arith.addf %70, %77 : vector<32x256xf32>
    %80 = arith.mulf %37, %63 : vector<32x256xf32>
    %81 = vector.extract_strided_slice %10 {offsets = [0, 2], sizes = [32, 1], strides = [1, 1]} : vector<32x18xf32> to vector<32x1xf32>
    %82 = vector.broadcast %81 : vector<32x1xf32> to vector<32x256xf32>
    %83 = arith.mulf %80, %82 : vector<32x256xf32>
    %84 = vector.extract_strided_slice %10 {offsets = [0, 11], sizes = [32, 1], strides = [1, 1]} : vector<32x18xf32> to vector<32x1xf32>
    %85 = vector.broadcast %84 : vector<32x1xf32> to vector<32x256xf32>
    %86 = arith.mulf %80, %85 : vector<32x256xf32>
    %87 = arith.addf %78, %83 : vector<32x256xf32>
    %88 = arith.addf %79, %86 : vector<32x256xf32>
    %89 = arith.mulf %41, %63 : vector<32x256xf32>
    %90 = vector.extract_strided_slice %10 {offsets = [0, 3], sizes = [32, 1], strides = [1, 1]} : vector<32x18xf32> to vector<32x1xf32>
    %91 = vector.broadcast %90 : vector<32x1xf32> to vector<32x256xf32>
    %92 = arith.mulf %89, %91 : vector<32x256xf32>
    %93 = vector.extract_strided_slice %10 {offsets = [0, 12], sizes = [32, 1], strides = [1, 1]} : vector<32x18xf32> to vector<32x1xf32>
    %94 = vector.broadcast %93 : vector<32x1xf32> to vector<32x256xf32>
    %95 = arith.mulf %89, %94 : vector<32x256xf32>
    %96 = arith.addf %87, %92 : vector<32x256xf32>
    %97 = arith.addf %88, %95 : vector<32x256xf32>
    %98 = arith.mulf %45, %63 : vector<32x256xf32>
    %99 = vector.extract_strided_slice %10 {offsets = [0, 4], sizes = [32, 1], strides = [1, 1]} : vector<32x18xf32> to vector<32x1xf32>
    %100 = vector.broadcast %99 : vector<32x1xf32> to vector<32x256xf32>
    %101 = arith.mulf %98, %100 : vector<32x256xf32>
    %102 = vector.extract_strided_slice %10 {offsets = [0, 13], sizes = [32, 1], strides = [1, 1]} : vector<32x18xf32> to vector<32x1xf32>
    %103 = vector.broadcast %102 : vector<32x1xf32> to vector<32x256xf32>
    %104 = arith.mulf %98, %103 : vector<32x256xf32>
    %105 = arith.addf %96, %101 : vector<32x256xf32>
    %106 = arith.addf %97, %104 : vector<32x256xf32>
    %107 = arith.mulf %49, %63 : vector<32x256xf32>
    %108 = vector.extract_strided_slice %10 {offsets = [0, 5], sizes = [32, 1], strides = [1, 1]} : vector<32x18xf32> to vector<32x1xf32>
    %109 = vector.broadcast %108 : vector<32x1xf32> to vector<32x256xf32>
    %110 = arith.mulf %107, %109 : vector<32x256xf32>
    %111 = vector.extract_strided_slice %10 {offsets = [0, 14], sizes = [32, 1], strides = [1, 1]} : vector<32x18xf32> to vector<32x1xf32>
    %112 = vector.broadcast %111 : vector<32x1xf32> to vector<32x256xf32>
    %113 = arith.mulf %107, %112 : vector<32x256xf32>
    %114 = arith.addf %105, %110 : vector<32x256xf32>
    %115 = arith.addf %106, %113 : vector<32x256xf32>
    %116 = arith.mulf %53, %63 : vector<32x256xf32>
    %117 = vector.extract_strided_slice %10 {offsets = [0, 6], sizes = [32, 1], strides = [1, 1]} : vector<32x18xf32> to vector<32x1xf32>
    %118 = vector.broadcast %117 : vector<32x1xf32> to vector<32x256xf32>
    %119 = arith.mulf %116, %118 : vector<32x256xf32>
    %120 = vector.extract_strided_slice %10 {offsets = [0, 15], sizes = [32, 1], strides = [1, 1]} : vector<32x18xf32> to vector<32x1xf32>
    %121 = vector.broadcast %120 : vector<32x1xf32> to vector<32x256xf32>
    %122 = arith.mulf %116, %121 : vector<32x256xf32>
    %123 = arith.addf %114, %119 : vector<32x256xf32>
    %124 = arith.addf %115, %122 : vector<32x256xf32>
    %125 = arith.mulf %57, %63 : vector<32x256xf32>
    %126 = vector.extract_strided_slice %10 {offsets = [0, 7], sizes = [32, 1], strides = [1, 1]} : vector<32x18xf32> to vector<32x1xf32>
    %127 = vector.broadcast %126 : vector<32x1xf32> to vector<32x256xf32>
    %128 = arith.mulf %125, %127 : vector<32x256xf32>
    %129 = vector.extract_strided_slice %10 {offsets = [0, 16], sizes = [32, 1], strides = [1, 1]} : vector<32x18xf32> to vector<32x1xf32>
    %130 = vector.broadcast %129 : vector<32x1xf32> to vector<32x256xf32>
    %131 = arith.mulf %125, %130 : vector<32x256xf32>
    %132 = arith.addf %123, %128 : vector<32x256xf32>
    %133 = arith.addf %124, %131 : vector<32x256xf32>
    %134 = arith.mulf %61, %63 : vector<32x256xf32>
    %135 = vector.extract_strided_slice %10 {offsets = [0, 8], sizes = [32, 1], strides = [1, 1]} : vector<32x18xf32> to vector<32x1xf32>
    %136 = vector.broadcast %135 : vector<32x1xf32> to vector<32x256xf32>
    %137 = arith.mulf %134, %136 : vector<32x256xf32>
    %138 = vector.extract_strided_slice %10 {offsets = [0, 17], sizes = [32, 1], strides = [1, 1]} : vector<32x18xf32> to vector<32x1xf32>
    %139 = vector.broadcast %138 : vector<32x1xf32> to vector<32x256xf32>
    %140 = arith.mulf %134, %139 : vector<32x256xf32>
    %141 = arith.addf %132, %137 : vector<32x256xf32>
    %142 = arith.addf %133, %140 : vector<32x256xf32>
    %c0_9 = arith.constant 0 : index
    %c0_10 = arith.constant 0 : index
    %143 = vector.load %arg5[%c0_9, %c0_10] : memref<32x512xf32, #tpu.memory_space<vmem>>, vector<32x256xf32>
    tpu.vector_store %arg5[%c0_9, %c0_10], %141 {strides = array<i32>} : memref<32x512xf32, #tpu.memory_space<vmem>>, vector<32x256xf32>,
    %c0_11 = arith.constant 0 : index
    %c256 = arith.constant 256 : index
    %144 = vector.load %arg5[%c0_11, %c256] : memref<32x512xf32, #tpu.memory_space<vmem>>, vector<32x256xf32>
    tpu.vector_store %arg5[%c0_11, %c256], %142 {strides = array<i32>} : memref<32x512xf32, #tpu.memory_space<vmem>>, vector<32x256xf32>,
    return
  }
  func.func @transform_0(%arg0: i32) -> (i32, i32) {
    %c0_i32 = arith.constant 0 : i32
    %c0_i32_0 = arith.constant 0 : i32
    return %arg0, %c0_i32 : i32, i32
  }
  func.func @transform_1(%arg0: i32) -> (i32, i32) {
    %c0_i32 = arith.constant 0 : i32
    %c0_i32_0 = arith.constant 0 : i32
    %c0_i32_1 = arith.constant 0 : i32
    return %c0_i32, %c0_i32_0 : i32, i32
  }
  func.func @transform_2(%arg0: i32) -> (i32, i32) {
    %c0_i32 = arith.constant 0 : i32
    %c0_i32_0 = arith.constant 0 : i32
    %c0_i32_1 = arith.constant 0 : i32
    return %c0_i32, %c0_i32_0 : i32, i32
  }
  func.func @transform_3(%arg0: i32) -> (i32, i32) {
    %c0_i32 = arith.constant 0 : i32
    %c0_i32_0 = arith.constant 0 : i32
    return %arg0, %c0_i32 : i32, i32
  }
  func.func @transform_4(%arg0: i32) -> (i32, i32) {
    %c0_i32 = arith.constant 0 : i32
    %c0_i32_0 = arith.constant 0 : i32
    return %arg0, %c0_i32 : i32, i32
  }
}

</mosaic_0001>

<bundles_post_ra>
// kernel: _lambda_.3
= control target key start
LH: loop header
LB: loop body
LE: loop exit
PB: predicated region body
PF: predicated region fallthrough
CT: control target
= control target key end

     0   :  { %v1716_v1 = vmov 0   ;;  %s2188_s1 = inlined_call_operand.vmem [shape: bf16[640,384], index: 1, kind: input, shape index: {}]   ;;  %s2189_s0 = inlined_call_operand.vmem [shape: bf16[32,640], index: 0, kind: input, shape index: {}]   ;;  %s2190_s2 = inlined_call_operand.vmem [shape: f32[1,384], index: 2, kind: input, shape index: {}]   ;;  %s2191_s3 = inlined_call_operand.vmem [shape: f32[32,384], index: 3, kind: output, shape index: {}]  }
   0x1   :  { %v1542_v0 = vld [vmem:[%s2188_s1 + $0x4] ss:$12 sps:$4 sm:$0xff]   ;;  %1045 = vmatprep.mubr.bf16.mxu1 %v1716_v1  ;;  %v1546_v3 = vld [vmem:[%s2188_s1] ss:$12 sps:$4 sm:$0xff]   ;;  %v1548_v5 = vld [vmem:[%s2188_s1 + $0x1c] ss:$12 sps:$4 sm:$0xff]  }
   0x2   :  { %v1544_v2 = vld [vmem:[%s2188_s1 + $0x304] ss:$12 sps:$4 sm:$0xff]   ;;  %907 = vmatprep.subr.bf16.mxu0 %v1542_v0  ;;  %v1547_v4 = vld [vmem:[%s2188_s1 + $0x300] ss:$12 sps:$4 sm:$0xff]   ;;  %v1550_v6 = vld [vmem:[%s2188_s1 + $0x31c] ss:$12 sps:$4 sm:$0xff]  }
   0x3   :  { %1013 = vmatprep.subr.bf16.mxu1 %v1544_v2  ;;  %908 = vmatpush1.bf16.msra.mxu0 %v1546_v3  ;;  %v1552_v7 = vld [vmem:[%s2188_s1 + $0x18] ss:$12 sps:$4 sm:$0xff]   ;;  %v1554_v9 = vld [vmem:[%s2188_s1 + $0x34] ss:$12 sps:$4 sm:$0xff]   ;;  %v1558_v11 = vld [vmem:[%s2188_s1 + $0x30] ss:$12 sps:$4 sm:$0xff]  }
   0x4   :  { %1014 = vmatpush1.bf16.msra.mxu1 %v1547_v4  ;;  %909 = vmatprep.subr.bf16.mxu0 %v1548_v5  ;;  %v1553_v8 = vld [vmem:[%s2188_s1 + $0x318] ss:$12 sps:$4 sm:$0xff]   ;;  %v1556_v10 = vld [vmem:[%s2188_s1 + $0x334] ss:$12 sps:$4 sm:$0xff]   ;;  %v1559_v12 = vld [vmem:[%s2188_s1 + $0x330] ss:$12 sps:$4 sm:$0xff]  }
   0x5   :  { %1015 = vmatprep.subr.bf16.mxu1 %v1550_v6  ;;  %v1560_v13 = vld [vmem:[%s2188_s1 + $0x4c] ss:$12 sps:$4 sm:$0xff]   ;;  %v1564_v15 = vld [vmem:[%s2188_s1 + $0x48] ss:$12 sps:$4 sm:$0xff]   ;;  %v1566_v17 = vld [vmem:[%s2188_s1 + $0x64] ss:$12 sps:$4 sm:$0xff]  }
   0x6   :  { %v1562_v14 = vld [vmem:[%s2188_s1 + $0x34c] ss:$12 sps:$4 sm:$0xff]   ;;  %v1565_v16 = vld [vmem:[%s2188_s1 + $0x348] ss:$12 sps:$4 sm:$0xff]   ;;  %v1568_v18 = vld [vmem:[%s2188_s1 + $0x364] ss:$12 sps:$4 sm:$0xff]  }
   0x7   :  { %910 = vmatpush1.bf16.msra.mxu0 %v1552_v7  ;;  %v1570_v19 = vld [vmem:[%s2188_s1 + $0x60] ss:$12 sps:$4 sm:$0xff]   ;;  %v1572_v21 = vld [vmem:[%s2188_s1 + $0x7c] ss:$12 sps:$4 sm:$0xff]   ;;  %v1576_v23 = vld [vmem:[%s2188_s1 + $0x78] ss:$12 sps:$4 sm:$0xff]  }
   0x8   :  { %1016 = vmatpush1.bf16.msra.mxu1 %v1553_v8  ;;  %911 = vmatprep.subr.bf16.mxu0 %v1554_v9  ;;  %v1571_v20 = vld [vmem:[%s2188_s1 + $0x360] ss:$12 sps:$4 sm:$0xff]   ;;  %v1574_v22 = vld [vmem:[%s2188_s1 + $0x37c] ss:$12 sps:$4 sm:$0xff]   ;;  %v1577_v24 = vld [vmem:[%s2188_s1 + $0x378] ss:$12 sps:$4 sm:$0xff]  }
   0x9   :  { %1017 = vmatprep.subr.bf16.mxu1 %v1556_v10  ;;  %v1578_v25 = vld [vmem:[%s2188_s1 + $0x94] ss:$12 sps:$4 sm:$0xff]   ;;  %v1582_v27 = vld [vmem:[%s2188_s1 + $0x90] ss:$12 sps:$4 sm:$0xff]   ;;  %v1584_v29 = vld [vmem:[%s2188_s1 + $0xac] ss:$12 sps:$4 sm:$0xff]  }
   0xa   :  { %v1580_v26 = vld [vmem:[%s2188_s1 + $0x394] ss:$12 sps:$4 sm:$0xff]   ;;  %v1583_v28 = vld [vmem:[%s2188_s1 + $0x390] ss:$12 sps:$4 sm:$0xff]   ;;  %v1586_v30 = vld [vmem:[%s2188_s1 + $0x3ac] ss:$12 sps:$4 sm:$0xff]  }
   0xb   :  { %912 = vmatpush1.bf16.msra.mxu0 %v1558_v11  ;;  %v1588_v31 = vld [vmem:[%s2188_s1 + $0xa8] ss:$12 sps:$4 sm:$0xff]   ;;  %v1590_v33 = vld [vmem:[%s2188_s1 + $0xc4] ss:$12 sps:$4 sm:$0xff]   ;;  %v1593_v35 = vld [vmem:[%s2188_s1 + $0xc0] ss:$12 sps:$4 sm:$0xff]  }
   0xc   :  { %1018 = vmatpush1.bf16.msra.mxu1 %v1559_v12  ;;  %913 = vmatprep.subr.bf16.mxu0 %v1560_v13  ;;  %v1589_v32 = vld [vmem:[%s2188_s1 + $0x3a8] ss:$12 sps:$4 sm:$0xff]   ;;  %v1846_v36 = vld [vmem:[%s2189_s0 + $0x10] ss:$20 sps:$4 sm:$0xff]   ;;  %v1598_v39 = vld [vmem:[%s2188_s1 + $0xe0] ss:$12 sps:$4 sm:$0xff]  }
   0xd   :  { %1019 = vmatprep.subr.bf16.mxu1 %v1562_v14  ;;  %v1592_v34 = vld [vmem:[%s2188_s1 + $0xc8] ss:$12 sps:$4 sm:$0xff]   ;;  %v1599_v40 = vld [vmem:[%s2188_s1 + $0xd8] ss:$12 sps:$4 sm:$0xff]   ;;  %v1600_v41 = vld [vmem:[%s2188_s1 + $0x20] ss:$12 sps:$4 sm:$0xff]  }
   0xe   :  { %v1595_v37 = vld [vmem:[%s2188_s1 + $0x8] ss:$12 sps:$4 sm:$0xff]   ;;  %v1603_v43 = vld [vmem:[%s2188_s1 + $0xf8] ss:$12 sps:$4 sm:$0xff]   ;;  %v1604_v44 = vld [vmem:[%s2188_s1 + $0xf0] ss:$12 sps:$4 sm:$0xff]  }
   0xf   :  { %914 = vmatpush1.bf16.msra.mxu0 %v1564_v15  ;;  %v1596_v38 = vld [vmem:[%s2188_s1 + $0xdc] ss:$12 sps:$4 sm:$0xff]   ;;  %v1601_v42 = vld [vmem:[%s2188_s1 + $0xf4] ss:$12 sps:$4 sm:$0xff]   ;;  %v1605_v45 = vld [vmem:[%s2188_s1 + $0x38] ss:$12 sps:$4 sm:$0xff]  }
  0x10   :  { %1020 = vmatpush1.bf16.msra.mxu1 %v1565_v16  ;;  %915 = vmatprep.subr.bf16.mxu0 %v1566_v17  ;;  %v1606_v46 = vld [vmem:[%s2188_s1 + $0x10c] ss:$12 sps:$4 sm:$0xff]   ;;  %v1608_v47 = vld [vmem:[%s2188_s1 + $0x110] ss:$12 sps:$4 sm:$0xff]   ;;  %v1609_v48 = vld [vmem:[%s2188_s1 + $0x108] ss:$12 sps:$4 sm:$0xff]  }
  0x11   :  { %1021 = vmatprep.subr.bf16.mxu1 %v1568_v18  ;;  %v1610_v49 = vld [vmem:[%s2188_s1 + $0x50] ss:$12 sps:$4 sm:$0xff]   ;;  %v1613_v51 = vld [vmem:[%s2188_s1 + $0x128] ss:$12 sps:$4 sm:$0xff]   ;;  %v1898_v52 = vld [vmem:[%s2189_s0 + $0x38] ss:$20 sps:$4 sm:$0xff]  }
  0x12   :  { %v1611_v50 = vld [vmem:[%s2188_s1 + $0x124] ss:$12 sps:$4 sm:$0xff]   ;;  %v1614_v53 = vld [vmem:[%s2188_s1 + $0x120] ss:$12 sps:$4 sm:$0xff]   ;;  %v1615_v54 = vld [vmem:[%s2188_s1 + $0x68] ss:$12 sps:$4 sm:$0xff]  }
  0x13   :  { %916 = vmatpush1.bf16.msra.mxu0 %v1570_v19  ;;  %v1616_v55 = vld [vmem:[%s2188_s1 + $0x13c] ss:$12 sps:$4 sm:$0xff]   ;;  %v1618_v56 = vld [vmem:[%s2188_s1 + $0x140] ss:$12 sps:$4 sm:$0xff]   ;;  %v1619_v57 = vld [vmem:[%s2188_s1 + $0x138] ss:$12 sps:$4 sm:$0xff]  }
  0x14   :  { %1022 = vmatpush1.bf16.msra.mxu1 %v1571_v20  ;;  %917 = vmatprep.subr.bf16.mxu0 %v1572_v21  ;;  %v1634_v58 = vld [vmem:[%s2189_s0 + $0x4] ss:$20 sps:$4 sm:$0xff]   ;;  %v1620_v59 = vld [vmem:[%s2188_s1 + $0x80] ss:$12 sps:$4 sm:$0xff]   ;;  %v1624_v62 = vld [vmem:[%s2188_s1 + $0x150] ss:$12 sps:$4 sm:$0xff]  }
  0x15   :  { %1023 = vmatprep.subr.bf16.mxu1 %v1574_v22  ;;  %v1621_v60 = vld [vmem:[%s2188_s1 + $0x154] ss:$12 sps:$4 sm:$0xff]   ;;  %v1623_v61 = vld [vmem:[%s2188_s1 + $0x158] ss:$12 sps:$4 sm:$0xff]   ;;  %939 = vmatprep.mubr.bf16.mxu0 %v1634_v58  ;;  %v1631_v3 = vld [vmem:[%s2188_s1 + $0xb0] ss:$12 sps:$4 sm:$0xff]  }
  0x16   :  { %v1626_v63 = vld [vmem:[%s2188_s1 + $0x98] ss:$12 sps:$4 sm:$0xff]   ;;  %v1630_v2 = vld [vmem:[%s2188_s1 + $0x168] ss:$12 sps:$4 sm:$0xff]   ;;  %v1635_v7 = vld [vmem:[%s2188_s1 + $0x180] ss:$12 sps:$4 sm:$0xff]  }
  0x17   :  { %918 = vmatpush1.bf16.msra.mxu0 %v1576_v23  ;;  %v1627_v0 = vld [vmem:[%s2188_s1 + $0x16c] ss:$12 sps:$4 sm:$0xff]   ;;  %v1637_v4 = vld [vmem:[%s2188_s1 + $0x184] ss:$12 sps:$4 sm:$0xff]   ;;  %v1638_v5 = vld [vmem:[%s2188_s1 + $0x248] ss:$12 sps:$4 sm:$0xff]  }
  0x18   :  { %1024 = vmatpush1.bf16.msra.mxu1 %v1577_v24  ;;  %919 = vmatprep.subr.bf16.mxu0 %v1578_v25  ;;  %v1632_v6 = vld [vmem:[%s2189_s0] ss:$20 sps:$4 sm:$0xff]   ;;  %v1642_v9 = vld [vmem:[%s2188_s1 + $0x19c] ss:$12 sps:$4 sm:$0xff]   ;;  %v1640_v11 = vld [vmem:[%s2188_s1 + $0x198] ss:$12 sps:$4 sm:$0xff]  }
  0x19   :  { %1025 = vmatprep.subr.bf16.mxu1 %v1580_v26  ;;  %v1639_v8 = vld [vmem:[%s2188_s1 + $0x188] ss:$12 sps:$4 sm:$0xff]   ;;  %v1643_v10 = vld [vmem:[%s2188_s1 + $0x260] ss:$12 sps:$4 sm:$0xff]   ;;  %v1648_v14 = vld [vmem:[%s2188_s1 + $0x278] ss:$12 sps:$4 sm:$0xff]  }
  0x1a   :  { %v1644_v12 = vld [vmem:[%s2188_s1 + $0x1a0] ss:$12 sps:$4 sm:$0xff]   ;;  %v1645_v15 = vld [vmem:[%s2188_s1 + $0x1b0] ss:$12 sps:$4 sm:$0xff]   ;;  %v1649_v16 = vld [vmem:[%s2188_s1 + $0x1b8] ss:$12 sps:$4 sm:$0xff]  }
  0x1b   :  { %920 = vmatpush1.bf16.msra.mxu0 %v1582_v27  ;;  %v1647_v13 = vld [vmem:[%s2188_s1 + $0x1b4] ss:$12 sps:$4 sm:$0xff]   ;;  %v1652_v18 = vld [vmem:[%s2188_s1 + $0x1cc] ss:$12 sps:$4 sm:$0xff]   ;;  %v1653_v19 = vld [vmem:[%s2188_s1 + $0x290] ss:$12 sps:$4 sm:$0xff]  }
  0x1c   :  { %1026 = vmatpush1.bf16.msra.mxu1 %v1583_v28  ;;  %921 = vmatprep.subr.bf16.mxu0 %v1584_v29  ;;  %v1665_v17 = vld [vmem:[%s2189_s0 + $0x2c] ss:$20 sps:$4 sm:$0xff]   ;;  %v1670_v20 = vld [vmem:[%s2189_s0 + $0x28] ss:$20 sps:$4 sm:$0xff]   ;;  %v1657_v23 = vld [vmem:[%s2188_s1 + $0x1e4] ss:$12 sps:$4 sm:$0xff]  }
  0x1d   :  { %1027 = vmatprep.subr.bf16.mxu1 %v1586_v30  ;;  %v1650_v21 = vld [vmem:[%s2188_s1 + $0x1c8] ss:$12 sps:$4 sm:$0xff]   ;;  %v1654_v22 = vld [vmem:[%s2188_s1 + $0x1d0] ss:$12 sps:$4 sm:$0xff]   ;;  %v1655_v25 = vld [vmem:[%s2188_s1 + $0x1e0] ss:$12 sps:$4 sm:$0xff]  }
  0x1e   :  { %v1658_v24 = vld [vmem:[%s2188_s1 + $0x2a8] ss:$12 sps:$4 sm:$0xff]   ;;  %v1680_v27 = vld [vmem:[%s2189_s0 + $0xc] ss:$20 sps:$4 sm:$0xff]   ;;  %v1660_v30 = vld [vmem:[%s2188_s1 + $0x1f8] ss:$12 sps:$4 sm:$0xff]  }
  0x1f   :  { %922 = vmatpush1.bf16.msra.mxu0 %v1588_v31  ;;  %v1659_v26 = vld [vmem:[%s2188_s1 + $0x1e8] ss:$12 sps:$4 sm:$0xff]   ;;  %v1663_v29 = vld [vmem:[%s2188_s1 + $0x2c0] ss:$12 sps:$4 sm:$0xff]  }
  0x20   :  { %1028 = vmatpush1.bf16.msra.mxu1 %v1589_v32  ;;  %923 = vmatprep.subr.bf16.mxu0 %v1590_v33  ;;  %v1662_v28 = vld [vmem:[%s2188_s1 + $0x1fc] ss:$12 sps:$4 sm:$0xff]   ;;  %v1664_v31 = vld [vmem:[%s2188_s1 + $0x200] ss:$12 sps:$4 sm:$0xff]   ;;  %v1671_v33 = vld [vmem:[%s2188_s1 + $0x2d8] ss:$12 sps:$4 sm:$0xff]  }
  0x21   :  { %1439 = vmatprep.subr.bf16.mxu1 %v1592_v34  ;;  %v1669_v32 = vld [vmem:[%s2188_s1 + $0x214] ss:$12 sps:$4 sm:$0xff]   ;;  %v1667_v34 = vld [vmem:[%s2188_s1 + $0x210] ss:$12 sps:$4 sm:$0xff]  }
  0x23   :  { %1046 = vmatmul.mubr.bf16.vlgmr.msra.gmra.mrb[0].mxu1 %v1846_v36  ;;  %924 = vmatpush1.bf16.msra.mxu0 %v1593_v35  ;;  %v1672_v35 = vld [vmem:[%s2188_s1 + $0x218] ss:$12 sps:$4 sm:$0xff]  }
  0x24   :  { %1440 = vmatpush3.bf16.msra.mxu1 %v1595_v37  ;;  %925 = vmatprep.subr.bf16.mxu0 %v1596_v38  ;;  %v1675_v37 = vld [vmem:[%s2188_s1 + $0x22c] ss:$12 sps:$4 sm:$0xff]   ;;  %v1676_v38 = vld [vmem:[%s2188_s1 + $0x2f0] ss:$12 sps:$4 sm:$0xff]  }
  0x25   :  { %1441 = vmatprep.subr.bf16.mxu1 %v1598_v39  ;;  %1055 = vmatprep.mubr.bf16.mxu1 %v1716_v1  ;;  %v1629_v1 = vld [vmem:[%s2188_s1 + $0x170] ss:$12 sps:$4 sm:$0xff]   ;;  %v1673_v39 = vld [vmem:[%s2188_s1 + $0x228] ss:$12 sps:$4 sm:$0xff]  }
  0x27   :  { %926 = vmatpush1.bf16.msra.mxu0 %v1599_v40  ;;  %v1677_v40 = vld [vmem:[%s2188_s1 + $0x230] ss:$12 sps:$4 sm:$0xff]  }
  0x28   :  { %1442 = vmatpush3.bf16.msra.mxu1 %v1600_v41  ;;  %927 = vmatprep.subr.bf16.mxu0 %v1601_v42  ;;  %v1683_v41 = vld [vmem:[%s2188_s1 + $0x244] ss:$12 sps:$4 sm:$0xff]   ;;  %v1684_v42 = vld [vmem:[%s2188_s1 + $0x308] ss:$12 sps:$4 sm:$0xff]  }
  0x29   :  { %1443 = vmatprep.subr.bf16.mxu1 %v1603_v43  ;;  %v1678_v43 = vld [vmem:[%s2189_s0 + $0x8] ss:$20 sps:$4 sm:$0xff]  }
  0x2b   :  { %928 = vmatpush1.bf16.msra.mxu0 %v1604_v44  ;;  %1056 = vmatmul.mubr.bf16.gmra.mrb[4].mxu1 %v1898_v52  ;;  %v1681_v44 = vld [vmem:[%s2188_s1 + $0x240] ss:$12 sps:$4 sm:$0xff]  }
  0x2c   :  { %1444 = vmatpush3.bf16.msra.mxu1 %v1605_v45  ;;  %929 = vmatprep.subr.bf16.mxu0 %v1606_v46  ;;  %v1687_v45 = vld [vmem:[%s2188_s1 + $0x25c] ss:$12 sps:$4 sm:$0xff]   ;;  %v1688_v46 = vld [vmem:[%s2188_s1 + $0x320] ss:$12 sps:$4 sm:$0xff]  }
  0x2d   :  { %1445 = vmatprep.subr.bf16.mxu1 %v1608_v47  ;;  %1098 = vmatprep.mubr.bf16.mxu1 %v1634_v58  ;;  %v1689_v47 = vld [vmem:[%s2189_s0 + $0x34] ss:$20 sps:$4 sm:$0xff]  }
  0x2e   :  { %v1703_v58 = vld [vmem:[%s2188_s1 + $0x368] ss:$12 sps:$4 sm:$0xff]  }
  0x2f   :  { %930 = vmatpush1.bf16.msra.mxu0 %v1609_v48  ;;  %v1685_v48 = vld [vmem:[%s2188_s1 + $0x258] ss:$12 sps:$4 sm:$0xff]  }
  0x30   :  { %1446 = vmatpush3.bf16.msra.mxu1 %v1610_v49  ;;  %931 = vmatprep.subr.bf16.mxu0 %v1611_v50  ;;  %v1693_v49 = vld [vmem:[%s2188_s1 + $0x274] ss:$12 sps:$4 sm:$0xff]   ;;  %v1695_v50 = vld [vmem:[%s2188_s1 + $0x338] ss:$12 sps:$4 sm:$0xff]  }
  0x31   :  { %1447 = vmatprep.subr.bf16.mxu1 %v1613_v51  ;;  %v1694_v51 = vld [vmem:[%s2189_s0 + $0x30] ss:$20 sps:$4 sm:$0xff]  }
  0x33   :  { %932 = vmatpush1.bf16.msra.mxu0 %v1614_v53  ;;  %v1691_v53 = vld [vmem:[%s2188_s1 + $0x270] ss:$12 sps:$4 sm:$0xff]  }
  0x34   :  { %1448 = vmatpush3.bf16.msra.mxu1 %v1615_v54  ;;  %933 = vmatprep.subr.bf16.mxu0 %v1616_v55  ;;  %v1698_v54 = vld [vmem:[%s2188_s1 + $0x28c] ss:$12 sps:$4 sm:$0xff]   ;;  %v1699_v55 = vld [vmem:[%s2188_s1 + $0x350] ss:$12 sps:$4 sm:$0xff]  }
  0x35   :  { %1449 = vmatprep.subr.bf16.mxu1 %v1618_v56  ;;  %v1696_v56 = vld [vmem:[%s2188_s1 + $0x288] ss:$12 sps:$4 sm:$0xff]  }
  0x37   :  { %934 = vmatpush1.bf16.msra.mxu0 %v1619_v57  ;;  %v1702_v57 = vld [vmem:[%s2188_s1 + $0x2a4] ss:$12 sps:$4 sm:$0xff]  }
  0x38   :  { %1450 = vmatpush3.bf16.msra.mxu1 %v1620_v59  ;;  %935 = vmatprep.subr.bf16.mxu0 %v1621_v60  ;;  %v1700_v59 = vld [vmem:[%s2188_s1 + $0x2a0] ss:$12 sps:$4 sm:$0xff]   ;;  %v1706_v60 = vld [vmem:[%s2188_s1 + $0x2bc] ss:$12 sps:$4 sm:$0xff]  }
  0x39   :  { %1451 = vmatprep.subr.bf16.mxu1 %v1623_v61  ;;  %v1707_v61 = vld [vmem:[%s2188_s1 + $0x380] ss:$12 sps:$4 sm:$0xff]  }
  0x3b   :  { %936 = vmatpush1.bf16.msra.mxu0 %v1624_v62  ;;  %v1710_v62 = vld [vmem:[%s2188_s1 + $0x2d4] ss:$12 sps:$4 sm:$0xff]  }
  0x3c   :  { %1452 = vmatpush3.bf16.msra.mxu1 %v1626_v63  ;;  %937 = vmatprep.subr.bf16.mxu0 %v1627_v0  ;;  %v1711_v63 = vld [vmem:[%s2188_s1 + $0x398] ss:$12 sps:$4 sm:$0xff]   ;;  %v1708_v0 = vld [vmem:[%s2188_s1 + $0x2d0] ss:$12 sps:$4 sm:$0xff]  }
  0x3d   :  { %1453 = vmatprep.subr.bf16.mxu1 %v1629_v1  ;;  %v1714_v1 = vld [vmem:[%s2188_s1 + $0x2ec] ss:$12 sps:$4 sm:$0xff]  }
  0x3f   :  { %938 = vmatpush1.bf16.msra.mxu0 %v1630_v2  ;;  %v1715_v2 = vld [vmem:[%s2188_s1 + $0x3b0] ss:$12 sps:$4 sm:$0xff]  }
  0x40   :  { %1454 = vmatpush3.bf16.msra.mxu1 %v1631_v3  ;;  %960 = vmatprep.subr.bf16.mxu0 %v1637_v4  ;;  %v1712_v3 = vld [vmem:[%s2188_s1 + $0x2e8] ss:$12 sps:$4 sm:$0xff]  }
  0x41   :  { %1467 = vmatprep.subr.bf16.mxu1 %v1638_v5 }
  0x42   :  { %940 = vmatmul.mubr.bf16.vlgmr.msra.gmra.mrb[0].mxu0 %v1632_v6 }
  0x43   :  { %1099 = vmatmul.mubr.bf16.vlgmr.msra.gmra.mrb[8].mxu1 %v1632_v6  ;;  %961 = vmatpush1.bf16.msra.mxu0 %v1635_v7 }
  0x44   :  { %1468 = vmatpush3.bf16.msra.mxu1 %v1639_v8  ;;  %962 = vmatprep.subr.bf16.mxu0 %v1642_v9 }
  0x45   :  { %1469 = vmatprep.subr.bf16.mxu1 %v1643_v10  ;;  %1106 = vmatprep.mubr.bf16.mxu1 %v1665_v17 }
  0x46   :  { %949 = vmatprep.mubr.bf16.mxu0 %v1665_v17 }
  0x47   :  { %963 = vmatpush1.bf16.msra.mxu0 %v1640_v11 }
  0x48   :  { %1470 = vmatpush3.bf16.msra.mxu1 %v1644_v12  ;;  %964 = vmatprep.subr.bf16.mxu0 %v1647_v13 }
  0x49   :  { %1471 = vmatprep.subr.bf16.mxu1 %v1648_v14 }
  0x4a   :  { %950 = vmatmul.mubr.bf16.gmra.mrb[4].mxu0 %v1670_v20 }
  0x4b   :  { %1107 = vmatmul.mubr.bf16.gmra.mrb[12].mxu1 %v1670_v20  ;;  %965 = vmatpush1.bf16.msra.mxu0 %v1645_v15 }
  0x4c   :  { %1472 = vmatpush3.bf16.msra.mxu1 %v1649_v16  ;;  %966 = vmatprep.subr.bf16.mxu0 %v1652_v18 }
  0x4d   :  { %1473 = vmatprep.subr.bf16.mxu1 %v1653_v19  ;;  %1147 = vmatprep.mubr.bf16.mxu1 %v1680_v27 }
  0x4e   :  { %992 = vmatprep.mubr.bf16.mxu0 %v1680_v27 }
  0x4f   :  { %967 = vmatpush1.bf16.msra.mxu0 %v1650_v21 }
  0x50   :  { %1474 = vmatpush3.bf16.msra.mxu1 %v1654_v22  ;;  %968 = vmatprep.subr.bf16.mxu0 %v1657_v23 }
  0x51   :  { %1475 = vmatprep.subr.bf16.mxu1 %v1658_v24 }
  0x53   :  { %969 = vmatpush1.bf16.msra.mxu0 %v1655_v25 }
  0x54   :  { %1476 = vmatpush3.bf16.msra.mxu1 %v1659_v26  ;;  %970 = vmatprep.subr.bf16.mxu0 %v1662_v28 }
  0x55   :  { %1477 = vmatprep.subr.bf16.mxu1 %v1663_v29 }
  0x57   :  { %971 = vmatpush1.bf16.msra.mxu0 %v1660_v30 }
  0x58   :  { %1478 = vmatpush3.bf16.msra.mxu1 %v1664_v31  ;;  %972 = vmatprep.subr.bf16.mxu0 %v1669_v32 }
  0x59   :  { %1479 = vmatprep.subr.bf16.mxu1 %v1671_v33 }
  0x5b   :  { %973 = vmatpush1.bf16.msra.mxu0 %v1667_v34 }
  0x5c   :  { %1480 = vmatpush3.bf16.msra.mxu1 %v1672_v35  ;;  %974 = vmatprep.subr.bf16.mxu0 %v1675_v37 }
  0x5d   :  { %1481 = vmatprep.subr.bf16.mxu1 %v1676_v38 }
  0x5f   :  { %975 = vmatpush1.bf16.msra.mxu0 %v1673_v39 }
  0x60   :  { %1482 = vmatpush3.bf16.msra.mxu1 %v1677_v40  ;;  %976 = vmatprep.subr.bf16.mxu0 %v1683_v41  ;;  %v1254_v40 = vlaneseq }
  0x61   :  { %1505 = vmatprep.subr.bf16.mxu1 %v1684_v42 }
  0x62   :  { %v1255_v41 = vshrl.u32 %v1254_v40, 7 }
  0x63   :  { %1148 = vmatmul.mubr.bf16.vlgmr.msra.gmra.mrb[16].mxu1 %v1678_v43  ;;  %977 = vmatpush1.bf16.msra.mxu0 %v1681_v44  ;;  %v1252_v44 = vld [vmem:[%s2190_s2] sm:$0x7] }
  0x64   :  { %1506 = vmatpush3.bf16.msra.mxu1 %v1684_v42  ;;  %978 = vmatprep.subr.bf16.mxu0 %v1687_v45  ;;  %v1256_v42 = vsub.s32 0, %v1255_v41  ;;  %v1260_v45 = vsub.s32 1, %v1255_v41 }
  0x65   :  { %1507 = vmatprep.subr.bf16.mxu1 %v1688_v46  ;;  %1155 = vmatprep.mubr.bf16.mxu1 %v1689_v47 }
  0x67   :  { %979 = vmatpush1.bf16.msra.mxu0 %v1685_v48 }
  0x68   :  { %1508 = vmatpush3.bf16.msra.mxu1 %v1688_v46  ;;  %980 = vmatprep.subr.bf16.mxu0 %v1693_v49  ;;  %v1257_v46 = vrot.slane %v1252_v44, %v1256_v42 }
  0x69   :  { %1509 = vmatprep.subr.bf16.mxu1 %v1695_v50 }
  0x6b   :  { %1156 = vmatmul.mubr.bf16.gmra.mrb[20].mxu1 %v1694_v51  ;;  %981 = vmatpush1.bf16.msra.mxu0 %v1691_v53 }
  0x6c   :  { %1510 = vmatpush3.bf16.msra.mxu1 %v1695_v50  ;;  %982 = vmatprep.subr.bf16.mxu0 %v1698_v54  ;;  %v1261_v50 = vrot.slane %v1252_v44, %v1260_v45 }
  0x6d   :  { %1511 = vmatprep.subr.bf16.mxu1 %v1699_v55  ;;  %1521 = vmatprep.mubr.bf16.mxu1 %v1846_v36  ;;  %v1704_v36 = vld [vmem:[%s2188_s1 + $0x2b8] ss:$12 sps:$4 sm:$0xff]  }
  0x6f   :  { %983 = vmatpush1.bf16.msra.mxu0 %v1696_v56 }
  0x70   :  { %1512 = vmatpush3.bf16.msra.mxu1 %v1699_v55  ;;  %984 = vmatprep.subr.bf16.mxu0 %v1702_v57 }
  0x71   :  { %1513 = vmatprep.subr.bf16.mxu1 %v1703_v58 }
  0x73   :  { %985 = vmatpush1.bf16.msra.mxu0 %v1700_v59 }
  0x74   :  { %1514 = vmatpush3.bf16.msra.mxu1 %v1703_v58  ;;  %986 = vmatprep.subr.bf16.mxu0 %v1706_v60 }
  0x75   :  { %1515 = vmatprep.subr.bf16.mxu1 %v1707_v61 }
  0x77   :  { %987 = vmatpush1.bf16.msra.mxu0 %v1704_v36 }
  0x78   :  { %1516 = vmatpush3.bf16.msra.mxu1 %v1707_v61  ;;  %988 = vmatprep.subr.bf16.mxu0 %v1710_v62 }
  0x79   :  { %1517 = vmatprep.subr.bf16.mxu1 %v1711_v63 }
  0x7b   :  { %989 = vmatpush1.bf16.msra.mxu0 %v1708_v0 }
  0x7c   :  { %1518 = vmatpush3.bf16.msra.mxu1 %v1711_v63  ;;  %990 = vmatprep.subr.bf16.mxu0 %v1714_v1 }
  0x7d   :  { %1519 = vmatprep.subr.bf16.mxu1 %v1715_v2 }
  0x7f   :  { %991 = vmatpush1.bf16.msra.mxu0 %v1712_v3 }
  0x80   :  { %1520 = vmatpush3.bf16.msra.mxu1 %v1715_v2 }
  0x82   :  { %993 = vmatmul.mubr.bf16.vlgmr.msra.gmra.mrb[0].mxu0 %v1678_v43  ;;  %v1264_v43 = vsub.s32 2, %v1255_v41 }
  0x83   :  { %1522 = vmatmul.mubr.bf16.vlgmr.msra.gmra.mrb[24].mxu1 %v1898_v52  ;;  %1002 = vmatprep.mubr.bf16.mxu0 %v1689_v47 }
  0x84   :  { %v1265_v47 = vrot.slane %v1252_v44, %v1264_v43 }
  0x8a   :  { %1003 = vmatmul.mubr.bf16.gmra.mrb[4].mxu0 %v1694_v51 }
  0xf6   :  { %v1047_v4 = vpop.f32.mrb[0].mxu1 }
  0xf7   :  { %v1049_v5 = vpop.f32.mrb[1].mxu1 }
  0xf8   :  { %v1051_v6 = vpop.f32.mrb[2].mxu1 }
  0xf9   :  { %v1053_v7 = vpop.f32.mrb[3].mxu1 }
  0xfe   :  { %v2137_v8 = vpop.f32.mrb[4].mxu1 }
  0xff   :  { %v2139_v9 = vpop.f32.mrb[5].mxu1 }
 0x100   :  { %v2141_v10 = vpop.f32.mrb[6].mxu1 }
 0x101   :  { %v2143_v11 = vpop.f32.mrb[7].mxu1 }
 0x116   :  { %v1455_v12 = vpop.f32.mrb[8].mxu1 }
 0x117   :  { %v1456_v13 = vpop.f32.mrb[9].mxu1 }
 0x118   :  { %v1457_v14 = vadd.f32 %v1456_v13, %v1455_v12  ;;  %v1458_v15 = vpop.f32.mrb[10].mxu1 }
 0x119   :  { %v1459_v16 = vpop.f32.mrb[11].mxu1 }
 0x11a   :  { %v1460_v52 = vadd.f32 %v1459_v16, %v1458_v15 }
 0x11e   :  { %v1461_v17 = vpop.f32.mrb[12].mxu1 }
 0x11f   :  { %v1462_v18 = vpop.f32.mrb[13].mxu1 }
 0x120   :  { %v1463_v19 = vadd.f32 %v1462_v18, %v1461_v17  ;;  %v1464_v20 = vpop.f32.mrb[14].mxu1 }
 0x121   :  { %v1465_v21 = vpop.f32.mrb[15].mxu1 }
 0x122   :  { %v1466_v22 = vadd.f32 %v1465_v21, %v1464_v20 }
 0x136   :  { %v1483_v23 = vpop.f32.mrb[16].mxu1 }
 0x137   :  { %v1484_v24 = vpop.f32.mrb[17].mxu1 }
 0x138   :  { %v1485_v25 = vadd.f32 %v1484_v24, %v1483_v23  ;;  %v1486_v26 = vpop.f32.mrb[18].mxu1 }
 0x139   :  { %v1487_v27 = vpop.f32.mrb[19].mxu1 }
 0x13a   :  { %v1488_v28 = vadd.f32 %v1487_v27, %v1486_v26  ;;  %v1150_v29 = vadd.f32 %v1485_v25, %v1457_v14 }
 0x13c   :  { %v1153_v30 = vadd.f32 %v1488_v28, %v1460_v52 }
 0x13e   :  { %v1489_v31 = vpop.f32.mrb[20].mxu1 }
 0x13f   :  { %v1490_v32 = vpop.f32.mrb[21].mxu1 }
 0x140   :  { %v1491_v33 = vadd.f32 %v1490_v32, %v1489_v31  ;;  %v1492_v34 = vpop.f32.mrb[22].mxu1 }
 0x141   :  { %v1493_v35 = vpop.f32.mrb[23].mxu1 }
 0x142   :  { %v1494_v37 = vadd.f32 %v1493_v35, %v1492_v34  ;;  %v1158_v38 = vadd.f32 %v1491_v33, %v1463_v19 }
 0x144   :  { %v1161_v39 = vadd.f32 %v1494_v37, %v1466_v22 }
 0x155   :  { %v994_v48 = vpop.f32.mrb[0].mxu0 }
 0x156   :  { %v1523_v49 = vpop.f32.mrb[24].mxu1  ;;  %v1525_v51 = vadd.f32 %v1047_v4, %v994_v48  ;;  %v996_v54 = vpop.f32.mrb[1].mxu0 }
 0x157   :  { %v1207_v53 = vadd.f32 %v1523_v49, %v1158_v38  ;;  %v1198_v55 = vpop.f32.mrb[25].mxu1  ;;  %v1526_v56 = vadd.f32 %v1049_v5, %v996_v54  ;;  %v998_v58 = vpop.f32.mrb[2].mxu0 }
 0x158   :  { %v1199_v57 = vadd.f32 %v1198_v55, %v1150_v29  ;;  %v1524_v59 = vpop.f32.mrb[26].mxu1  ;;  %v1269_v60 = vadd.f32 %v1525_v51, %v1257_v46  ;;  %v1527_v36 = vadd.f32 %v1051_v6, %v998_v58  ;;  %v1000_v63 = vpop.f32.mrb[3].mxu0 }
 0x159   :  { %v1277_v61 = vadd.f32 %v1265_v47, %v1207_v53  ;;  %v1210_v62 = vadd.f32 %v1524_v59, %v1161_v39  ;;  %v1201_v0 = vpop.f32.mrb[27].mxu1  ;;  %v1270_v1 = vadd.f32 %v1526_v56, %v1261_v50  ;;  %v1528_v3 = vadd.f32 %v1053_v7, %v1000_v63 }
 0x15a   :  { %v1271_v2 = vadd.f32 %v1265_v47, %v1199_v57  ;;  %v1202_v12 = vadd.f32 %v1201_v0, %v1153_v30  ;;  %v1281_v13 = vmax.f32 %v1269_v60, 0.0  ;;  %v1272_v4 = vadd.f32 %v1527_v36, %v1257_v46 }
 0x15b   :  { %v1289_v14 = vmax.f32 %v1277_v61, 0.0  ;;  %v1280_v15 = vadd.f32 %v1265_v47, %v1210_v62  ;;  %v1282_v16 = vmax.f32 %v1270_v1, 0.0  ;;  %v1273_v5 = vadd.f32 %v1528_v3, %v1261_v50 }
 0x15c   :  { %v1283_v52 = vmax.f32 %v1271_v2, 0.0  ;;  %v1274_v17 = vadd.f32 %v1265_v47, %v1202_v12  ;;  %1293 = vst [vmem:[%s2191_s3] sm:$0xff] %v1281_v13  ;;  %v1284_v6 = vmax.f32 %v1272_v4, 0.0 }
 0x15d   :  { %1301 = vst [vmem:[%s2191_s3 + $0x40] sm:$0xff] %v1289_v14  ;;  %v1292_v18 = vmax.f32 %v1280_v15, 0.0  ;;  %1294 = vst [vmem:[%s2191_s3 + $0x8] sm:$0xff] %v1282_v16  ;;  %v1285_v7 = vmax.f32 %v1273_v5, 0.0  ;;  %v1004_v20 = vpop.f32.mrb[4].mxu0 }
 0x15e   :  { %1295 = vst [vmem:[%s2191_s3 + $0x10] sm:$0xff] %v1283_v52  ;;  %v1286_v19 = vmax.f32 %v1274_v17, 0.0  ;;  %1296 = vst [vmem:[%s2191_s3 + $0x18] sm:$0xff] %v1284_v6  ;;  %v1529_v21 = vadd.f32 %v2137_v8, %v1004_v20  ;;  %v1006_v22 = vpop.f32.mrb[5].mxu0 }
 0x15f   :  { %1304 = vst [vmem:[%s2191_s3 + $0x58] sm:$0xff] %v1292_v18  ;;  %1297 = vst [vmem:[%s2191_s3 + $0x20] sm:$0xff] %v1285_v7  ;;  %v1530_v23 = vadd.f32 %v2139_v9, %v1006_v22  ;;  %v1008_v24 = vpop.f32.mrb[6].mxu0 }
 0x160   :  { %1298 = vst [vmem:[%s2191_s3 + $0x28] sm:$0xff] %v1286_v19  ;;  %v1275_v25 = vadd.f32 %v1529_v21, %v1257_v46  ;;  %v1531_v26 = vadd.f32 %v2141_v10, %v1008_v24  ;;  %v1010_v27 = vpop.f32.mrb[7].mxu0 }
 0x161   :  { %v1276_v28 = vadd.f32 %v1530_v23, %v1261_v50  ;;  %v1532_v29 = vadd.f32 %v2143_v11, %v1010_v27 }
 0x162   :  { %v1287_v8 = vmax.f32 %v1275_v25, 0.0  ;;  %v1278_v30 = vadd.f32 %v1531_v26, %v1257_v46 }
 0x163   :  { %v1288_v31 = vmax.f32 %v1276_v28, 0.0  ;;  %v1279_v32 = vadd.f32 %v1532_v29, %v1261_v50 }
 0x164   :  { %1299 = vst [vmem:[%s2191_s3 + $0x30] sm:$0xff] %v1287_v8  ;;  %v1290_v33 = vmax.f32 %v1278_v30, 0.0 }
 0x165   :  { %1300 = vst [vmem:[%s2191_s3 + $0x38] sm:$0xff] %v1288_v31  ;;  %v1291_v9 = vmax.f32 %v1279_v32, 0.0 }
 0x166   :  { %1302 = vst [vmem:[%s2191_s3 + $0x48] sm:$0xff] %v1290_v33 }
 0x167   :  { %1303 = vst [vmem:[%s2191_s3 + $0x50] sm:$0xff] %v1291_v9 }

// kernel: _lambda_.4
= control target key start
LH: loop header
LB: loop body
LE: loop exit
PB: predicated region body
PF: predicated region fallthrough
CT: control target
= control target key end

     0   :  { %s637_s1 = inlined_call_operand.vmem [shape: bf16[384,128], index: 1, kind: input, shape index: {}]   ;;  %s638_s0 = inlined_call_operand.vmem [shape: bf16[32,384], index: 0, kind: input, shape index: {}]   ;;  %s639_s2 = inlined_call_operand.vmem [shape: f32[1,128], index: 2, kind: input, shape index: {}]   ;;  %s640_s3 = inlined_call_operand.vmem [shape: f32[32,128], index: 3, kind: output, shape index: {}]  }
   0x1   :  { %v480_v0 = vld [vmem:[%s637_s1 + $0x40] sm:$0xff]   ;;  %v483_v3 = vld [vmem:[%s637_s1 + $0x48] sm:$0xff]   ;;  %v486_v6 = vld [vmem:[%s637_s1 + $0x50] sm:$0xff]  }
   0x2   :  { %v481_v1 = vld [vmem:[%s637_s1] sm:$0xff]   ;;  %422 = vmatprep.subr.bf16.mxu0 %v480_v0  ;;  %v484_v4 = vld [vmem:[%s637_s1 + $0x8] sm:$0xff]   ;;  %v487_v7 = vld [vmem:[%s637_s1 + $0x10] sm:$0xff]  }
   0x3   :  { %v482_v2 = vld [vmem:[%s637_s1 + $0x80] sm:$0xff]   ;;  %423 = vmatpush3.bf16.msra.mxu0 %v481_v1  ;;  %v485_v5 = vld [vmem:[%s637_s1 + $0x88] sm:$0xff]   ;;  %v488_v8 = vld [vmem:[%s637_s1 + $0x90] sm:$0xff]  }
   0x4   :  { %460 = vmatprep.subr.bf16.mxu1 %v482_v2  ;;  %424 = vmatprep.subr.bf16.mxu0 %v483_v3  ;;  %v489_v9 = vld [vmem:[%s637_s1 + $0x58] sm:$0xff]   ;;  %v492_v12 = vld [vmem:[%s637_s1 + $0x60] sm:$0xff]   ;;  %v495_v15 = vld [vmem:[%s637_s1 + $0x68] sm:$0xff]  }
   0x5   :  { %461 = vmatpush3.bf16.msra.mxu1 %v482_v2  ;;  %v490_v10 = vld [vmem:[%s637_s1 + $0x18] sm:$0xff]   ;;  %v494_v13 = vld [vmem:[%s637_s1 + $0xa0] sm:$0xff]   ;;  %v497_v16 = vld [vmem:[%s637_s1 + $0xa8] sm:$0xff]  }
   0x6   :  { %462 = vmatprep.subr.bf16.mxu1 %v485_v5  ;;  %v491_v11 = vld [vmem:[%s637_s1 + $0x98] sm:$0xff]   ;;  %v493_v14 = vld [vmem:[%s637_s1 + $0x20] sm:$0xff]   ;;  %v496_v17 = vld [vmem:[%s637_s1 + $0x28] sm:$0xff]  }
   0x7   :  { %425 = vmatpush3.bf16.msra.mxu0 %v484_v4  ;;  %v498_v18 = vld [vmem:[%s637_s1 + $0x70] sm:$0xff]   ;;  %v501_v21 = vld [vmem:[%s637_s1 + $0x78] sm:$0xff]   ;;  %v504_v26 = vld [vmem:[%s638_s0] ss:$12 sps:$4 sm:$0xff]  }
   0x8   :  { %426 = vmatprep.subr.bf16.mxu0 %v486_v6  ;;  %v499_v19 = vld [vmem:[%s637_s1 + $0x30] sm:$0xff]   ;;  %v503_v22 = vld [vmem:[%s637_s1 + $0xb8] sm:$0xff]   ;;  %v508_v28 = vld [vmem:[%s638_s0 + $0x20] ss:$12 sps:$4 sm:$0xff]  }
   0x9   :  { %463 = vmatpush3.bf16.msra.mxu1 %v485_v5  ;;  %v500_v20 = vld [vmem:[%s637_s1 + $0xb0] sm:$0xff]   ;;  %v502_v25 = vld [vmem:[%s637_s1 + $0x38] sm:$0xff]   ;;  %v421_v37 = vld [vmem:[%s639_s2] ss:$0 sm:$0xff] }
   0xa   :  { %464 = vmatprep.subr.bf16.mxu1 %v488_v8  ;;  %v506_v23 = vld [vmem:[%s638_s0 + $0x4] ss:$12 sps:$4 sm:$0xff]   ;;  %v507_v24 = vld [vmem:[%s638_s0 + $0x8] ss:$12 sps:$4 sm:$0xff]  }
   0xb   :  { %427 = vmatpush3.bf16.msra.mxu0 %v487_v7  ;;  %291 = vmatprep.mubr.bf16.mxu0 %v506_v23  ;;  %v509_v27 = vld [vmem:[%s638_s0 + $0x1c] ss:$12 sps:$4 sm:$0xff]   ;;  %v511_v29 = vld [vmem:[%s638_s0 + $0x18] ss:$12 sps:$4 sm:$0xff]  }
   0xc   :  { %428 = vmatprep.subr.bf16.mxu0 %v489_v9  ;;  %476 = vmatprep.mubr.bf16.mxu1 %v507_v24 }
   0xd   :  { %465 = vmatpush3.bf16.msra.mxu1 %v488_v8 }
   0xe   :  { %466 = vmatprep.subr.bf16.mxu1 %v491_v11 }
   0xf   :  { %429 = vmatpush3.bf16.msra.mxu0 %v490_v10 }
  0x10   :  { %430 = vmatprep.subr.bf16.mxu0 %v492_v12 }
  0x11   :  { %467 = vmatpush3.bf16.msra.mxu1 %v491_v11 }
  0x12   :  { %468 = vmatprep.subr.bf16.mxu1 %v494_v13 }
  0x13   :  { %431 = vmatpush3.bf16.msra.mxu0 %v493_v14 }
  0x14   :  { %432 = vmatprep.subr.bf16.mxu0 %v495_v15 }
  0x15   :  { %469 = vmatpush3.bf16.msra.mxu1 %v494_v13 }
  0x16   :  { %470 = vmatprep.subr.bf16.mxu1 %v497_v16 }
  0x17   :  { %433 = vmatpush3.bf16.msra.mxu0 %v496_v17 }
  0x18   :  { %434 = vmatprep.subr.bf16.mxu0 %v498_v18 }
  0x19   :  { %471 = vmatpush3.bf16.msra.mxu1 %v497_v16 }
  0x1a   :  { %472 = vmatprep.subr.bf16.mxu1 %v500_v20 }
  0x1b   :  { %435 = vmatpush3.bf16.msra.mxu0 %v499_v19 }
  0x1c   :  { %436 = vmatprep.subr.bf16.mxu0 %v501_v21 }
  0x1d   :  { %473 = vmatpush3.bf16.msra.mxu1 %v500_v20 }
  0x1e   :  { %474 = vmatprep.subr.bf16.mxu1 %v503_v22 }
  0x1f   :  { %437 = vmatpush3.bf16.msra.mxu0 %v502_v25 }
  0x21   :  { %475 = vmatpush3.bf16.msra.mxu1 %v503_v22 }
  0x22   :  { %292 = vmatmul.mubr.bf16.vlgmr.msra.gmra.mrb[0].mxu0 %v504_v26 }
  0x23   :  { %299 = vmatprep.mubr.bf16.mxu0 %v509_v27 }
  0x24   :  { %477 = vmatmul.mubr.bf16.vlgmr.msra.gmra.mrb[0].mxu1 %v508_v28 }
  0x2a   :  { %300 = vmatmul.mubr.bf16.gmra.mrb[4].mxu0 %v511_v29 }
  0xf5   :  { %v438_v30 = vpop.f32.mrb[0].mxu0 }
  0xf6   :  { %v439_v31 = vpop.f32.mrb[1].mxu0 }
  0xf7   :  { %v440_v32 = vadd.f32 %v439_v31, %v438_v30  ;;  %v441_v33 = vpop.f32.mrb[2].mxu0  ;;  %v478_v34 = vpop.f32.mrb[0].mxu1 }
  0xf8   :  { %v442_v35 = vpop.f32.mrb[3].mxu0  ;;  %v342_v36 = vpop.f32.mrb[1].mxu1 }
  0xf9   :  { %v443_v38 = vadd.f32 %v442_v35, %v441_v33  ;;  %v343_v39 = vadd.f32 %v440_v32, %v342_v36  ;;  %v479_v40 = vpop.f32.mrb[2].mxu1 }
  0xfa   :  { %v345_v41 = vpop.f32.mrb[3].mxu1 }
  0xfb   :  { %v379_v42 = vadd.f32 %v421_v37, %v343_v39  ;;  %v346_v43 = vadd.f32 %v443_v38, %v345_v41 }
  0xfd   :  { %383 = vst [vmem:[%s640_s3] sm:$0xff] %v379_v42  ;;  %v380_v44 = vadd.f32 %v421_v37, %v346_v43  ;;  %v444_v45 = vpop.f32.mrb[4].mxu0 }
  0xfe   :  { %v445_v46 = vpop.f32.mrb[5].mxu0 }
  0xff   :  { %384 = vst [vmem:[%s640_s3 + $0x8] sm:$0xff] %v380_v44  ;;  %v446_v47 = vadd.f32 %v445_v46, %v444_v45  ;;  %v447_v48 = vpop.f32.mrb[6].mxu0 }
 0x100   :  { %v448_v49 = vpop.f32.mrb[7].mxu0 }
 0x101   :  { %v351_v50 = vadd.f32 %v478_v34, %v446_v47  ;;  %v449_v51 = vadd.f32 %v448_v49, %v447_v48 }
 0x103   :  { %v381_v52 = vadd.f32 %v421_v37, %v351_v50  ;;  %v354_v53 = vadd.f32 %v479_v40, %v449_v51 }
 0x105   :  { %385 = vst [vmem:[%s640_s3 + $0x10] sm:$0xff] %v381_v52  ;;  %v382_v54 = vadd.f32 %v421_v37, %v354_v53 }
 0x107   :  { %386 = vst [vmem:[%s640_s3 + $0x18] sm:$0xff] %v382_v54 }

// kernel: _lambda_.5
= control target key start
LH: loop header
LB: loop body
LE: loop exit
PB: predicated region body
PF: predicated region fallthrough
CT: control target
= control target key end

     0   :  { %s6997_s1 = inlined_call_operand.vmem [shape: bf16[256,2304], index: 1, kind: input, shape index: {}]   ;;  %s6998_s0 = inlined_call_operand.vmem [shape: bf16[32,256], index: 0, kind: input, shape index: {}]   ;;  %s6999_s3 = inlined_call_operand.vmem [shape: f32[32,18], index: 3, kind: input, shape index: {}]   ;;  %s7000_s2 = inlined_call_operand.vmem [shape: f32[1,2304], index: 2, kind: input, shape index: {}]   ;;  %s7001_s4 = inlined_call_operand.vmem [shape: f32[32,512], index: 4, kind: output, shape index: {}]  }
   0x1   :  { %v3808_v0 = vld [vmem:[%s6997_s1 + $0x4] ss:$72 sps:$4 sm:$0xff]   ;;  %v3812_v2 = vld [vmem:[%s6997_s1] ss:$72 sps:$4 sm:$0xff]   ;;  %v3814_v4 = vld [vmem:[%s6997_s1 + $0x94] ss:$72 sps:$4 sm:$0xff]  }
   0x2   :  { %v3810_v1 = vld [vmem:[%s6997_s1 + $0xc] ss:$72 sps:$4 sm:$0xff]   ;;  %1865 = vmatprep.subr.bf16.mxu0 %v3808_v0  ;;  %v3813_v3 = vld [vmem:[%s6997_s1 + $0x8] ss:$72 sps:$4 sm:$0xff]   ;;  %v3816_v5 = vld [vmem:[%s6997_s1 + $0x9c] ss:$72 sps:$4 sm:$0xff]  }
   0x3   :  { %1918 = vmatprep.subr.bf16.mxu1 %v3810_v1  ;;  %1866 = vmatpush1.bf16.msra.mxu0 %v3812_v2  ;;  %v3818_v6 = vld [vmem:[%s6997_s1 + $0x90] ss:$72 sps:$4 sm:$0xff]   ;;  %v3820_v8 = vld [vmem:[%s6997_s1 + $0x124] ss:$72 sps:$4 sm:$0xff]   ;;  %v3824_v10 = vld [vmem:[%s6997_s1 + $0x120] ss:$72 sps:$4 sm:$0xff]  }
   0x4   :  { %1919 = vmatpush1.bf16.msra.mxu1 %v3813_v3  ;;  %1867 = vmatprep.subr.bf16.mxu0 %v3814_v4  ;;  %v3819_v7 = vld [vmem:[%s6997_s1 + $0x98] ss:$72 sps:$4 sm:$0xff]   ;;  %v3822_v9 = vld [vmem:[%s6997_s1 + $0x12c] ss:$72 sps:$4 sm:$0xff]   ;;  %v3825_v11 = vld [vmem:[%s6997_s1 + $0x128] ss:$72 sps:$4 sm:$0xff]  }
   0x5   :  { %1920 = vmatprep.subr.bf16.mxu1 %v3816_v5  ;;  %v3826_v12 = vld [vmem:[%s6997_s1 + $0x1b4] ss:$72 sps:$4 sm:$0xff]   ;;  %v3830_v14 = vld [vmem:[%s6997_s1 + $0x1b0] ss:$72 sps:$4 sm:$0xff]   ;;  %v3832_v16 = vld [vmem:[%s6997_s1 + $0x244] ss:$72 sps:$4 sm:$0xff]  }
   0x6   :  { %v3828_v13 = vld [vmem:[%s6997_s1 + $0x1bc] ss:$72 sps:$4 sm:$0xff]   ;;  %v3831_v15 = vld [vmem:[%s6997_s1 + $0x1b8] ss:$72 sps:$4 sm:$0xff]   ;;  %v3834_v17 = vld [vmem:[%s6997_s1 + $0x24c] ss:$72 sps:$4 sm:$0xff]  }
   0x7   :  { %1868 = vmatpush1.bf16.msra.mxu0 %v3818_v6  ;;  %v3836_v18 = vld [vmem:[%s6997_s1 + $0x240] ss:$72 sps:$4 sm:$0xff]   ;;  %v3838_v20 = vld [vmem:[%s6997_s1 + $0x2d4] ss:$72 sps:$4 sm:$0xff]   ;;  %v3842_v22 = vld [vmem:[%s6997_s1 + $0x2d0] ss:$72 sps:$4 sm:$0xff]  }
   0x8   :  { %1921 = vmatpush1.bf16.msra.mxu1 %v3819_v7  ;;  %1869 = vmatprep.subr.bf16.mxu0 %v3820_v8  ;;  %v3837_v19 = vld [vmem:[%s6997_s1 + $0x248] ss:$72 sps:$4 sm:$0xff]   ;;  %v3840_v21 = vld [vmem:[%s6997_s1 + $0x2dc] ss:$72 sps:$4 sm:$0xff]   ;;  %v3843_v23 = vld [vmem:[%s6997_s1 + $0x2d8] ss:$72 sps:$4 sm:$0xff]  }
   0x9   :  { %1922 = vmatprep.subr.bf16.mxu1 %v3822_v9  ;;  %v3844_v24 = vld [vmem:[%s6997_s1 + $0x364] ss:$72 sps:$4 sm:$0xff]   ;;  %v3848_v26 = vld [vmem:[%s6997_s1 + $0x360] ss:$72 sps:$4 sm:$0xff]   ;;  %v3850_v28 = vld [vmem:[%s6997_s1 + $0x3f4] ss:$72 sps:$4 sm:$0xff]  }
   0xa   :  { %v3846_v25 = vld [vmem:[%s6997_s1 + $0x36c] ss:$72 sps:$4 sm:$0xff]   ;;  %v3849_v27 = vld [vmem:[%s6997_s1 + $0x368] ss:$72 sps:$4 sm:$0xff]   ;;  %v3852_v29 = vld [vmem:[%s6997_s1 + $0x3fc] ss:$72 sps:$4 sm:$0xff]  }
   0xb   :  { %1870 = vmatpush1.bf16.msra.mxu0 %v3824_v10  ;;  %v3854_v30 = vld [vmem:[%s6997_s1 + $0x3f0] ss:$72 sps:$4 sm:$0xff]   ;;  %v3856_v32 = vld [vmem:[%s6997_s1 + $0x484] ss:$72 sps:$4 sm:$0xff]   ;;  %v3860_v34 = vld [vmem:[%s6997_s1 + $0x480] ss:$72 sps:$4 sm:$0xff]  }
   0xc   :  { %1923 = vmatpush1.bf16.msra.mxu1 %v3825_v11  ;;  %1871 = vmatprep.subr.bf16.mxu0 %v3826_v12  ;;  %v3855_v31 = vld [vmem:[%s6997_s1 + $0x3f8] ss:$72 sps:$4 sm:$0xff]   ;;  %v3858_v33 = vld [vmem:[%s6997_s1 + $0x48c] ss:$72 sps:$4 sm:$0xff]   ;;  %v3861_v35 = vld [vmem:[%s6997_s1 + $0x488] ss:$72 sps:$4 sm:$0xff]  }
   0xd   :  { %1924 = vmatprep.subr.bf16.mxu1 %v3828_v13  ;;  %v3862_v36 = vld [vmem:[%s6997_s1 + $0x514] ss:$72 sps:$4 sm:$0xff]   ;;  %v3866_v38 = vld [vmem:[%s6997_s1 + $0x510] ss:$72 sps:$4 sm:$0xff]   ;;  %v3868_v40 = vld [vmem:[%s6997_s1 + $0x5a4] ss:$72 sps:$4 sm:$0xff]  }
   0xe   :  { %v3864_v37 = vld [vmem:[%s6997_s1 + $0x51c] ss:$72 sps:$4 sm:$0xff]   ;;  %v3867_v39 = vld [vmem:[%s6997_s1 + $0x518] ss:$72 sps:$4 sm:$0xff]   ;;  %v3870_v41 = vld [vmem:[%s6997_s1 + $0x5ac] ss:$72 sps:$4 sm:$0xff]  }
   0xf   :  { %1872 = vmatpush1.bf16.msra.mxu0 %v3830_v14  ;;  %v3872_v42 = vld [vmem:[%s6997_s1 + $0x5a0] ss:$72 sps:$4 sm:$0xff]   ;;  %v3874_v44 = vld [vmem:[%s6997_s1 + $0x634] ss:$72 sps:$4 sm:$0xff]   ;;  %v3878_v46 = vld [vmem:[%s6997_s1 + $0x630] ss:$72 sps:$4 sm:$0xff]  }
  0x10   :  { %1925 = vmatpush1.bf16.msra.mxu1 %v3831_v15  ;;  %1873 = vmatprep.subr.bf16.mxu0 %v3832_v16  ;;  %v3873_v43 = vld [vmem:[%s6997_s1 + $0x5a8] ss:$72 sps:$4 sm:$0xff]   ;;  %v3876_v45 = vld [vmem:[%s6997_s1 + $0x63c] ss:$72 sps:$4 sm:$0xff]   ;;  %v3879_v47 = vld [vmem:[%s6997_s1 + $0x638] ss:$72 sps:$4 sm:$0xff]  }
  0x11   :  { %1926 = vmatprep.subr.bf16.mxu1 %v3834_v17  ;;  %v4600_v48 = vld [vmem:[%s6998_s0 + $0x4] ss:$8 sps:$4 sm:$0xff]   ;;  %v3884_v51 = vld [vmem:[%s6997_s1 + $0x6c0] ss:$72 sps:$4 sm:$0xff]   ;;  %v3886_v53 = vld [vmem:[%s6997_s1 + $0x754] ss:$72 sps:$4 sm:$0xff]  }
  0x12   :  { %v3880_v49 = vld [vmem:[%s6997_s1 + $0x6c4] ss:$72 sps:$4 sm:$0xff]   ;;  %1897 = vmatprep.mubr.bf16.mxu0 %v4600_v48  ;;  %1950 = vmatprep.mubr.bf16.mxu1 %v4600_v48  ;;  %v3885_v52 = vld [vmem:[%s6997_s1 + $0x6c8] ss:$72 sps:$4 sm:$0xff]   ;;  %v3891_v56 = vld [vmem:[%s6997_s1 + $0x758] ss:$72 sps:$4 sm:$0xff]  }
  0x13   :  { %1874 = vmatpush1.bf16.msra.mxu0 %v3836_v18  ;;  %v3882_v50 = vld [vmem:[%s6997_s1 + $0x6cc] ss:$72 sps:$4 sm:$0xff]   ;;  %v3888_v54 = vld [vmem:[%s6997_s1 + $0x75c] ss:$72 sps:$4 sm:$0xff]   ;;  %v3890_v55 = vld [vmem:[%s6997_s1 + $0x750] ss:$72 sps:$4 sm:$0xff]  }
  0x14   :  { %1927 = vmatpush1.bf16.msra.mxu1 %v3837_v19  ;;  %1875 = vmatprep.subr.bf16.mxu0 %v3838_v20  ;;  %v3892_v57 = vld [vmem:[%s6997_s1 + $0x7e4] ss:$72 sps:$4 sm:$0xff]   ;;  %v3896_v59 = vld [vmem:[%s6997_s1 + $0x7e0] ss:$72 sps:$4 sm:$0xff]   ;;  %v3898_v61 = vld [vmem:[%s6997_s1 + $0x874] ss:$72 sps:$4 sm:$0xff]  }
  0x15   :  { %1928 = vmatprep.subr.bf16.mxu1 %v3840_v21  ;;  %v3894_v58 = vld [vmem:[%s6997_s1 + $0x7ec] ss:$72 sps:$4 sm:$0xff]   ;;  %v3897_v60 = vld [vmem:[%s6997_s1 + $0x7e8] ss:$72 sps:$4 sm:$0xff]   ;;  %v3900_v62 = vld [vmem:[%s6997_s1 + $0x87c] ss:$72 sps:$4 sm:$0xff]  }
  0x16   :  { %v3902_v63 = vld [vmem:[%s6997_s1 + $0x870] ss:$72 sps:$4 sm:$0xff]   ;;  %v3909_v1 = vld [vmem:[%s6997_s1 + $0x14] ss:$72 sps:$4 sm:$0xff]   ;;  %v4661_v3 = vld [vmem:[%s6998_s0] ss:$8 sps:$4 sm:$0xff]  }
  0x17   :  { %1876 = vmatpush1.bf16.msra.mxu0 %v3842_v22  ;;  %v3903_v0 = vld [vmem:[%s6997_s1 + $0x878] ss:$72 sps:$4 sm:$0xff]   ;;  %v3912_v2 = vld [vmem:[%s6997_s1 + $0x1c] ss:$72 sps:$4 sm:$0xff]   ;;  %v3918_v7 = vld [vmem:[%s6997_s1 + $0xac] ss:$72 sps:$4 sm:$0xff]  }
  0x18   :  { %1929 = vmatpush1.bf16.msra.mxu1 %v3843_v23  ;;  %1877 = vmatprep.subr.bf16.mxu0 %v3844_v24  ;;  %v3907_v4 = vld [vmem:[%s6997_s1 + $0x10] ss:$72 sps:$4 sm:$0xff]   ;;  %v3915_v6 = vld [vmem:[%s6997_s1 + $0xa4] ss:$72 sps:$4 sm:$0xff]   ;;  %v3913_v8 = vld [vmem:[%s6997_s1 + $0xa0] ss:$72 sps:$4 sm:$0xff]  }
  0x19   :  { %1930 = vmatprep.subr.bf16.mxu1 %v3846_v25  ;;  %v3910_v5 = vld [vmem:[%s6997_s1 + $0x18] ss:$72 sps:$4 sm:$0xff]   ;;  %v3916_v9 = vld [vmem:[%s6997_s1 + $0xa8] ss:$72 sps:$4 sm:$0xff]   ;;  %v3921_v10 = vld [vmem:[%s6997_s1 + $0x134] ss:$72 sps:$4 sm:$0xff]  }
  0x1a   :  { %v3924_v11 = vld [vmem:[%s6997_s1 + $0x13c] ss:$72 sps:$4 sm:$0xff]   ;;  %v3919_v12 = vld [vmem:[%s6997_s1 + $0x130] ss:$72 sps:$4 sm:$0xff]   ;;  %v3930_v15 = vld [vmem:[%s6997_s1 + $0x1cc] ss:$72 sps:$4 sm:$0xff]  }
  0x1b   :  { %1878 = vmatpush1.bf16.msra.mxu0 %v3848_v26  ;;  %v3922_v13 = vld [vmem:[%s6997_s1 + $0x138] ss:$72 sps:$4 sm:$0xff]   ;;  %v3927_v14 = vld [vmem:[%s6997_s1 + $0x1c4] ss:$72 sps:$4 sm:$0xff]   ;;  %v3928_v17 = vld [vmem:[%s6997_s1 + $0x1c8] ss:$72 sps:$4 sm:$0xff]  }
  0x1c   :  { %1931 = vmatpush1.bf16.msra.mxu1 %v3849_v27  ;;  %1879 = vmatprep.subr.bf16.mxu0 %v3850_v28  ;;  %v3925_v16 = vld [vmem:[%s6997_s1 + $0x1c0] ss:$72 sps:$4 sm:$0xff]   ;;  %v3933_v18 = vld [vmem:[%s6997_s1 + $0x254] ss:$72 sps:$4 sm:$0xff]   ;;  %v3931_v20 = vld [vmem:[%s6997_s1 + $0x250] ss:$72 sps:$4 sm:$0xff]  }
  0x1d   :  { %1932 = vmatprep.subr.bf16.mxu1 %v3852_v29  ;;  %v3936_v19 = vld [vmem:[%s6997_s1 + $0x25c] ss:$72 sps:$4 sm:$0xff]   ;;  %v3934_v21 = vld [vmem:[%s6997_s1 + $0x258] ss:$72 sps:$4 sm:$0xff]   ;;  %v3942_v23 = vld [vmem:[%s6997_s1 + $0x2ec] ss:$72 sps:$4 sm:$0xff]  }
  0x1e   :  { %v3939_v22 = vld [vmem:[%s6997_s1 + $0x2e4] ss:$72 sps:$4 sm:$0xff]   ;;  %v3937_v24 = vld [vmem:[%s6997_s1 + $0x2e0] ss:$72 sps:$4 sm:$0xff]   ;;  %v4731_v25 = vld [vmem:[%s6998_s0 + $0x14] ss:$8 sps:$4 sm:$0xff]  }
  0x1f   :  { %1880 = vmatpush1.bf16.msra.mxu0 %v3854_v30  ;;  %v3940_v26 = vld [vmem:[%s6997_s1 + $0x2e8] ss:$72 sps:$4 sm:$0xff]   ;;  %v3945_v28 = vld [vmem:[%s6997_s1 + $0x374] ss:$72 sps:$4 sm:$0xff]  }
  0x20   :  { %1933 = vmatpush1.bf16.msra.mxu1 %v3855_v31  ;;  %1881 = vmatprep.subr.bf16.mxu0 %v3856_v32  ;;  %v4739_v27 = vld [vmem:[%s6998_s0 + $0x10] ss:$8 sps:$4 sm:$0xff]   ;;  %v3948_v29 = vld [vmem:[%s6997_s1 + $0x37c] ss:$72 sps:$4 sm:$0xff]  }
  0x21   :  { %1934 = vmatprep.subr.bf16.mxu1 %v3858_v33  ;;  %v3943_v30 = vld [vmem:[%s6997_s1 + $0x370] ss:$72 sps:$4 sm:$0xff]   ;;  %v3951_v32 = vld [vmem:[%s6997_s1 + $0x404] ss:$72 sps:$4 sm:$0xff]  }
  0x22   :  { %v3946_v31 = vld [vmem:[%s6997_s1 + $0x378] ss:$72 sps:$4 sm:$0xff]   ;;  %v3954_v33 = vld [vmem:[%s6997_s1 + $0x40c] ss:$72 sps:$4 sm:$0xff]  }
  0x23   :  { %1882 = vmatpush1.bf16.msra.mxu0 %v3860_v34  ;;  %v3949_v34 = vld [vmem:[%s6997_s1 + $0x400] ss:$72 sps:$4 sm:$0xff]  }
  0x24   :  { %1935 = vmatpush1.bf16.msra.mxu1 %v3861_v35  ;;  %1883 = vmatprep.subr.bf16.mxu0 %v3862_v36  ;;  %v3952_v35 = vld [vmem:[%s6997_s1 + $0x408] ss:$72 sps:$4 sm:$0xff]   ;;  %v3957_v36 = vld [vmem:[%s6997_s1 + $0x494] ss:$72 sps:$4 sm:$0xff]  }
  0x25   :  { %1936 = vmatprep.subr.bf16.mxu1 %v3864_v37  ;;  %v3960_v37 = vld [vmem:[%s6997_s1 + $0x49c] ss:$72 sps:$4 sm:$0xff]  }
  0x27   :  { %1884 = vmatpush1.bf16.msra.mxu0 %v3866_v38  ;;  %v3955_v38 = vld [vmem:[%s6997_s1 + $0x490] ss:$72 sps:$4 sm:$0xff]  }
  0x28   :  { %1937 = vmatpush1.bf16.msra.mxu1 %v3867_v39  ;;  %1885 = vmatprep.subr.bf16.mxu0 %v3868_v40  ;;  %v3958_v39 = vld [vmem:[%s6997_s1 + $0x498] ss:$72 sps:$4 sm:$0xff]   ;;  %v3963_v40 = vld [vmem:[%s6997_s1 + $0x524] ss:$72 sps:$4 sm:$0xff]  }
  0x29   :  { %1938 = vmatprep.subr.bf16.mxu1 %v3870_v41  ;;  %v3966_v41 = vld [vmem:[%s6997_s1 + $0x52c] ss:$72 sps:$4 sm:$0xff]  }
  0x2b   :  { %1886 = vmatpush1.bf16.msra.mxu0 %v3872_v42  ;;  %v3961_v42 = vld [vmem:[%s6997_s1 + $0x520] ss:$72 sps:$4 sm:$0xff]  }
  0x2c   :  { %1939 = vmatpush1.bf16.msra.mxu1 %v3873_v43  ;;  %1887 = vmatprep.subr.bf16.mxu0 %v3874_v44  ;;  %v3964_v43 = vld [vmem:[%s6997_s1 + $0x528] ss:$72 sps:$4 sm:$0xff]   ;;  %v3969_v44 = vld [vmem:[%s6997_s1 + $0x5b4] ss:$72 sps:$4 sm:$0xff]  }
  0x2d   :  { %1940 = vmatprep.subr.bf16.mxu1 %v3876_v45  ;;  %v3972_v45 = vld [vmem:[%s6997_s1 + $0x5bc] ss:$72 sps:$4 sm:$0xff]  }
  0x2f   :  { %1888 = vmatpush1.bf16.msra.mxu0 %v3878_v46  ;;  %v3967_v46 = vld [vmem:[%s6997_s1 + $0x5b0] ss:$72 sps:$4 sm:$0xff]  }
  0x30   :  { %1941 = vmatpush1.bf16.msra.mxu1 %v3879_v47  ;;  %1889 = vmatprep.subr.bf16.mxu0 %v3880_v49  ;;  %v3970_v47 = vld [vmem:[%s6997_s1 + $0x5b8] ss:$72 sps:$4 sm:$0xff]   ;;  %v3975_v49 = vld [vmem:[%s6997_s1 + $0x644] ss:$72 sps:$4 sm:$0xff]  }
  0x31   :  { %1942 = vmatprep.subr.bf16.mxu1 %v3882_v50  ;;  %v3978_v50 = vld [vmem:[%s6997_s1 + $0x64c] ss:$72 sps:$4 sm:$0xff]  }
  0x33   :  { %1890 = vmatpush1.bf16.msra.mxu0 %v3884_v51  ;;  %v3973_v51 = vld [vmem:[%s6997_s1 + $0x640] ss:$72 sps:$4 sm:$0xff]  }
  0x34   :  { %1943 = vmatpush1.bf16.msra.mxu1 %v3885_v52  ;;  %1891 = vmatprep.subr.bf16.mxu0 %v3886_v53  ;;  %v3976_v52 = vld [vmem:[%s6997_s1 + $0x648] ss:$72 sps:$4 sm:$0xff]   ;;  %v3981_v53 = vld [vmem:[%s6997_s1 + $0x6d4] ss:$72 sps:$4 sm:$0xff]  }
  0x35   :  { %1944 = vmatprep.subr.bf16.mxu1 %v3888_v54  ;;  %v3984_v54 = vld [vmem:[%s6997_s1 + $0x6dc] ss:$72 sps:$4 sm:$0xff]  }
  0x37   :  { %1892 = vmatpush1.bf16.msra.mxu0 %v3890_v55  ;;  %v3979_v55 = vld [vmem:[%s6997_s1 + $0x6d0] ss:$72 sps:$4 sm:$0xff]  }
  0x38   :  { %1945 = vmatpush1.bf16.msra.mxu1 %v3891_v56  ;;  %1893 = vmatprep.subr.bf16.mxu0 %v3892_v57  ;;  %v3982_v56 = vld [vmem:[%s6997_s1 + $0x6d8] ss:$72 sps:$4 sm:$0xff]   ;;  %v3987_v57 = vld [vmem:[%s6997_s1 + $0x764] ss:$72 sps:$4 sm:$0xff]  }
  0x39   :  { %1946 = vmatprep.subr.bf16.mxu1 %v3894_v58  ;;  %v3990_v58 = vld [vmem:[%s6997_s1 + $0x76c] ss:$72 sps:$4 sm:$0xff]  }
  0x3b   :  { %1894 = vmatpush1.bf16.msra.mxu0 %v3896_v59  ;;  %v3985_v59 = vld [vmem:[%s6997_s1 + $0x760] ss:$72 sps:$4 sm:$0xff]  }
  0x3c   :  { %1947 = vmatpush1.bf16.msra.mxu1 %v3897_v60  ;;  %1895 = vmatprep.subr.bf16.mxu0 %v3898_v61  ;;  %v3988_v60 = vld [vmem:[%s6997_s1 + $0x768] ss:$72 sps:$4 sm:$0xff]   ;;  %v3996_v61 = vld [vmem:[%s6997_s1 + $0x7f4] ss:$72 sps:$4 sm:$0xff]  }
  0x3d   :  { %1948 = vmatprep.subr.bf16.mxu1 %v3900_v62  ;;  %v3999_v62 = vld [vmem:[%s6997_s1 + $0x7fc] ss:$72 sps:$4 sm:$0xff]  }
  0x3f   :  { %1896 = vmatpush1.bf16.msra.mxu0 %v3902_v63  ;;  %v3994_v63 = vld [vmem:[%s6997_s1 + $0x7f0] ss:$72 sps:$4 sm:$0xff]  }
  0x40   :  { %1949 = vmatpush1.bf16.msra.mxu1 %v3903_v0  ;;  %1971 = vmatprep.subr.bf16.mxu0 %v3909_v1  ;;  %v3997_v0 = vld [vmem:[%s6997_s1 + $0x7f8] ss:$72 sps:$4 sm:$0xff]   ;;  %v4002_v1 = vld [vmem:[%s6997_s1 + $0x884] ss:$72 sps:$4 sm:$0xff]  }
  0x41   :  { %2024 = vmatprep.subr.bf16.mxu1 %v3912_v2  ;;  %v4005_v2 = vld [vmem:[%s6997_s1 + $0x88c] ss:$72 sps:$4 sm:$0xff]  }
  0x42   :  { %1898 = vmatmul.mubr.bf16.vlgmr.msra.gmra.mrb[0].mxu0 %v4661_v3 }
  0x43   :  { %1951 = vmatmul.mubr.bf16.vlgmr.msra.gmra.mrb[0].mxu1 %v4661_v3  ;;  %1972 = vmatpush1.bf16.msra.mxu0 %v3907_v4  ;;  %v4000_v4 = vld [vmem:[%s6997_s1 + $0x880] ss:$72 sps:$4 sm:$0xff]  }
  0x44   :  { %2025 = vmatpush1.bf16.msra.mxu1 %v3910_v5  ;;  %1973 = vmatprep.subr.bf16.mxu0 %v3915_v6  ;;  %v4003_v5 = vld [vmem:[%s6997_s1 + $0x888] ss:$72 sps:$4 sm:$0xff]   ;;  %v4008_v6 = vld [vmem:[%s6997_s1 + $0x24] ss:$72 sps:$4 sm:$0xff]  }
  0x45   :  { %2026 = vmatprep.subr.bf16.mxu1 %v3918_v7  ;;  %1907 = vmatprep.mubr.bf16.mxu0 %v4731_v25  ;;  %v4011_v7 = vld [vmem:[%s6997_s1 + $0x2c] ss:$72 sps:$4 sm:$0xff]  }
  0x46   :  { %1960 = vmatprep.mubr.bf16.mxu1 %v4731_v25 }
  0x47   :  { %1974 = vmatpush1.bf16.msra.mxu0 %v3913_v8  ;;  %v4006_v8 = vld [vmem:[%s6997_s1 + $0x20] ss:$72 sps:$4 sm:$0xff]  }
  0x48   :  { %2027 = vmatpush1.bf16.msra.mxu1 %v3916_v9  ;;  %1975 = vmatprep.subr.bf16.mxu0 %v3921_v10  ;;  %v4009_v9 = vld [vmem:[%s6997_s1 + $0x28] ss:$72 sps:$4 sm:$0xff]   ;;  %v4014_v10 = vld [vmem:[%s6997_s1 + $0xb4] ss:$72 sps:$4 sm:$0xff]  }
  0x49   :  { %2028 = vmatprep.subr.bf16.mxu1 %v3924_v11  ;;  %v4017_v11 = vld [vmem:[%s6997_s1 + $0xbc] ss:$72 sps:$4 sm:$0xff]  }
  0x4a   :  { %1908 = vmatmul.mubr.bf16.gmra.mrb[4].mxu0 %v4739_v27 }
  0x4b   :  { %1976 = vmatpush1.bf16.msra.mxu0 %v3919_v12  ;;  %1961 = vmatmul.mubr.bf16.gmra.mrb[4].mxu1 %v4739_v27  ;;  %v4012_v12 = vld [vmem:[%s6997_s1 + $0xb0] ss:$72 sps:$4 sm:$0xff]  }
  0x4c   :  { %2029 = vmatpush1.bf16.msra.mxu1 %v3922_v13  ;;  %1977 = vmatprep.subr.bf16.mxu0 %v3927_v14  ;;  %v4015_v13 = vld [vmem:[%s6997_s1 + $0xb8] ss:$72 sps:$4 sm:$0xff]   ;;  %v4020_v14 = vld [vmem:[%s6997_s1 + $0x144] ss:$72 sps:$4 sm:$0xff]  }
  0x4d   :  { %2030 = vmatprep.subr.bf16.mxu1 %v3930_v15  ;;  %2003 = vmatprep.mubr.bf16.mxu0 %v4600_v48  ;;  %v4023_v15 = vld [vmem:[%s6997_s1 + $0x14c] ss:$72 sps:$4 sm:$0xff]  }
  0x4e   :  { %2056 = vmatprep.mubr.bf16.mxu1 %v4600_v48 }
  0x4f   :  { %1978 = vmatpush1.bf16.msra.mxu0 %v3925_v16  ;;  %v4018_v16 = vld [vmem:[%s6997_s1 + $0x140] ss:$72 sps:$4 sm:$0xff]  }
  0x50   :  { %2031 = vmatpush1.bf16.msra.mxu1 %v3928_v17  ;;  %1979 = vmatprep.subr.bf16.mxu0 %v3933_v18  ;;  %v4021_v17 = vld [vmem:[%s6997_s1 + $0x148] ss:$72 sps:$4 sm:$0xff]   ;;  %v4026_v18 = vld [vmem:[%s6997_s1 + $0x1d4] ss:$72 sps:$4 sm:$0xff]  }
  0x51   :  { %2032 = vmatprep.subr.bf16.mxu1 %v3936_v19  ;;  %v4029_v19 = vld [vmem:[%s6997_s1 + $0x1dc] ss:$72 sps:$4 sm:$0xff]  }
  0x53   :  { %1980 = vmatpush1.bf16.msra.mxu0 %v3931_v20  ;;  %v4410_v20 = vmov 0  }
  0x54   :  { %2033 = vmatpush1.bf16.msra.mxu1 %v3934_v21  ;;  %1981 = vmatprep.subr.bf16.mxu0 %v3939_v22  ;;  %v4024_v21 = vld [vmem:[%s6997_s1 + $0x1d0] ss:$72 sps:$4 sm:$0xff]  }
  0x55   :  { %2034 = vmatprep.subr.bf16.mxu1 %v3942_v23  ;;  %3773 = vset.pattern.permute.xlu1 %v4410_v20  ;;  %v4027_v22 = vld [vmem:[%s6997_s1 + $0x1d8] ss:$72 sps:$4 sm:$0xff]   ;;  %v4032_v23 = vld [vmem:[%s6997_s1 + $0x264] ss:$72 sps:$4 sm:$0xff]  }
  0x56   :  { %3772 = vset.pattern.permute.xlu0 %v4410_v20  ;;  %v4411_v20 = vmov 9  }
  0x57   :  { %1982 = vmatpush1.bf16.msra.mxu0 %v3937_v24  ;;  %v4035_v24 = vld [vmem:[%s6997_s1 + $0x26c] ss:$72 sps:$4 sm:$0xff]  }
  0x58   :  { %2035 = vmatpush1.bf16.msra.mxu1 %v3940_v26  ;;  %1983 = vmatprep.subr.bf16.mxu0 %v3945_v28  ;;  %v4030_v26 = vld [vmem:[%s6997_s1 + $0x260] ss:$72 sps:$4 sm:$0xff]  }
  0x59   :  { %2036 = vmatprep.subr.bf16.mxu1 %v3948_v29  ;;  %v4033_v28 = vld [vmem:[%s6997_s1 + $0x268] ss:$72 sps:$4 sm:$0xff]   ;;  %v4038_v29 = vld [vmem:[%s6997_s1 + $0x2f4] ss:$72 sps:$4 sm:$0xff]  }
  0x5b   :  { %1984 = vmatpush1.bf16.msra.mxu0 %v3943_v30  ;;  %v4036_v30 = vld [vmem:[%s6997_s1 + $0x2f0] ss:$72 sps:$4 sm:$0xff]  }
  0x5c   :  { %2037 = vmatpush1.bf16.msra.mxu1 %v3946_v31  ;;  %1985 = vmatprep.subr.bf16.mxu0 %v3951_v32  ;;  %v4039_v31 = vld [vmem:[%s6997_s1 + $0x2f8] ss:$72 sps:$4 sm:$0xff]   ;;  %v4044_v32 = vld [vmem:[%s6997_s1 + $0x384] ss:$72 sps:$4 sm:$0xff]  }
  0x5d   :  { %2038 = vmatprep.subr.bf16.mxu1 %v3954_v33  ;;  %v4047_v33 = vld [vmem:[%s6997_s1 + $0x38c] ss:$72 sps:$4 sm:$0xff]  }
  0x5f   :  { %1986 = vmatpush1.bf16.msra.mxu0 %v3949_v34  ;;  %v4042_v34 = vld [vmem:[%s6997_s1 + $0x380] ss:$72 sps:$4 sm:$0xff]  }
  0x60   :  { %2039 = vmatpush1.bf16.msra.mxu1 %v3952_v35  ;;  %1987 = vmatprep.subr.bf16.mxu0 %v3957_v36  ;;  %v4045_v35 = vld [vmem:[%s6997_s1 + $0x388] ss:$72 sps:$4 sm:$0xff]   ;;  %v4050_v36 = vld [vmem:[%s6997_s1 + $0x414] ss:$72 sps:$4 sm:$0xff]  }
  0x61   :  { %2040 = vmatprep.subr.bf16.mxu1 %v3960_v37  ;;  %v4053_v37 = vld [vmem:[%s6997_s1 + $0x41c] ss:$72 sps:$4 sm:$0xff]  }
  0x63   :  { %1988 = vmatpush1.bf16.msra.mxu0 %v3955_v38  ;;  %v4048_v38 = vld [vmem:[%s6997_s1 + $0x410] ss:$72 sps:$4 sm:$0xff]  }
  0x64   :  { %2041 = vmatpush1.bf16.msra.mxu1 %v3958_v39  ;;  %1989 = vmatprep.subr.bf16.mxu0 %v3963_v40  ;;  %v4051_v39 = vld [vmem:[%s6997_s1 + $0x418] ss:$72 sps:$4 sm:$0xff]   ;;  %v4056_v40 = vld [vmem:[%s6997_s1 + $0x4a4] ss:$72 sps:$4 sm:$0xff]  }
  0x65   :  { %2042 = vmatprep.subr.bf16.mxu1 %v3966_v41  ;;  %v4059_v41 = vld [vmem:[%s6997_s1 + $0x4ac] ss:$72 sps:$4 sm:$0xff]  }
  0x67   :  { %1990 = vmatpush1.bf16.msra.mxu0 %v3961_v42  ;;  %v4054_v42 = vld [vmem:[%s6997_s1 + $0x4a0] ss:$72 sps:$4 sm:$0xff]  }
  0x68   :  { %2043 = vmatpush1.bf16.msra.mxu1 %v3964_v43  ;;  %1991 = vmatprep.subr.bf16.mxu0 %v3969_v44  ;;  %v4057_v43 = vld [vmem:[%s6997_s1 + $0x4a8] ss:$72 sps:$4 sm:$0xff]   ;;  %v4062_v44 = vld [vmem:[%s6997_s1 + $0x534] ss:$72 sps:$4 sm:$0xff]  }
  0x69   :  { %2044 = vmatprep.subr.bf16.mxu1 %v3972_v45  ;;  %v4065_v45 = vld [vmem:[%s6997_s1 + $0x53c] ss:$72 sps:$4 sm:$0xff]  }
  0x6b   :  { %1992 = vmatpush1.bf16.msra.mxu0 %v3967_v46  ;;  %v4060_v46 = vld [vmem:[%s6997_s1 + $0x530] ss:$72 sps:$4 sm:$0xff]  }
  0x6c   :  { %2045 = vmatpush1.bf16.msra.mxu1 %v3970_v47  ;;  %1993 = vmatprep.subr.bf16.mxu0 %v3975_v49  ;;  %v4063_v47 = vld [vmem:[%s6997_s1 + $0x538] ss:$72 sps:$4 sm:$0xff]   ;;  %v4068_v49 = vld [vmem:[%s6997_s1 + $0x5c4] ss:$72 sps:$4 sm:$0xff]  }
  0x6d   :  { %2046 = vmatprep.subr.bf16.mxu1 %v3978_v50  ;;  %v4071_v50 = vld [vmem:[%s6997_s1 + $0x5cc] ss:$72 sps:$4 sm:$0xff]  }
  0x6f   :  { %1994 = vmatpush1.bf16.msra.mxu0 %v3973_v51  ;;  %v4066_v51 = vld [vmem:[%s6997_s1 + $0x5c0] ss:$72 sps:$4 sm:$0xff]  }
  0x70   :  { %2047 = vmatpush1.bf16.msra.mxu1 %v3976_v52  ;;  %1995 = vmatprep.subr.bf16.mxu0 %v3981_v53  ;;  %v4069_v52 = vld [vmem:[%s6997_s1 + $0x5c8] ss:$72 sps:$4 sm:$0xff]   ;;  %v4074_v53 = vld [vmem:[%s6997_s1 + $0x654] ss:$72 sps:$4 sm:$0xff]  }
  0x71   :  { %2048 = vmatprep.subr.bf16.mxu1 %v3984_v54  ;;  %v4077_v54 = vld [vmem:[%s6997_s1 + $0x65c] ss:$72 sps:$4 sm:$0xff]  }
  0x73   :  { %1996 = vmatpush1.bf16.msra.mxu0 %v3979_v55  ;;  %v4072_v55 = vld [vmem:[%s6997_s1 + $0x650] ss:$72 sps:$4 sm:$0xff]  }
  0x74   :  { %2049 = vmatpush1.bf16.msra.mxu1 %v3982_v56  ;;  %1997 = vmatprep.subr.bf16.mxu0 %v3987_v57  ;;  %v4075_v56 = vld [vmem:[%s6997_s1 + $0x658] ss:$72 sps:$4 sm:$0xff]   ;;  %v4080_v57 = vld [vmem:[%s6997_s1 + $0x6e4] ss:$72 sps:$4 sm:$0xff]  }
  0x75   :  { %2050 = vmatprep.subr.bf16.mxu1 %v3990_v58  ;;  %v4083_v58 = vld [vmem:[%s6997_s1 + $0x6ec] ss:$72 sps:$4 sm:$0xff]  }
  0x77   :  { %1998 = vmatpush1.bf16.msra.mxu0 %v3985_v59  ;;  %v4078_v59 = vld [vmem:[%s6997_s1 + $0x6e0] ss:$72 sps:$4 sm:$0xff]  }
  0x78   :  { %2051 = vmatpush1.bf16.msra.mxu1 %v3988_v60  ;;  %1999 = vmatprep.subr.bf16.mxu0 %v3996_v61  ;;  %v4081_v60 = vld [vmem:[%s6997_s1 + $0x6e8] ss:$72 sps:$4 sm:$0xff]   ;;  %v4086_v61 = vld [vmem:[%s6997_s1 + $0x774] ss:$72 sps:$4 sm:$0xff]  }
  0x79   :  { %2052 = vmatprep.subr.bf16.mxu1 %v3999_v62  ;;  %v4089_v62 = vld [vmem:[%s6997_s1 + $0x77c] ss:$72 sps:$4 sm:$0xff]  }
  0x7b   :  { %2000 = vmatpush1.bf16.msra.mxu0 %v3994_v63  ;;  %v2416_v63 = vld [vmem:[%s6999_s3 + $0x10] sm:$0xff] }
  0x7c   :  { %2053 = vmatpush1.bf16.msra.mxu1 %v3997_v0  ;;  %2001 = vmatprep.subr.bf16.mxu0 %v4002_v1  ;;  %v5040_v0 = vmul.f32 16.0, %v2416_v63  ;;  %v2417_v1 = vld [vmem:[%s6999_s3 + $0x18] sm:$0xff] }
  0x7d   :  { %2054 = vmatprep.subr.bf16.mxu1 %v4005_v2  ;;  %v4084_v2 = vld [vmem:[%s6997_s1 + $0x770] ss:$72 sps:$4 sm:$0xff]   ;;  %v4167_v63 = vld [vmem:[%s6997_s1 + $0x5dc] ss:$72 sps:$4 sm:$0xff]  }
  0x7e   :  { %2794 = vperm.xlu1 %3773, %v5040_v0  }
  0x7f   :  { %2002 = vmatpush1.bf16.msra.mxu0 %v4000_v4  ;;  %v4087_v4 = vld [vmem:[%s6997_s1 + $0x778] ss:$72 sps:$4 sm:$0xff]  }
  0x80   :  { %2055 = vmatpush1.bf16.msra.mxu1 %v4003_v5  ;;  %2077 = vmatprep.subr.bf16.mxu0 %v4008_v6  ;;  %v4092_v5 = vld [vmem:[%s6997_s1 + $0x804] ss:$72 sps:$4 sm:$0xff]  }
  0x81   :  { %2130 = vmatprep.subr.bf16.mxu1 %v4011_v7  ;;  %v4095_v6 = vld [vmem:[%s6997_s1 + $0x80c] ss:$72 sps:$4 sm:$0xff]   ;;  %v4090_v7 = vld [vmem:[%s6997_s1 + $0x800] ss:$72 sps:$4 sm:$0xff]  }
  0x82   :  { %2004 = vmatmul.mubr.bf16.vlgmr.msra.gmra.mrb[8].mxu0 %v4661_v3 }
  0x83   :  { %2057 = vmatmul.mubr.bf16.vlgmr.msra.gmra.mrb[8].mxu1 %v4661_v3  ;;  %2078 = vmatpush1.bf16.msra.mxu0 %v4006_v8  ;;  %v5061_v8 = vmul.f32 16.0, %v2417_v1  ;;  %v4162_v1 = vld [vmem:[%s6997_s1 + $0x5d0] ss:$72 sps:$4 sm:$0xff]  }
  0x84   :  { %2131 = vmatpush1.bf16.msra.mxu1 %v4009_v9  ;;  %2079 = vmatprep.subr.bf16.mxu0 %v4014_v10  ;;  %v4093_v9 = vld [vmem:[%s6997_s1 + $0x808] ss:$72 sps:$4 sm:$0xff]  }
  0x85   :  { %2132 = vmatprep.subr.bf16.mxu1 %v4017_v11  ;;  %2013 = vmatprep.mubr.bf16.mxu0 %v4731_v25  ;;  %v2415_v10 = vld [vmem:[%s6999_s3 + $0x8] sm:$0xff]  ;;  %v2414_v11 = vld [vmem:[%s6999_s3] sm:$0xff] }
  0x86   :  { %2066 = vmatprep.mubr.bf16.mxu1 %v4731_v25  ;;  %2799 = vperm.xlu1 %3773, %v5061_v8  }
  0x87   :  { %2080 = vmatpush1.bf16.msra.mxu0 %v4012_v12  ;;  %v4098_v12 = vld [vmem:[%s6997_s1 + $0x894] ss:$72 sps:$4 sm:$0xff]  }
  0x88   :  { %2133 = vmatpush1.bf16.msra.mxu1 %v4015_v13  ;;  %2081 = vmatprep.subr.bf16.mxu0 %v4020_v14  ;;  %v4101_v13 = vld [vmem:[%s6997_s1 + $0x89c] ss:$72 sps:$4 sm:$0xff]   ;;  %v5078_v14 = vmul.f32 16.0, %v2414_v11 }
  0x89   :  { %2134 = vmatprep.subr.bf16.mxu1 %v4023_v15  ;;  %v4096_v15 = vld [vmem:[%s6997_s1 + $0x890] ss:$72 sps:$4 sm:$0xff]   ;;  %v4179_v11 = vld [vmem:[%s6997_s1 + $0x6fc] ss:$72 sps:$4 sm:$0xff]  }
  0x8a   :  { %2014 = vmatmul.mubr.bf16.gmra.mrb[12].mxu0 %v4739_v27  ;;  %2784 = vperm.xlu0 %3772, %v5078_v14  }
  0x8b   :  { %2067 = vmatmul.mubr.bf16.gmra.mrb[12].mxu1 %v4739_v27  ;;  %2082 = vmatpush1.bf16.msra.mxu0 %v4018_v16  ;;  %v5084_v16 = vmul.f32 16.0, %v2415_v10  ;;  %v4176_v10 = vld [vmem:[%s6997_s1 + $0x6f4] ss:$72 sps:$4 sm:$0xff]  }
  0x8c   :  { %2135 = vmatpush1.bf16.msra.mxu1 %v4021_v17  ;;  %2083 = vmatprep.subr.bf16.mxu0 %v4026_v18  ;;  %v4099_v17 = vld [vmem:[%s6997_s1 + $0x898] ss:$72 sps:$4 sm:$0xff]   ;;  %v4104_v18 = vld [vmem:[%s6997_s1 + $0x34] ss:$72 sps:$4 sm:$0xff]  }
  0x8d   :  { %2136 = vmatprep.subr.bf16.mxu1 %v4029_v19  ;;  %2109 = vmatprep.mubr.bf16.mxu0 %v4600_v48  ;;  %v4107_v19 = vld [vmem:[%s6997_s1 + $0x3c] ss:$72 sps:$4 sm:$0xff]  }
  0x8e   :  { %2162 = vmatprep.mubr.bf16.mxu1 %v4600_v48  ;;  %v4041_v48 = vld [vmem:[%s6997_s1 + $0x2fc] ss:$72 sps:$4 sm:$0xff]   ;;  %3775 = vset.pattern.permute.xlu1 %v4411_v20 }
  0x8f   :  { %2084 = vmatpush1.bf16.msra.mxu0 %v4024_v21  ;;  %v4102_v21 = vld [vmem:[%s6997_s1 + $0x30] ss:$72 sps:$4 sm:$0xff]   ;;  %2815 = vperm.xlu1 %3775, %v5084_v16  }
  0x90   :  { %2137 = vmatpush1.bf16.msra.mxu1 %v4027_v22  ;;  %2085 = vmatprep.subr.bf16.mxu0 %v4032_v23  ;;  %v4105_v22 = vld [vmem:[%s6997_s1 + $0x38] ss:$72 sps:$4 sm:$0xff]   ;;  %v4110_v23 = vld [vmem:[%s6997_s1 + $0xc4] ss:$72 sps:$4 sm:$0xff]  }
  0x91   :  { %2138 = vmatprep.subr.bf16.mxu1 %v4035_v24  ;;  %2789 = vperm.xlu0 %3772, %v5084_v16   ;;  %v4113_v24 = vld [vmem:[%s6997_s1 + $0xcc] ss:$72 sps:$4 sm:$0xff]  }
  0x93   :  { %2086 = vmatpush1.bf16.msra.mxu0 %v4030_v26  ;;  %v4108_v26 = vld [vmem:[%s6997_s1 + $0xc0] ss:$72 sps:$4 sm:$0xff]   ;;  %2819 = vperm.xlu1 %3775, %v5040_v0  }
  0x94   :  { %2139 = vmatpush1.bf16.msra.mxu1 %v4033_v28  ;;  %2087 = vmatprep.subr.bf16.mxu0 %v4038_v29  ;;  %v4111_v28 = vld [vmem:[%s6997_s1 + $0xc8] ss:$72 sps:$4 sm:$0xff]   ;;  %v4116_v29 = vld [vmem:[%s6997_s1 + $0x154] ss:$72 sps:$4 sm:$0xff]  }
  0x95   :  { %2140 = vmatprep.subr.bf16.mxu1 %v4041_v48  ;;  %3774 = vset.pattern.permute.xlu0 %v4411_v20  ;;  %v4114_v48 = vld [vmem:[%s6997_s1 + $0x150] ss:$72 sps:$4 sm:$0xff]  }
  0x96   :  { %2811 = vperm.xlu0 %3774, %v5078_v14   ;;  %v4183_v20 = vld [vmem:[%s6997_s1 + $0x788] ss:$72 sps:$4 sm:$0xff]  }
  0x97   :  { %2088 = vmatpush1.bf16.msra.mxu0 %v4036_v30  ;;  %v4117_v30 = vld [vmem:[%s6997_s1 + $0x158] ss:$72 sps:$4 sm:$0xff]  }
  0x98   :  { %2141 = vmatpush1.bf16.msra.mxu1 %v4039_v31  ;;  %2089 = vmatprep.subr.bf16.mxu0 %v4044_v32  ;;  %v4122_v31 = vld [vmem:[%s6997_s1 + $0x1e4] ss:$72 sps:$4 sm:$0xff]   ;;  %v4120_v32 = vld [vmem:[%s6997_s1 + $0x1e0] ss:$72 sps:$4 sm:$0xff]  }
  0x99   :  { %2142 = vmatprep.subr.bf16.mxu1 %v4047_v33  ;;  %v4123_v33 = vld [vmem:[%s6997_s1 + $0x1e8] ss:$72 sps:$4 sm:$0xff]  }
  0x9a   :  { %2823 = vperm.xlu0 %3774, %v5061_v8  }
  0x9b   :  { %2090 = vmatpush1.bf16.msra.mxu0 %v4042_v34  ;;  %v4128_v34 = vld [vmem:[%s6997_s1 + $0x274] ss:$72 sps:$4 sm:$0xff]  }
  0x9c   :  { %2143 = vmatpush1.bf16.msra.mxu1 %v4045_v35  ;;  %2091 = vmatprep.subr.bf16.mxu0 %v4050_v36  ;;  %v5157_v35 = vld [vmem:[%s6998_s0 + $0x4] ss:$8 sps:$4 sm:$0xff]   ;;  %v4412_v36 = vmov 1  }
  0x9d   :  { %2144 = vmatprep.subr.bf16.mxu1 %v4053_v37  ;;  %3776 = vset.pattern.permute.xlu1 %v4412_v36  ;;  %v4126_v37 = vld [vmem:[%s6997_s1 + $0x270] ss:$72 sps:$4 sm:$0xff]  }
  0x9e   :  { %2843 = vperm.xlu1 %3776, %v5078_v14   ;;  %3777 = vset.pattern.permute.xlu0 %v4412_v36  ;;  %v315_v36 = vlaneseq }
  0x9f   :  { %2092 = vmatpush1.bf16.msra.mxu0 %v4048_v38  ;;  %v4129_v38 = vld [vmem:[%s6997_s1 + $0x278] ss:$72 sps:$4 sm:$0xff]   ;;  %2847 = vperm.xlu0 %3777, %v5084_v16  }
  0xa0   :  { %2145 = vmatpush1.bf16.msra.mxu1 %v4051_v39  ;;  %2093 = vmatprep.subr.bf16.mxu0 %v4056_v40  ;;  %v4134_v39 = vld [vmem:[%s6997_s1 + $0x304] ss:$72 sps:$4 sm:$0xff]  }
  0xa1   :  { %2146 = vmatprep.subr.bf16.mxu1 %v4059_v41  ;;  %v4137_v40 = vld [vmem:[%s6997_s1 + $0x30c] ss:$72 sps:$4 sm:$0xff]   ;;  %v4132_v41 = vld [vmem:[%s6997_s1 + $0x300] ss:$72 sps:$4 sm:$0xff]  }
  0xa2   :  { %2851 = vperm.xlu1 %3776, %v5040_v0  }
  0xa3   :  { %2094 = vmatpush1.bf16.msra.mxu0 %v4054_v42  ;;  %v4135_v42 = vld [vmem:[%s6997_s1 + $0x308] ss:$72 sps:$4 sm:$0xff]  }
  0xa4   :  { %2147 = vmatpush1.bf16.msra.mxu1 %v4057_v43  ;;  %2095 = vmatprep.subr.bf16.mxu0 %v4062_v44  ;;  %v4140_v43 = vld [vmem:[%s6997_s1 + $0x394] ss:$72 sps:$4 sm:$0xff]  }
  0xa5   :  { %2148 = vmatprep.subr.bf16.mxu1 %v4065_v45  ;;  %v4143_v44 = vld [vmem:[%s6997_s1 + $0x39c] ss:$72 sps:$4 sm:$0xff]   ;;  %v4138_v45 = vld [vmem:[%s6997_s1 + $0x390] ss:$72 sps:$4 sm:$0xff]  }
  0xa6   :  { %2855 = vperm.xlu1 %3776, %v5061_v8  }
  0xa7   :  { %2096 = vmatpush1.bf16.msra.mxu0 %v4060_v46  ;;  %v4141_v46 = vld [vmem:[%s6997_s1 + $0x398] ss:$72 sps:$4 sm:$0xff]  }
  0xa8   :  { %2149 = vmatpush1.bf16.msra.mxu1 %v4063_v47  ;;  %2097 = vmatprep.subr.bf16.mxu0 %v4068_v49  ;;  %v4146_v47 = vld [vmem:[%s6997_s1 + $0x424] ss:$72 sps:$4 sm:$0xff]  }
  0xa9   :  { %2150 = vmatprep.subr.bf16.mxu1 %v4071_v50  ;;  %v4149_v49 = vld [vmem:[%s6997_s1 + $0x42c] ss:$72 sps:$4 sm:$0xff]   ;;  %v4413_v50 = vmov 10  }
  0xaa   :  { %3778 = vset.pattern.permute.xlu0 %v4413_v50  ;;  %3779 = vset.pattern.permute.xlu1 %v4413_v50 }
  0xab   :  { %2098 = vmatpush1.bf16.msra.mxu0 %v4066_v51  ;;  %2867 = vperm.xlu0 %3778, %v5078_v14   ;;  %v4144_v51 = vld [vmem:[%s6997_s1 + $0x420] ss:$72 sps:$4 sm:$0xff]  }
  0xac   :  { %2151 = vmatpush1.bf16.msra.mxu1 %v4069_v52  ;;  %2099 = vmatprep.subr.bf16.mxu0 %v4074_v53  ;;  %v4147_v52 = vld [vmem:[%s6997_s1 + $0x428] ss:$72 sps:$4 sm:$0xff]   ;;  %v4152_v53 = vld [vmem:[%s6997_s1 + $0x4b4] ss:$72 sps:$4 sm:$0xff]  }
  0xad   :  { %2152 = vmatprep.subr.bf16.mxu1 %v4077_v54  ;;  %v4155_v54 = vld [vmem:[%s6997_s1 + $0x4bc] ss:$72 sps:$4 sm:$0xff]   ;;  %2871 = vperm.xlu1 %3779, %v5084_v16  }
  0xaf   :  { %2100 = vmatpush1.bf16.msra.mxu0 %v4072_v55  ;;  %2879 = vperm.xlu0 %3778, %v5061_v8   ;;  %v4150_v55 = vld [vmem:[%s6997_s1 + $0x4b0] ss:$72 sps:$4 sm:$0xff]  }
  0xb0   :  { %2153 = vmatpush1.bf16.msra.mxu1 %v4075_v56  ;;  %2101 = vmatprep.subr.bf16.mxu0 %v4080_v57  ;;  %v4153_v56 = vld [vmem:[%s6997_s1 + $0x4b8] ss:$72 sps:$4 sm:$0xff]   ;;  %v4158_v57 = vld [vmem:[%s6997_s1 + $0x544] ss:$72 sps:$4 sm:$0xff]  }
  0xb1   :  { %2154 = vmatprep.subr.bf16.mxu1 %v4083_v58  ;;  %v4161_v58 = vld [vmem:[%s6997_s1 + $0x54c] ss:$72 sps:$4 sm:$0xff]   ;;  %2875 = vperm.xlu1 %3779, %v5040_v0  }
  0xb3   :  { %2102 = vmatpush1.bf16.msra.mxu0 %v4078_v59  ;;  %v4414_v59 = vmov 2  }
  0xb4   :  { %2155 = vmatpush1.bf16.msra.mxu1 %v4081_v60  ;;  %2103 = vmatprep.subr.bf16.mxu0 %v4086_v61  ;;  %v4156_v60 = vld [vmem:[%s6997_s1 + $0x540] ss:$72 sps:$4 sm:$0xff]  }
  0xb5   :  { %2156 = vmatprep.subr.bf16.mxu1 %v4089_v62  ;;  %3781 = vset.pattern.permute.xlu0 %v4414_v59  ;;  %v4159_v61 = vld [vmem:[%s6997_s1 + $0x548] ss:$72 sps:$4 sm:$0xff]   ;;  %v4164_v62 = vld [vmem:[%s6997_s1 + $0x5d4] ss:$72 sps:$4 sm:$0xff]  }
  0xb6   :  { %2919 = vperm.xlu0 %3781, %v5084_v16   ;;  %3780 = vset.pattern.permute.xlu1 %v4414_v59 }
  0xb7   :  { %2104 = vmatpush1.bf16.msra.mxu0 %v4084_v2  ;;  %v4165_v2 = vld [vmem:[%s6997_s1 + $0x5d8] ss:$72 sps:$4 sm:$0xff]   ;;  %2915 = vperm.xlu1 %3780, %v5078_v14  }
  0xb8   :  { %2157 = vmatpush1.bf16.msra.mxu1 %v4087_v4  ;;  %2105 = vmatprep.subr.bf16.mxu0 %v4092_v5  ;;  %v4170_v4 = vld [vmem:[%s6997_s1 + $0x664] ss:$72 sps:$4 sm:$0xff]  }
  0xb9   :  { %2158 = vmatprep.subr.bf16.mxu1 %v4095_v6  ;;  %v4173_v5 = vld [vmem:[%s6997_s1 + $0x66c] ss:$72 sps:$4 sm:$0xff]   ;;  %v4415_v6 = vmov 11  }
  0xba   :  { %3782 = vset.pattern.permute.xlu0 %v4415_v6 }
  0xbb   :  { %2106 = vmatpush1.bf16.msra.mxu0 %v4090_v7  ;;  %2939 = vperm.xlu0 %3782, %v5078_v14   ;;  %v4168_v7 = vld [vmem:[%s6997_s1 + $0x660] ss:$72 sps:$4 sm:$0xff]  }
  0xbc   :  { %2159 = vmatpush1.bf16.msra.mxu1 %v4093_v9  ;;  %2107 = vmatprep.subr.bf16.mxu0 %v4098_v12  ;;  %v4171_v9 = vld [vmem:[%s6997_s1 + $0x668] ss:$72 sps:$4 sm:$0xff]  }
  0xbd   :  { %2160 = vmatprep.subr.bf16.mxu1 %v4101_v13  ;;  %2923 = vperm.xlu1 %3780, %v5040_v0   ;;  %v4174_v12 = vld [vmem:[%s6997_s1 + $0x6f0] ss:$72 sps:$4 sm:$0xff]  }
  0xbe   :  { %v4177_v13 = vld [vmem:[%s6997_s1 + $0x6f8] ss:$72 sps:$4 sm:$0xff]  }
  0xbf   :  { %2108 = vmatpush1.bf16.msra.mxu0 %v4096_v15  ;;  %2951 = vperm.xlu0 %3782, %v5061_v8   ;;  %v4182_v15 = vld [vmem:[%s6997_s1 + $0x784] ss:$72 sps:$4 sm:$0xff]  }
  0xc0   :  { %2161 = vmatpush1.bf16.msra.mxu1 %v4099_v17  ;;  %2183 = vmatprep.subr.bf16.mxu0 %v4104_v18  ;;  %v4185_v17 = vld [vmem:[%s6997_s1 + $0x78c] ss:$72 sps:$4 sm:$0xff]   ;;  %v4416_v18 = vmov 3  }
  0xc1   :  { %2236 = vmatprep.subr.bf16.mxu1 %v4107_v19  ;;  %2927 = vperm.xlu1 %3780, %v5061_v8   ;;  %v4180_v19 = vld [vmem:[%s6997_s1 + $0x780] ss:$72 sps:$4 sm:$0xff]  }
  0xc2   :  { %2110 = vmatmul.mubr.bf16.vlgmr.msra.gmra.mrb[16].mxu0 %v4661_v3 }
  0xc3   :  { %2163 = vmatmul.mubr.bf16.vlgmr.msra.gmra.mrb[16].mxu1 %v4661_v3  ;;  %2184 = vmatpush1.bf16.msra.mxu0 %v4102_v21  ;;  %v4119_v3 = vld [vmem:[%s6997_s1 + $0x15c] ss:$72 sps:$4 sm:$0xff]  }
  0xc4   :  { %2237 = vmatpush1.bf16.msra.mxu1 %v4105_v22  ;;  %2185 = vmatprep.subr.bf16.mxu0 %v4110_v23  ;;  %v4188_v21 = vld [vmem:[%s6997_s1 + $0x814] ss:$72 sps:$4 sm:$0xff]   ;;  %v4186_v23 = vld [vmem:[%s6997_s1 + $0x810] ss:$72 sps:$4 sm:$0xff]  }
  0xc5   :  { %2238 = vmatprep.subr.bf16.mxu1 %v4113_v24  ;;  %2119 = vmatprep.mubr.bf16.mxu0 %v4731_v25  ;;  %v4191_v22 = vld [vmem:[%s6997_s1 + $0x81c] ss:$72 sps:$4 sm:$0xff]   ;;  %v4189_v24 = vld [vmem:[%s6997_s1 + $0x818] ss:$72 sps:$4 sm:$0xff]  }
  0xc6   :  { %2172 = vmatprep.mubr.bf16.mxu1 %v4731_v25  ;;  %v4125_v25 = vld [vmem:[%s6997_s1 + $0x1ec] ss:$72 sps:$4 sm:$0xff]   ;;  %3785 = vset.pattern.permute.xlu0 %v4416_v18 }
  0xc7   :  { %2186 = vmatpush1.bf16.msra.mxu0 %v4108_v26  ;;  %3783 = vset.pattern.permute.xlu1 %v4415_v6  ;;  %v4194_v26 = vld [vmem:[%s6997_s1 + $0x8a4] ss:$72 sps:$4 sm:$0xff]   ;;  %v4216_v6 = vld [vmem:[%s6997_s1 + $0x3a0] ss:$72 sps:$4 sm:$0xff]  }
  0xc8   :  { %2239 = vmatpush1.bf16.msra.mxu1 %v4111_v28  ;;  %2187 = vmatprep.subr.bf16.mxu0 %v4116_v29  ;;  %v4197_v28 = vld [vmem:[%s6997_s1 + $0x8ac] ss:$72 sps:$4 sm:$0xff]   ;;  %v4417_v29 = vmov 12  }
  0xc9   :  { %2240 = vmatprep.subr.bf16.mxu1 %v4119_v3  ;;  %2991 = vperm.xlu0 %3785, %v5084_v16   ;;  %v4192_v3 = vld [vmem:[%s6997_s1 + $0x8a0] ss:$72 sps:$4 sm:$0xff]  }
  0xca   :  { %2120 = vmatmul.mubr.bf16.gmra.mrb[20].mxu0 %v4739_v27  ;;  %2943 = vperm.xlu1 %3783, %v5084_v16  }
  0xcb   :  { %2173 = vmatmul.mubr.bf16.gmra.mrb[20].mxu1 %v4739_v27  ;;  %2188 = vmatpush1.bf16.msra.mxu0 %v4114_v48  ;;  %v4131_v27 = vld [vmem:[%s6997_s1 + $0x27c] ss:$72 sps:$4 sm:$0xff]   ;;  %v4195_v48 = vld [vmem:[%s6997_s1 + $0x8a8] ss:$72 sps:$4 sm:$0xff]  }
  0xcc   :  { %2241 = vmatpush1.bf16.msra.mxu1 %v4117_v30  ;;  %2189 = vmatprep.subr.bf16.mxu0 %v4122_v31  ;;  %v4200_v30 = vld [vmem:[%s6997_s1 + $0x44] ss:$72 sps:$4 sm:$0xff]   ;;  %v4198_v31 = vld [vmem:[%s6997_s1 + $0x40] ss:$72 sps:$4 sm:$0xff]  }
  0xcd   :  { %2242 = vmatprep.subr.bf16.mxu1 %v4125_v25  ;;  %2215 = vmatprep.mubr.bf16.mxu0 %v5157_v35  ;;  %v4203_v25 = vld [vmem:[%s6997_s1 + $0xd4] ss:$72 sps:$4 sm:$0xff]  }
  0xce   :  { %2268 = vmatprep.mubr.bf16.mxu1 %v5157_v35  ;;  %3786 = vset.pattern.permute.xlu0 %v4417_v29 }
  0xcf   :  { %2190 = vmatpush1.bf16.msra.mxu0 %v4120_v32  ;;  %2947 = vperm.xlu1 %3783, %v5040_v0   ;;  %v5333_v32 = vld [vmem:[%s6998_s0] ss:$8 sps:$4 sm:$0xff]  }
  0xd0   :  { %2243 = vmatpush1.bf16.msra.mxu1 %v4123_v33  ;;  %2191 = vmatprep.subr.bf16.mxu0 %v4128_v34  ;;  %v4201_v33 = vld [vmem:[%s6997_s1 + $0xd0] ss:$72 sps:$4 sm:$0xff]   ;;  %v4206_v34 = vld [vmem:[%s6997_s1 + $0x164] ss:$72 sps:$4 sm:$0xff]  }
  0xd1   :  { %2244 = vmatprep.subr.bf16.mxu1 %v4131_v27  ;;  %3011 = vperm.xlu0 %3786, %v5078_v14   ;;  %v4408_v27 = vld [vmem:[%s6998_s0 + $0x14] ss:$8 sps:$4 sm:$0xff]  }
  0xd3   :  { %2192 = vmatpush1.bf16.msra.mxu0 %v4126_v37  ;;  %3784 = vset.pattern.permute.xlu1 %v4416_v18  ;;  %v4418_v37 = vmov 4  }
  0xd4   :  { %2245 = vmatpush1.bf16.msra.mxu1 %v4129_v38  ;;  %2193 = vmatprep.subr.bf16.mxu0 %v4134_v39  ;;  %v4204_v38 = vld [vmem:[%s6997_s1 + $0x160] ss:$72 sps:$4 sm:$0xff]   ;;  %v4209_v39 = vld [vmem:[%s6997_s1 + $0x1f4] ss:$72 sps:$4 sm:$0xff]  }
  0xd5   :  { %2246 = vmatprep.subr.bf16.mxu1 %v4137_v40  ;;  %3023 = vperm.xlu0 %3786, %v5061_v8   ;;  %v5358_v40 = vld [vmem:[%s6998_s0 + $0x10] ss:$8 sps:$4 sm:$0xff]  }
  0xd6   :  { %2987 = vperm.xlu1 %3784, %v5078_v14  }
  0xd7   :  { %2194 = vmatpush1.bf16.msra.mxu0 %v4132_v41  ;;  %v5362_v41 = vshrl.u32 %v315_v36, 7  ;;  %v4230_v36 = vld [vmem:[%s6997_s1 + $0x5e4] ss:$72 sps:$4 sm:$0xff]  }
  0xd8   :  { %2247 = vmatpush1.bf16.msra.mxu1 %v4135_v42  ;;  %2195 = vmatprep.subr.bf16.mxu0 %v4140_v43  ;;  %v4207_v42 = vld [vmem:[%s6997_s1 + $0x1f0] ss:$72 sps:$4 sm:$0xff]   ;;  %v4212_v43 = vld [vmem:[%s6997_s1 + $0x284] ss:$72 sps:$4 sm:$0xff]  }
  0xd9   :  { %2248 = vmatprep.subr.bf16.mxu1 %v4143_v44  ;;  %3789 = vset.pattern.permute.xlu0 %v4418_v37  ;;  %v5372_v44 = vsub.s32 0, %v5362_v41  ;;  %v7006_v50 = vsub.s32 3, %v5362_v41 }
  0xda   :  { %2995 = vperm.xlu1 %3784, %v5040_v0   ;;  %3063 = vperm.xlu0 %3789, %v5084_v16  }
  0xdb   :  { %2196 = vmatpush1.bf16.msra.mxu0 %v4138_v45  ;;  %v7007_v45 = vsub.s32 2, %v5362_v41 }
  0xdc   :  { %2249 = vmatpush1.bf16.msra.mxu1 %v4141_v46  ;;  %2197 = vmatprep.subr.bf16.mxu0 %v4146_v47  ;;  %v4419_v46 = vmov 13   ;;  %v4210_v47 = vld [vmem:[%s6997_s1 + $0x280] ss:$72 sps:$4 sm:$0xff]  }
  0xdd   :  { %2250 = vmatprep.subr.bf16.mxu1 %v4149_v49  ;;  %v5386_v49 = vsub.s32 1, %v5362_v41 }
  0xde   :  { %2999 = vperm.xlu1 %3784, %v5061_v8   ;;  %3790 = vset.pattern.permute.xlu0 %v4419_v46 }
  0xdf   :  { %2198 = vmatpush1.bf16.msra.mxu0 %v4144_v51  ;;  %v4215_v51 = vld [vmem:[%s6997_s1 + $0x314] ss:$72 sps:$4 sm:$0xff]   ;;  %3083 = vperm.xlu0 %3790, %v5078_v14  }
  0xe0   :  { %2251 = vmatpush1.bf16.msra.mxu1 %v4147_v52  ;;  %2199 = vmatprep.subr.bf16.mxu0 %v4152_v53 }
  0xe1   :  { %2252 = vmatprep.subr.bf16.mxu1 %v4155_v54 }
  0xe2   :  { %3787 = vset.pattern.permute.xlu1 %v4417_v29 }
  0xe3   :  { %2200 = vmatpush1.bf16.msra.mxu0 %v4150_v55  ;;  %3015 = vperm.xlu1 %3787, %v5084_v16  }
  0xe4   :  { %2253 = vmatpush1.bf16.msra.mxu1 %v4153_v56  ;;  %2201 = vmatprep.subr.bf16.mxu0 %v4158_v57  ;;  %v4213_v56 = vld [vmem:[%s6997_s1 + $0x310] ss:$72 sps:$4 sm:$0xff]   ;;  %v4218_v57 = vld [vmem:[%s6997_s1 + $0x3a4] ss:$72 sps:$4 sm:$0xff]  }
  0xe5   :  { %2254 = vmatprep.subr.bf16.mxu1 %v4161_v58  ;;  %3095 = vperm.xlu0 %3790, %v5061_v8  }
  0xe7   :  { %2202 = vmatpush1.bf16.msra.mxu0 %v4156_v60  ;;  %3019 = vperm.xlu1 %3787, %v5040_v0  }
  0xe8   :  { %2255 = vmatpush1.bf16.msra.mxu1 %v4159_v61  ;;  %2203 = vmatprep.subr.bf16.mxu0 %v4164_v62 }
  0xe9   :  { %2256 = vmatprep.subr.bf16.mxu1 %v4167_v63 }
  0xeb   :  { %2204 = vmatpush1.bf16.msra.mxu0 %v4162_v1  ;;  %3788 = vset.pattern.permute.xlu1 %v4418_v37  ;;  %v4228_v37 = vld [vmem:[%s6997_s1 + $0x5e0] ss:$72 sps:$4 sm:$0xff]  }
  0xec   :  { %2257 = vmatpush1.bf16.msra.mxu1 %v4165_v2  ;;  %2205 = vmatprep.subr.bf16.mxu0 %v4170_v4 }
  0xed   :  { %2258 = vmatprep.subr.bf16.mxu1 %v4173_v5  ;;  %3059 = vperm.xlu1 %3788, %v5078_v14  }
  0xef   :  { %2206 = vmatpush1.bf16.msra.mxu0 %v4168_v7 }
  0xf0   :  { %2259 = vmatpush1.bf16.msra.mxu1 %v4171_v9  ;;  %2207 = vmatprep.subr.bf16.mxu0 %v4176_v10 }
  0xf1   :  { %2260 = vmatprep.subr.bf16.mxu1 %v4179_v11  ;;  %3067 = vperm.xlu1 %3788, %v5040_v0  }
  0xf3   :  { %2208 = vmatpush1.bf16.msra.mxu0 %v4174_v12 }
  0xf4   :  { %2261 = vmatpush1.bf16.msra.mxu1 %v4177_v13  ;;  %2209 = vmatprep.subr.bf16.mxu0 %v4182_v15  ;;  %v4221_v15 = vld [vmem:[%s6997_s1 + $0x434] ss:$72 sps:$4 sm:$0xff]  }
  0xf5   :  { %2262 = vmatprep.subr.bf16.mxu1 %v4185_v17  ;;  %3071 = vperm.xlu1 %3788, %v5061_v8  }
  0xf7   :  { %2210 = vmatpush1.bf16.msra.mxu0 %v4180_v19 }
  0xf8   :  { %2263 = vmatpush1.bf16.msra.mxu1 %v4183_v20  ;;  %2211 = vmatprep.subr.bf16.mxu0 %v4188_v21  ;;  %v4420_v21 = vmov 5  }
  0xf9   :  { %2264 = vmatprep.subr.bf16.mxu1 %v4191_v22  ;;  %3793 = vset.pattern.permute.xlu0 %v4420_v21 }
  0xfa   :  { %3135 = vperm.xlu0 %3793, %v5084_v16   ;;  %3791 = vset.pattern.permute.xlu1 %v4419_v46  ;;  %v4236_v46 = vld [vmem:[%s6997_s1 + $0x704] ss:$72 sps:$4 sm:$0xff]  }
  0xfb   :  { %2212 = vmatpush1.bf16.msra.mxu0 %v4186_v23  ;;  %3087 = vperm.xlu1 %3791, %v5084_v16  }
  0xfc   :  { %2265 = vmatpush1.bf16.msra.mxu1 %v4189_v24  ;;  %2213 = vmatprep.subr.bf16.mxu0 %v4194_v26 }
  0xfd   :  { %2266 = vmatprep.subr.bf16.mxu1 %v4197_v28 }
  0xff   :  { %2214 = vmatpush1.bf16.msra.mxu0 %v4192_v3  ;;  %v4219_v3 = vld [vmem:[%s6997_s1 + $0x430] ss:$72 sps:$4 sm:$0xff]   ;;  %3091 = vperm.xlu1 %3791, %v5040_v0  }
 0x100   :  { %2267 = vmatpush1.bf16.msra.mxu1 %v4195_v48  ;;  %2289 = vmatprep.subr.bf16.mxu0 %v4200_v30 }
 0x101   :  { %3722 = vmatprep.subr.bf16.mxu1 %v4200_v30  ;;  %v4224_v30 = vld [vmem:[%s6997_s1 + $0x4c4] ss:$72 sps:$4 sm:$0xff]  }
 0x102   :  { %2216 = vmatmul.mubr.bf16.vlgmr.msra.gmra.mrb[24].mxu0 %v5333_v32 }
 0x103   :  { %2269 = vmatmul.mubr.bf16.vlgmr.msra.gmra.mrb[24].mxu1 %v5333_v32  ;;  %2290 = vmatpush1.bf16.msra.mxu0 %v4198_v31 }
 0x104   :  { %3738 = vmatpush1.bf16.msra.mxu1 %v4198_v31  ;;  %2291 = vmatprep.subr.bf16.mxu0 %v4203_v25 }
 0x105   :  { %3723 = vmatprep.subr.bf16.mxu1 %v4203_v25  ;;  %2225 = vmatprep.mubr.bf16.mxu0 %v4408_v27  ;;  %v4421_v25 = vmov 14  }
 0x106   :  { %2278 = vmatprep.mubr.bf16.mxu1 %v4408_v27  ;;  %3794 = vset.pattern.permute.xlu0 %v4421_v25 }
 0x107   :  { %2292 = vmatpush1.bf16.msra.mxu0 %v4201_v33  ;;  %3155 = vperm.xlu0 %3794, %v5078_v14  }
 0x108   :  { %3739 = vmatpush1.bf16.msra.mxu1 %v4201_v33  ;;  %2293 = vmatprep.subr.bf16.mxu0 %v4206_v34  ;;  %v4222_v33 = vld [vmem:[%s6997_s1 + $0x4c0] ss:$72 sps:$4 sm:$0xff]  }
 0x109   :  { %3724 = vmatprep.subr.bf16.mxu1 %v4206_v34  ;;  %v4227_v34 = vld [vmem:[%s6997_s1 + $0x554] ss:$72 sps:$4 sm:$0xff]   ;;  %3792 = vset.pattern.permute.xlu1 %v4420_v21  ;;  %v4243_v21 = vld [vmem:[%s6997_s1 + $0x8b0] ss:$72 sps:$4 sm:$0xff]  }
 0x10a   :  { %2226 = vmatmul.mubr.bf16.gmra.mrb[28].mxu0 %v5358_v40  ;;  %3131 = vperm.xlu1 %3792, %v5078_v14  }
 0x10b   :  { %2279 = vmatmul.mubr.bf16.gmra.mrb[28].mxu1 %v5358_v40  ;;  %2294 = vmatpush1.bf16.msra.mxu0 %v4204_v38 }
 0x10c   :  { %3740 = vmatpush1.bf16.msra.mxu1 %v4204_v38  ;;  %2295 = vmatprep.subr.bf16.mxu0 %v4209_v39  ;;  %v4233_v38 = vld [vmem:[%s6997_s1 + $0x674] ss:$72 sps:$4 sm:$0xff]  }
 0x10d   :  { %3725 = vmatprep.subr.bf16.mxu1 %v4209_v39  ;;  %2321 = vmatprep.mubr.bf16.mxu0 %v5157_v35  ;;  %v5383_v35 = vld [vmem:[%s7000_s2] sm:$0xff] }
 0x10e   :  { %2331 = vmatprep.mubr.bf16.mxu1 %v4408_v27  ;;  %v5395_v52 = vrot.slane %v5383_v35, %v5372_v44  ;;  %v5400_v53 = vrot.slane %v5383_v35, %v7007_v45  ;;  %v5405_v54 = vrot.slane %v5383_v35, %v5386_v49  ;;  %v5410_v55 = vrot.slane %v5383_v35, %v7006_v50  ;;  %v4225_v27 = vld [vmem:[%s6997_s1 + $0x550] ss:$72 sps:$4 sm:$0xff]  }
 0x10f   :  { %2296 = vmatpush1.bf16.msra.mxu0 %v4207_v42  ;;  %3167 = vperm.xlu0 %3794, %v5061_v8  }
 0x110   :  { %3741 = vmatpush1.bf16.msra.mxu1 %v4207_v42  ;;  %2297 = vmatprep.subr.bf16.mxu0 %v4212_v43 }
 0x111   :  { %3726 = vmatprep.subr.bf16.mxu1 %v4212_v43  ;;  %v4422_v43 = vmov 6   ;;  %3139 = vperm.xlu1 %3792, %v5040_v0  }
 0x113   :  { %2298 = vmatpush1.bf16.msra.mxu0 %v4210_v47  ;;  %3797 = vset.pattern.permute.xlu0 %v4422_v43 }
 0x114   :  { %3742 = vmatpush1.bf16.msra.mxu1 %v4210_v47  ;;  %2299 = vmatprep.subr.bf16.mxu0 %v4215_v51 }
 0x115   :  { %3727 = vmatprep.subr.bf16.mxu1 %v4215_v51  ;;  %v1899_v58 = vpop.f32.mrb[0].mxu0  ;;  %3207 = vperm.xlu0 %3797, %v5084_v16  }
 0x116   :  { %v1952_v59 = vpop.f32.mrb[0].mxu1  ;;  %v1900_v60 = vadd.f32 %v1899_v58, %v5395_v52  ;;  %v1901_v62 = vpop.f32.mrb[1].mxu0  ;;  %v4231_v58 = vld [vmem:[%s6997_s1 + $0x670] ss:$72 sps:$4 sm:$0xff]   ;;  %3143 = vperm.xlu1 %3792, %v5061_v8  }
 0x117   :  { %v1953_v61 = vadd.f32 %v1952_v59, %v5400_v53  ;;  %v1954_v63 = vpop.f32.mrb[1].mxu1  ;;  %v1902_v1 = vadd.f32 %v1901_v62, %v5405_v54  ;;  %v1903_v4 = vpop.f32.mrb[2].mxu0  ;;  %2300 = vmatpush1.bf16.msra.mxu0 %v4213_v56 }
 0x118   :  { %v1955_v2 = vadd.f32 %v1954_v63, %v5410_v55  ;;  %v1956_v5 = vpop.f32.mrb[2].mxu1  ;;  %3743 = vmatpush1.bf16.msra.mxu1 %v4213_v56  ;;  %v5427_v7 = vmul.f32 0.25, %v1900_v60  ;;  %v1904_v10 = vadd.f32 %v1903_v4, %v5395_v52  ;;  %v1905_v12 = vpop.f32.mrb[3].mxu0  ;;  %2301 = vmatprep.subr.bf16.mxu0 %v4218_v57 }
 0x119   :  { %v5429_v9 = vmul.f32 0.25, %v1953_v61  ;;  %v1957_v11 = vadd.f32 %v1956_v5, %v5400_v53  ;;  %v1958_v13 = vpop.f32.mrb[3].mxu1  ;;  %3728 = vmatprep.subr.bf16.mxu1 %v4218_v57  ;;  %v5436_v17 = vmul.f32 0.25, %v1902_v1  ;;  %v1906_v19 = vadd.f32 %v1905_v12, %v5405_v54 }
 0x11a   :  { %7154 = vst [vmem:[#allocation2_spill] sm:$0xff] %v5427_v7  ;;  %v5438_v18 = vmul.f32 0.25, %v1955_v2  ;;  %v1959_v20 = vadd.f32 %v1958_v13, %v5410_v55  ;;  %v5446_v23 = vmul.f32 0.25, %v1904_v10  ;;  %3795 = vset.pattern.permute.xlu1 %v4421_v25  ;;  %v7004_v25 = vsub.s32 6, %v5362_v41 }
 0x11b   :  { %7155 = vst [vmem:[#allocation3_spill] sm:$0xff] %v5429_v9  ;;  %7156 = vst [vmem:[#allocation4_spill] sm:$0xff] %v5436_v17  ;;  %v2422_v22 = vmax.f32 %v5427_v7, %v5429_v9  ;;  %v5448_v24 = vmul.f32 0.25, %v1957_v11  ;;  %v5453_v28 = vmul.f32 0.25, %v1906_v19  ;;  %2302 = vmatpush1.bf16.msra.mxu0 %v4216_v6  ;;  %3159 = vperm.xlu1 %3795, %v5084_v16  }
 0x11c   :  { %7157 = vst [vmem:[#allocation5_spill] sm:$0xff] %v5438_v18  ;;  %v2423_v26 = vmax.f32 %v5436_v17, %v5438_v18  ;;  %v5455_v29 = vmul.f32 0.25, %v1959_v20  ;;  %3744 = vmatpush1.bf16.msra.mxu1 %v4216_v6  ;;  %2303 = vmatprep.subr.bf16.mxu0 %v4221_v15 }
 0x11d   :  { %v2424_v48 = vmax.f32 %v5446_v23, %v5448_v24  ;;  %3729 = vmatprep.subr.bf16.mxu1 %v4221_v15  ;;  %v1909_v39 = vpop.f32.mrb[4].mxu0 }
 0x11e   :  { %v2425_v31 = vmax.f32 %v5453_v28, %v5455_v29  ;;  %v1962_v42 = vpop.f32.mrb[4].mxu1  ;;  %v1910_v47 = vadd.f32 %v1909_v39, %v5395_v52  ;;  %v1911_v56 = vpop.f32.mrb[5].mxu0  ;;  %v4424_v39 = vmov 7  }
 0x11f   :  { %2304 = vmatpush1.bf16.msra.mxu0 %v4219_v3  ;;  %v1963_v51 = vadd.f32 %v1962_v42, %v5400_v53  ;;  %v1964_v57 = vpop.f32.mrb[5].mxu1  ;;  %v1912_v59 = vadd.f32 %v1911_v56, %v5405_v54  ;;  %v1913_v61 = vpop.f32.mrb[6].mxu0  ;;  %v4425_v42 = vmov 16   ;;  %3163 = vperm.xlu1 %3795, %v5040_v0   ;;  %v7002_v56 = vsub.s32 7, %v5362_v41 }
 0x120   :  { %3745 = vmatpush1.bf16.msra.mxu1 %v4219_v3  ;;  %2305 = vmatprep.subr.bf16.mxu0 %v4224_v30  ;;  %v1965_v60 = vadd.f32 %v1964_v57, %v5410_v55  ;;  %v1966_v62 = vpop.f32.mrb[6].mxu1  ;;  %v5505_v63 = vmul.f32 0.25, %v1910_v47  ;;  %v1914_v2 = vadd.f32 %v1913_v61, %v5395_v52  ;;  %v1915_v5 = vpop.f32.mrb[7].mxu0  ;;  %v7009_v47 = vmov 8  }
 0x121   :  { %3730 = vmatprep.subr.bf16.mxu1 %v4224_v30  ;;  %v5507_v1 = vmul.f32 0.25, %v1963_v51  ;;  %v1967_v4 = vadd.f32 %v1966_v62, %v5400_v53  ;;  %v1968_v6 = vpop.f32.mrb[7].mxu1  ;;  %v5511_v10 = vmul.f32 0.25, %v1912_v59  ;;  %v1916_v12 = vadd.f32 %v1915_v5, %v5405_v54  ;;  %v4234_v54 = vld [vmem:[%s6997_s1 + $0x700] ss:$72 sps:$4 sm:$0xff]  }
 0x122   :  { %7158 = vst [vmem:[#allocation6_spill] sm:$0xff] %v5505_v63  ;;  %v5513_v11 = vmul.f32 0.25, %v1965_v60  ;;  %v1969_v13 = vadd.f32 %v1968_v6, %v5410_v55  ;;  %v5520_v19 = vmul.f32 0.25, %v1914_v2  ;;  %v4423_v53 = vmov 15   ;;  %v4239_v30 = vld [vmem:[%s6997_s1 + $0x794] ss:$72 sps:$4 sm:$0xff]  }
 0x123   :  { %2306 = vmatpush1.bf16.msra.mxu0 %v4222_v33  ;;  %7159 = vst [vmem:[#allocation7_spill] sm:$0xff] %v5507_v1  ;;  %7160 = vst [vmem:[#allocation8_spill] sm:$0xff] %v5511_v10  ;;  %v2426_v15 = vmax.f32 %v5505_v63, %v5507_v1  ;;  %v5522_v52 = vmul.f32 0.25, %v1967_v4  ;;  %3798 = vset.pattern.permute.xlu0 %v4423_v53  ;;  %v5530_v20 = vmul.f32 0.25, %v1916_v12  ;;  %v7003_v51 = vsub.s32 5, %v5362_v41 }
 0x124   :  { %3746 = vmatpush1.bf16.msra.mxu1 %v4222_v33  ;;  %2307 = vmatprep.subr.bf16.mxu0 %v4227_v34  ;;  %7161 = vst [vmem:[#allocation9_spill] sm:$0xff] %v5513_v11  ;;  %v2427_v55 = vmax.f32 %v5511_v10, %v5513_v11  ;;  %v5532_v3 = vmul.f32 0.25, %v1969_v13  ;;  %v342_v57 = vrot.slane %v5383_v35, %v7004_v25 }
 0x125   :  { %3731 = vmatprep.subr.bf16.mxu1 %v4227_v34  ;;  %v2428_v33 = vmax.f32 %v5520_v19, %v5522_v52  ;;  %3227 = vperm.xlu0 %3798, %v5078_v14   ;;  %v346_v59 = vrot.slane %v5383_v35, %v7002_v56 }
 0x126   :  { %v2429_v34 = vmax.f32 %v5530_v20, %v5532_v3  ;;  %3796 = vset.pattern.permute.xlu1 %v4422_v43 }
 0x127   :  { %2308 = vmatpush1.bf16.msra.mxu0 %v4225_v27  ;;  %3203 = vperm.xlu1 %3796, %v5078_v14  }
 0x128   :  { %3747 = vmatpush1.bf16.msra.mxu1 %v4225_v27  ;;  %2309 = vmatprep.subr.bf16.mxu0 %v4230_v36  ;;  %v4237_v27 = vld [vmem:[%s6997_s1 + $0x790] ss:$72 sps:$4 sm:$0xff]  }
 0x129   :  { %3732 = vmatprep.subr.bf16.mxu1 %v4230_v36  ;;  %v4242_v36 = vld [vmem:[%s6997_s1 + $0x824] ss:$72 sps:$4 sm:$0xff]   ;;  %3239 = vperm.xlu0 %3798, %v5061_v8  }
 0x12b   :  { %2310 = vmatpush1.bf16.msra.mxu0 %v4228_v37  ;;  %3211 = vperm.xlu1 %3796, %v5040_v0  }
 0x12c   :  { %3748 = vmatpush1.bf16.msra.mxu1 %v4228_v37  ;;  %2311 = vmatprep.subr.bf16.mxu0 %v4233_v38  ;;  %v4240_v37 = vld [vmem:[%s6997_s1 + $0x820] ss:$72 sps:$4 sm:$0xff]  }
 0x12d   :  { %3733 = vmatprep.subr.bf16.mxu1 %v4233_v38  ;;  %v4245_v38 = vld [vmem:[%s6997_s1 + $0x8b4] ss:$72 sps:$4 sm:$0xff]   ;;  %3801 = vset.pattern.permute.xlu0 %v4424_v39 }
 0x12e   :  { %3279 = vperm.xlu0 %3801, %v5084_v16  }
 0x12f   :  { %2312 = vmatpush1.bf16.msra.mxu0 %v4231_v58  ;;  %3215 = vperm.xlu1 %3796, %v5061_v8  }
 0x130   :  { %3749 = vmatpush1.bf16.msra.mxu1 %v4231_v58  ;;  %2313 = vmatprep.subr.bf16.mxu0 %v4236_v46  ;;  %v338_v58 = vrot.slane %v5383_v35, %v7003_v51 }
 0x131   :  { %3734 = vmatprep.subr.bf16.mxu1 %v4236_v46 }
 0x132   :  { %3802 = vset.pattern.permute.xlu0 %v4425_v42 }
 0x133   :  { %2314 = vmatpush1.bf16.msra.mxu0 %v4234_v54  ;;  %3299 = vperm.xlu0 %3802, %v5078_v14  }
 0x134   :  { %3750 = vmatpush1.bf16.msra.mxu1 %v4234_v54  ;;  %2315 = vmatprep.subr.bf16.mxu0 %v4239_v30 }
 0x135   :  { %3735 = vmatprep.subr.bf16.mxu1 %v4239_v30  ;;  %3799 = vset.pattern.permute.xlu1 %v4423_v53 }
 0x136   :  { %3231 = vperm.xlu1 %3799, %v5084_v16  }
 0x137   :  { %2316 = vmatpush1.bf16.msra.mxu0 %v4237_v27  ;;  %3311 = vperm.xlu0 %3802, %v5061_v8  }
 0x138   :  { %3751 = vmatpush1.bf16.msra.mxu1 %v4237_v27  ;;  %2317 = vmatprep.subr.bf16.mxu0 %v4242_v36 }
 0x139   :  { %3736 = vmatprep.subr.bf16.mxu1 %v4242_v36 }
 0x13a   :  { %3235 = vperm.xlu1 %3799, %v5040_v0  }
 0x13b   :  { %2318 = vmatpush1.bf16.msra.mxu0 %v4240_v37  ;;  %3805 = vset.pattern.permute.xlu0 %v7009_v47 }
 0x13c   :  { %3752 = vmatpush1.bf16.msra.mxu1 %v4240_v37  ;;  %2319 = vmatprep.subr.bf16.mxu0 %v4245_v38 }
 0x13d   :  { %3737 = vmatprep.subr.bf16.mxu1 %v4245_v38  ;;  %3351 = vperm.xlu0 %3805, %v5084_v16  }
 0x13e   :  { %3800 = vset.pattern.permute.xlu1 %v4424_v39 }
 0x13f   :  { %2320 = vmatpush1.bf16.msra.mxu0 %v4243_v21  ;;  %3275 = vperm.xlu1 %3800, %v5078_v14  }
 0x140   :  { %3753 = vmatpush1.bf16.msra.mxu1 %v4243_v21 }
 0x142   :  { %2322 = vmatmul.mubr.bf16.vlgmr.msra.gmra.mrb[32].mxu0 %v5333_v32  ;;  %v7008_v32 = vmov 17  }
 0x143   :  { %2332 = vmatmul.mubr.bf16.vlgmr.msra.gmra.mrb[32].mxu1 %v5358_v40  ;;  %3806 = vset.pattern.permute.xlu0 %v7008_v32  ;;  %v7005_v40 = vsub.s32 4, %v5362_v41 }
 0x144   :  { %3371 = vperm.xlu0 %3806, %v5078_v14   ;;  %3283 = vperm.xlu1 %3800, %v5040_v0  }
 0x145   :  { %v334_v43 = vrot.slane %v5383_v35, %v7005_v40 }
 0x148   :  { %3383 = vperm.xlu0 %3806, %v5061_v8   ;;  %3287 = vperm.xlu1 %3800, %v5061_v8  }
 0x14c   :  { %3803 = vset.pattern.permute.xlu1 %v4425_v42  ;;  %v5716_v42 = vld [vmem:[%s7000_s2 + $0x8] sm:$0xff] }
 0x14d   :  { %3303 = vperm.xlu1 %3803, %v5084_v16  }
 0x151   :  { %3307 = vperm.xlu1 %3803, %v5040_v0  }
 0x155   :  { %v2005_v60 = vpop.f32.mrb[8].mxu0 }
 0x156   :  { %v2058_v61 = vpop.f32.mrb[8].mxu1  ;;  %v2006_v62 = vadd.f32 %v2005_v60, %v334_v43  ;;  %v2007_v2 = vpop.f32.mrb[9].mxu0 }
 0x157   :  { %v2059_v46 = vadd.f32 %v2058_v61, %v342_v57  ;;  %v2060_v4 = vpop.f32.mrb[9].mxu1  ;;  %v2008_v5 = vadd.f32 %v2007_v2, %v338_v58  ;;  %v2009_v12 = vpop.f32.mrb[10].mxu0 }
 0x158   :  { %v2061_v6 = vadd.f32 %v2060_v4, %v346_v59  ;;  %v2062_v13 = vpop.f32.mrb[10].mxu1  ;;  %v5598_v54 = vmul.f32 0.25, %v2006_v62  ;;  %v2010_v27 = vadd.f32 %v2009_v12, %v334_v43  ;;  %v2011_v37 = vpop.f32.mrb[11].mxu0 }
 0x159   :  { %v5600_v30 = vmul.f32 0.25, %v2059_v46  ;;  %v2063_v36 = vadd.f32 %v2062_v13, %v342_v57  ;;  %v2064_v35 = vpop.f32.mrb[11].mxu1  ;;  %v5602_v38 = vmul.f32 0.25, %v2008_v5  ;;  %v2012_v21 = vadd.f32 %v2011_v37, %v338_v58 }
 0x15a   :  { %7162 = vst [vmem:[#allocation10_spill] sm:$0xff] %v5598_v54  ;;  %v2065_v56 = vadd.f32 %v2064_v35, %v346_v59  ;;  %v5609_v60 = vmax.f32 %v2422_v22, %v5598_v54  ;;  %v5611_v61 = vmul.f32 0.25, %v2010_v27  ;;  %v5620_v46 = vmul.f32 0.25, %v2061_v6 }
 0x15b   :  { %7163 = vst [vmem:[#allocation11_spill] sm:$0xff] %v5600_v30  ;;  %7164 = vst [vmem:[#allocation12_spill] sm:$0xff] %v5602_v38  ;;  %v5618_v62 = vmax.f32 %v2423_v26, %v5602_v38  ;;  %v5622_v2 = vmul.f32 0.25, %v2012_v21  ;;  %v5632_v4 = vmul.f32 0.25, %v2063_v36 }
 0x15c   :  { %7165 = vst [vmem:[#allocation13_spill] sm:$0xff] %v5620_v46  ;;  %v5630_v22 = vmax.f32 %v2424_v48, %v5611_v61  ;;  %v5642_v6 = vmul.f32 0.25, %v2065_v56 }
 0x15d   :  { %v5640_v26 = vmax.f32 %v2425_v31, %v5622_v2  ;;  %v2015_v12 = vpop.f32.mrb[12].mxu0 }
 0x15e   :  { %v2068_v13 = vpop.f32.mrb[12].mxu1  ;;  %v2016_v48 = vadd.f32 %v2015_v12, %v334_v43  ;;  %v2017_v37 = vpop.f32.mrb[13].mxu0 }
 0x15f   :  { %v2069_v36 = vadd.f32 %v2068_v13, %v342_v57  ;;  %v2070_v35 = vpop.f32.mrb[13].mxu1  ;;  %v2018_v51 = vadd.f32 %v2017_v37, %v338_v58  ;;  %v2019_v25 = vpop.f32.mrb[14].mxu0 }
 0x160   :  { %v2071_v31 = vadd.f32 %v2070_v35, %v346_v59  ;;  %v2072_v40 = vpop.f32.mrb[14].mxu1  ;;  %v5649_v56 = vmul.f32 0.25, %v2016_v48  ;;  %v2020_v5 = vadd.f32 %v2019_v25, %v334_v43  ;;  %v2021_v50 = vpop.f32.mrb[15].mxu0 }
 0x161   :  { %v5651_v53 = vmul.f32 0.25, %v2069_v36  ;;  %v2073_v27 = vadd.f32 %v2072_v40, %v342_v57  ;;  %v2074_v12 = vpop.f32.mrb[15].mxu1  ;;  %v5653_v45 = vmul.f32 0.25, %v2018_v51  ;;  %v2022_v13 = vadd.f32 %v2021_v50, %v338_v58  ;;  %v5711_v58 = vpop.permute.xlu1 %2794 }
 0x162   :  { %7166 = vst [vmem:[#allocation14_spill] sm:$0xff] %v5649_v56  ;;  %v5655_v32 = vmul.f32 0.25, %v2071_v31  ;;  %v2075_v47 = vadd.f32 %v2074_v12, %v346_v59  ;;  %v5661_v37 = vmax.f32 %v2426_v15, %v5649_v56  ;;  %v5663_v48 = vmul.f32 0.25, %v2020_v5  ;;  %7172 = vst [vmem:[#allocation18_spill] sm:$0xff] %v5711_v58 }
 0x163   :  { %7167 = vst [vmem:[#allocation15_spill] sm:$0xff] %v5651_v53  ;;  %7168 = vst [vmem:[#allocation16_spill] sm:$0xff] %v5653_v45  ;;  %v5665_v25 = vmul.f32 0.25, %v2073_v27  ;;  %v5672_v50 = vmax.f32 %v2427_v55, %v5653_v45  ;;  %v5674_v40 = vmul.f32 0.25, %v2022_v13  ;;  %v7173_v59 = vsub.s32 2, %v5362_v41 }
 0x164   :  { %7169 = vst [vmem:[#allocation17_spill] sm:$0xff] %v5655_v32  ;;  %v5676_v51 = vmul.f32 0.25, %v2075_v47  ;;  %v5683_v15 = vmax.f32 %v2428_v33, %v5663_v48  ;;  %v7170_v33 = vmov 8   ;;  %v354_v5 = vrot.slane %v5716_v42, %v5386_v49 }
 0x165   :  { %v5691_v55 = vmax.f32 %v2429_v34, %v5674_v40  ;;  %3804 = vset.pattern.permute.xlu1 %v7170_v33  ;;  %v7171_v34 = vmov 17   ;;  %v5728_v27 = vpop.permute.xlu1 %2799 }
 0x166   :  { %3347 = vperm.xlu1 %3804, %v5078_v14   ;;  %v350_v14 = vrot.slane %v5716_v42, %v5372_v44  ;;  %7175 = vst [vmem:[#allocation19_spill] sm:$0xff] %v5728_v27 }
 0x16a   :  { %3355 = vperm.xlu1 %3804, %v5040_v0  }
 0x16e   :  { %3359 = vperm.xlu1 %3804, %v5061_v8   ;;  %v358_v8 = vrot.slane %v5716_v42, %v7173_v59 }
 0x172   :  { %3807 = vset.pattern.permute.xlu1 %v7171_v34 }
 0x173   :  { %3375 = vperm.xlu1 %3807, %v5084_v16   ;;  %v7174_v16 = vsub.s32 3, %v5362_v41 }
 0x177   :  { %3379 = vperm.xlu1 %3807, %v5040_v0   ;;  %v362_v0 = vrot.slane %v5716_v42, %v7174_v16 }
 0x195   :  { %v2111_v36 = vpop.f32.mrb[16].mxu0 }
 0x196   :  { %v2164_v35 = vpop.f32.mrb[16].mxu1  ;;  %v2112_v31 = vadd.f32 %v2111_v36, %v350_v14  ;;  %v2113_v13 = vpop.f32.mrb[17].mxu0  ;;  %v7179_v36 = vmax.f32 %v5609_v60, %v5600_v30  ;;  %v7182_v60 = vmax.f32 %v5630_v22, %v5632_v4 }
 0x197   :  { %v2165_v12 = vadd.f32 %v2164_v35, %v358_v8  ;;  %v2166_v33 = vpop.f32.mrb[17].mxu1  ;;  %v2114_v34 = vadd.f32 %v2113_v13, %v354_v5  ;;  %v2115_v43 = vpop.f32.mrb[18].mxu0 }
 0x198   :  { %v2167_v57 = vadd.f32 %v2166_v33, %v362_v0  ;;  %v2168_v47 = vpop.f32.mrb[18].mxu1  ;;  %v5730_v59 = vmul.f32 0.25, %v2112_v31  ;;  %v2116_v21 = vadd.f32 %v2115_v43, %v350_v14  ;;  %v2117_v38 = vpop.f32.mrb[19].mxu0  ;;  %v7180_v31 = vmax.f32 %v5618_v62, %v5620_v46 }
 0x199   :  { %v5732_v39 = vmul.f32 0.25, %v2165_v12  ;;  %v2169_v58 = vadd.f32 %v2168_v47, %v358_v8  ;;  %v2170_v16 = vpop.f32.mrb[19].mxu1  ;;  %v5734_v54 = vmul.f32 0.25, %v2114_v34  ;;  %v2118_v27 = vadd.f32 %v2117_v38, %v354_v5  ;;  %v5764_v34 = vpop.permute.xlu1 %2815 }
 0x19a   :  { %7176 = vst [vmem:[#allocation20_spill] sm:$0xff] %v5730_v59  ;;  %v2171_v18 = vadd.f32 %v2170_v16, %v362_v0  ;;  %v5740_v35 = vmax.f32 %v7179_v36, %v5730_v59  ;;  %v5742_v13 = vmul.f32 0.25, %v2116_v21  ;;  %v5750_v47 = vmul.f32 0.25, %v2167_v57  ;;  %7183 = vst [vmem:[#allocation24_spill] sm:$0xff] %v5764_v34 }
 0x19b   :  { %7177 = vst [vmem:[#allocation21_spill] sm:$0xff] %v5732_v39  ;;  %7178 = vst [vmem:[#allocation22_spill] sm:$0xff] %v5734_v54  ;;  %v5748_v43 = vmax.f32 %v7180_v31, %v5734_v54  ;;  %v5752_v12 = vmul.f32 0.25, %v2118_v27  ;;  %v5762_v21 = vmul.f32 0.25, %v2169_v58  ;;  %v7184_v57 = vmax.f32 %v5640_v26, %v5642_v6 }
 0x19c   :  { %7181 = vst [vmem:[#allocation23_spill] sm:$0xff] %v5750_v47  ;;  %v5760_v33 = vmax.f32 %v7182_v60, %v5742_v13  ;;  %v5774_v16 = vmul.f32 0.25, %v2171_v18 }
 0x19d   :  { %v5772_v27 = vmax.f32 %v7184_v57, %v5752_v12  ;;  %v2121_v36 = vpop.f32.mrb[20].mxu0 }
 0x19e   :  { %v2174_v31 = vpop.f32.mrb[20].mxu1  ;;  %v2122_v58 = vadd.f32 %v2121_v36, %v350_v14  ;;  %v2123_v60 = vpop.f32.mrb[21].mxu0 }
 0x19f   :  { %v2175_v38 = vadd.f32 %v2174_v31, %v358_v8  ;;  %v2176_v34 = vpop.f32.mrb[21].mxu1  ;;  %v2124_v54 = vadd.f32 %v2123_v60, %v354_v5  ;;  %v2125_v59 = vpop.f32.mrb[22].mxu0  ;;  %v7189_v60 = vmax.f32 %v5661_v37, %v5651_v53  ;;  %v7192_v37 = vmax.f32 %v5683_v15, %v5665_v25 }
 0x1a0   :  { %v2177_v46 = vadd.f32 %v2176_v34, %v362_v0  ;;  %v2178_v26 = vpop.f32.mrb[22].mxu1  ;;  %v5780_v57 = vmul.f32 0.25, %v2122_v58  ;;  %v2126_v18 = vadd.f32 %v2125_v59, %v350_v14  ;;  %v2127_v9 = vpop.f32.mrb[23].mxu0 }
 0x1a1   :  { %v5782_v30 = vmul.f32 0.25, %v2175_v38  ;;  %v2179_v17 = vadd.f32 %v2178_v26, %v358_v8  ;;  %v2180_v7 = vpop.f32.mrb[23].mxu1  ;;  %v5784_v22 = vmul.f32 0.25, %v2124_v54  ;;  %v2128_v36 = vadd.f32 %v2127_v9, %v354_v5  ;;  %v5796_v14 = vpop.permute.xlu1 %2819 }
 0x1a2   :  { %7185 = vst [vmem:[#allocation25_spill] sm:$0xff] %v5780_v57  ;;  %v5786_v31 = vmul.f32 0.25, %v2177_v46  ;;  %v2181_v45 = vadd.f32 %v2180_v7, %v362_v0  ;;  %v5792_v34 = vmax.f32 %v7189_v60, %v5780_v57  ;;  %v5794_v58 = vmul.f32 0.25, %v2126_v18  ;;  %7190 = vst [vmem:[#allocation29_spill] sm:$0xff] %v5796_v14 }
 0x1a3   :  { %7186 = vst [vmem:[#allocation26_spill] sm:$0xff] %v5782_v30  ;;  %7187 = vst [vmem:[#allocation27_spill] sm:$0xff] %v5784_v22  ;;  %v5798_v59 = vmul.f32 0.25, %v2179_v17  ;;  %v7191_v54 = vmax.f32 %v5672_v50, %v5655_v32  ;;  %v5806_v46 = vmul.f32 0.25, %v2128_v36  ;;  %v7193_v5 = vmax.f32 %v5691_v55, %v5676_v51 }
 0x1a4   :  { %7188 = vst [vmem:[#allocation28_spill] sm:$0xff] %v5786_v31  ;;  %v5808_v7 = vmul.f32 0.25, %v2181_v45  ;;  %v5814_v8 = vmax.f32 %v7192_v37, %v5794_v58  ;;  %v7203_v45 = vsub.s32 6, %v5362_v41  ;;  %v7204_v17 = vsub.s32 5, %v5362_v41 }
 0x1a5   :  { %v5804_v9 = vmax.f32 %v7191_v54, %v5784_v22  ;;  %v5822_v50 = vmax.f32 %v7193_v5, %v5806_v46  ;;  %v5830_v38 = vpop.permute.xlu1 %2843  ;;  %v7202_v5 = vsub.s32 4, %v5362_v41 }
 0x1a6   :  { %7194 = vst [vmem:[#allocation30_spill] sm:$0xff] %v5830_v38  ;;  %v374_v0 = vrot.slane %v5716_v42, %v7203_v45  ;;  %v370_v62 = vrot.slane %v5716_v42, %v7204_v17  ;;  %v7205_v38 = vsub.s32 7, %v5362_v41 }
 0x1a7   :  { %v366_v15 = vrot.slane %v5716_v42, %v7202_v5 }
 0x1a9   :  { %v5832_v26 = vpop.permute.xlu1 %2851 }
 0x1aa   :  { %7195 = vst [vmem:[#allocation31_spill] sm:$0xff] %v5832_v26 }
 0x1ad   :  { %v5834_v18 = vpop.permute.xlu1 %2855 }
 0x1ae   :  { %7196 = vst [vmem:[#allocation32_spill] sm:$0xff] %v5834_v18 }
 0x1b1   :  { %v5836_v36 = vpop.permute.xlu1 %2871 }
 0x1b2   :  { %7197 = vst [vmem:[#allocation33_spill] sm:$0xff] %v5836_v36 }
 0x1b5   :  { %v5838_v55 = vpop.permute.xlu1 %2875 }
 0x1b6   :  { %7198 = vst [vmem:[#allocation34_spill] sm:$0xff] %v5838_v55 }
 0x1b9   :  { %v5840_v60 = vpop.permute.xlu1 %2915 }
 0x1ba   :  { %7199 = vst [vmem:[#allocation35_spill] sm:$0xff] %v5840_v60  ;;  %v378_v60 = vrot.slane %v5716_v42, %v7205_v38 }
 0x1bd   :  { %v5842_v54 = vpop.permute.xlu1 %2923 }
 0x1be   :  { %7200 = vst [vmem:[#allocation36_spill] sm:$0xff] %v5842_v54 }
 0x1c1   :  { %v5844_v37 = vpop.permute.xlu1 %2927 }
 0x1c2   :  { %7201 = vst [vmem:[#allocation37_spill] sm:$0xff] %v5844_v37 }
 0x1c5   :  { %v5858_v26 = vpop.permute.xlu1 %2943 }
 0x1c6   :  { %7206 = vst [vmem:[#allocation38_spill] sm:$0xff] %v5858_v26 }
 0x1d5   :  { %v2217_v54 = vpop.f32.mrb[24].mxu0 }
 0x1d6   :  { %v2270_v55 = vpop.f32.mrb[24].mxu1  ;;  %v2218_v14 = vadd.f32 %v2217_v54, %v366_v15  ;;  %v2219_v37 = vpop.f32.mrb[25].mxu0 }
 0x1d7   :  { %v2271_v36 = vadd.f32 %v2270_v55, %v374_v0  ;;  %v2272_v5 = vpop.f32.mrb[25].mxu1  ;;  %v2220_v18 = vadd.f32 %v2219_v37, %v370_v62  ;;  %v2221_v57 = vpop.f32.mrb[26].mxu0  ;;  %v7209_v55 = vmax.f32 %v5740_v35, %v5732_v39  ;;  %v7214_v35 = vmax.f32 %v5760_v33, %v5762_v21 }
 0x1d8   :  { %v2273_v22 = vadd.f32 %v2272_v5, %v378_v60  ;;  %v2274_v45 = vpop.f32.mrb[26].mxu1  ;;  %v5860_v32 = vmul.f32 0.25, %v2218_v14  ;;  %v2222_v17 = vadd.f32 %v2221_v57, %v366_v15  ;;  %v2223_v56 = vpop.f32.mrb[27].mxu0  ;;  %v7211_v14 = vmax.f32 %v5748_v43, %v5750_v47 }
 0x1d9   :  { %v5862_v53 = vmul.f32 0.25, %v2271_v36  ;;  %v2275_v41 = vadd.f32 %v2274_v45, %v374_v0  ;;  %v2276_v42 = vpop.f32.mrb[27].mxu1  ;;  %v5864_v38 = vmul.f32 0.25, %v2220_v18  ;;  %v2224_v26 = vadd.f32 %v2223_v56, %v370_v62  ;;  %v5884_v56 = vpop.permute.xlu1 %2947 }
 0x1da   :  { %7207 = vst [vmem:[#allocation39_spill] sm:$0xff] %v5860_v32  ;;  %v2277_v11 = vadd.f32 %v2276_v42, %v378_v60  ;;  %v5870_v54 = vmax.f32 %v7209_v55, %v5860_v32  ;;  %v5872_v37 = vmul.f32 0.25, %v2222_v17  ;;  %v5880_v36 = vmul.f32 0.25, %v2273_v22  ;;  %7213 = vst [vmem:[#allocation43_spill] sm:$0xff] %v5884_v56 }
 0x1db   :  { %7208 = vst [vmem:[#allocation40_spill] sm:$0xff] %v5864_v38  ;;  %v5878_v57 = vmax.f32 %v7211_v14, %v5864_v38  ;;  %v5882_v18 = vmul.f32 0.25, %v2224_v26  ;;  %v5894_v17 = vmul.f32 0.25, %v2275_v41  ;;  %v7215_v22 = vmax.f32 %v5772_v27, %v5774_v16 }
 0x1dc   :  { %7210 = vst [vmem:[#allocation41_spill] sm:$0xff] %v5872_v37  ;;  %v5892_v45 = vmax.f32 %v7214_v35, %v5872_v37  ;;  %v5904_v42 = vmul.f32 0.25, %v2277_v11 }
 0x1dd   :  { %7212 = vst [vmem:[#allocation42_spill] sm:$0xff] %v5882_v18  ;;  %v5902_v26 = vmax.f32 %v7215_v22, %v5882_v18  ;;  %v2227_v55 = vpop.f32.mrb[28].mxu0 }
 0x1de   :  { %v2280_v14 = vpop.f32.mrb[28].mxu1  ;;  %v2228_v35 = vadd.f32 %v2227_v55, %v366_v15  ;;  %v2229_v5 = vpop.f32.mrb[29].mxu0 }
 0x1df   :  { %v2281_v41 = vadd.f32 %v2280_v14, %v374_v0  ;;  %v2282_v56 = vpop.f32.mrb[29].mxu1  ;;  %v2230_v38 = vadd.f32 %v2229_v5, %v370_v62  ;;  %v2231_v32 = vpop.f32.mrb[30].mxu0  ;;  %v7218_v5 = vmax.f32 %v5792_v34, %v5782_v30 }
 0x1e0   :  { %v2283_v47 = vadd.f32 %v2282_v56, %v378_v60  ;;  %v2284_v27 = vpop.f32.mrb[30].mxu1  ;;  %v5910_v22 = vmul.f32 0.25, %v2228_v35  ;;  %v2232_v11 = vadd.f32 %v2231_v32, %v366_v15  ;;  %v2233_v1 = vpop.f32.mrb[31].mxu0  ;;  %v7219_v32 = vmax.f32 %v5804_v9, %v5786_v31 }
 0x1e1   :  { %v5912_v39 = vmul.f32 0.25, %v2281_v41  ;;  %v2285_v10 = vadd.f32 %v2284_v27, %v374_v0  ;;  %v2286_v63 = vpop.f32.mrb[31].mxu1  ;;  %v5914_v33 = vmul.f32 0.25, %v2230_v38  ;;  %v2234_v55 = vadd.f32 %v2233_v1, %v370_v62 }
 0x1e2   :  { %7216 = vst [vmem:[#allocation44_spill] sm:$0xff] %v5910_v22  ;;  %v5916_v14 = vmul.f32 0.25, %v2283_v47  ;;  %v2287_v18 = vadd.f32 %v2286_v63, %v378_v60  ;;  %v2466_v56 = vmax.f32 %v7218_v5, %v5910_v22  ;;  %v5922_v43 = vmul.f32 0.25, %v2232_v11  ;;  %v5948_v60 = vpop.permute.xlu1 %2987 }
 0x1e3   :  { %7217 = vst [vmem:[#allocation45_spill] sm:$0xff] %v5914_v33  ;;  %v5924_v35 = vmul.f32 0.25, %v2285_v10  ;;  %v2467_v0 = vmax.f32 %v7219_v32, %v5914_v33  ;;  %v5930_v15 = vmul.f32 0.25, %v2234_v55  ;;  %v7220_v63 = vmax.f32 %v5814_v8, %v5798_v59  ;;  %7222 = vst [vmem:[#allocation46_spill] sm:$0xff] %v5948_v60 }
 0x1e4   :  { %v5932_v1 = vmul.f32 0.25, %v2287_v18  ;;  %v2474_v62 = vmax.f32 %v2466_v56, %v5912_v39  ;;  %v7221_v10 = vmax.f32 %v5822_v50, %v5808_v7  ;;  %v5954_v18 = vpop.permute.xlu0 %2784 }
 0x1e5   :  { %v5938_v47 = vmax.f32 %v7220_v63, %v5922_v43  ;;  %v2475_v9 = vmax.f32 %v2467_v0, %v5916_v14  ;;  %7223 = vst [vmem:[#allocation47_spill] sm:$0xff] %v5954_v18  ;;  %v311_v18 = vld [vmem:[%s7000_s2 + $0x10] sm:$0x3] }
 0x1e6   :  { %v5945_v34 = vmax.f32 %v7221_v10, %v5930_v15  ;;  %v5956_v41 = vpop.permute.xlu1 %2995 }
 0x1e7   :  { %7224 = vst [vmem:[#allocation48_spill] sm:$0xff] %v5956_v41  ;;  %v386_v41 = vrot.slane %v311_v18, %v5386_v49 }
 0x1e8   :  { %v5958_v27 = vpop.permute.xlu0 %2789 }
 0x1e9   :  { %7225 = vst [vmem:[#allocation49_spill] sm:$0xff] %v5958_v27 }
 0x1ea   :  { %v5960_v11 = vpop.permute.xlu1 %2999 }
 0x1eb   :  { %7226 = vst [vmem:[#allocation50_spill] sm:$0xff] %v5960_v11 }
 0x1ec   :  { %v5962_v50 = vpop.permute.xlu0 %2811 }
 0x1ed   :  { %7227 = vst [vmem:[#allocation51_spill] sm:$0xff] %v5962_v50  ;;  %v382_v50 = vrot.slane %v311_v18, %v5372_v44 }
 0x1ee   :  { %v5964_v55 = vpop.permute.xlu1 %3015 }
 0x1ef   :  { %7228 = vst [vmem:[#allocation52_spill] sm:$0xff] %v5964_v55 }
 0x1f0   :  { %v5966_v5 = vpop.permute.xlu0 %2823 }
 0x1f1   :  { %7229 = vst [vmem:[#allocation53_spill] sm:$0xff] %v5966_v5 }
 0x1f2   :  { %v5968_v56 = vpop.permute.xlu1 %3019 }
 0x1f3   :  { %7230 = vst [vmem:[#allocation54_spill] sm:$0xff] %v5968_v56 }
 0x1f4   :  { %v5970_v32 = vpop.permute.xlu0 %2847 }
 0x1f5   :  { %7231 = vst [vmem:[#allocation55_spill] sm:$0xff] %v5970_v32 }
 0x1f6   :  { %v5972_v0 = vpop.permute.xlu1 %3059 }
 0x1f7   :  { %7232 = vst [vmem:[#allocation56_spill] sm:$0xff] %v5972_v0 }
 0x1f8   :  { %v5974_v63 = vpop.permute.xlu0 %2867 }
 0x1f9   :  { %7233 = vst [vmem:[#allocation57_spill] sm:$0xff] %v5974_v63 }
 0x1fa   :  { %v5976_v10 = vpop.permute.xlu1 %3067 }
 0x1fb   :  { %7234 = vst [vmem:[#allocation58_spill] sm:$0xff] %v5976_v10 }
 0x1fc   :  { %v5978_v8 = vpop.permute.xlu0 %2879 }
 0x1fd   :  { %7235 = vst [vmem:[#allocation59_spill] sm:$0xff] %v5978_v8 }
 0x1fe   :  { %v5980_v38 = vpop.permute.xlu1 %3071 }
 0x1ff   :  { %7236 = vst [vmem:[#allocation60_spill] sm:$0xff] %v5980_v38 }
 0x200   :  { %v5982_v60 = vpop.permute.xlu0 %2919 }
 0x201   :  { %7237 = vst [vmem:[#allocation61_spill] sm:$0xff] %v5982_v60 }
 0x202   :  { %v5989_v56 = vpop.permute.xlu1 %3087 }
 0x203   :  { %7238 = vst [vmem:[#allocation62_spill] sm:$0xff] %v5989_v56 }
 0x204   :  { %v5991_v0 = vpop.permute.xlu0 %2939 }
 0x205   :  { %7239 = vst [vmem:[#allocation63_spill] sm:$0xff] %v5991_v0  ;;  %v7240_v0 = vmax.f32 %v5870_v54, %v5862_v53 }
 0x215   :  { %v2323_v63 = vpop.f32.mrb[32].mxu0 }
 0x216   :  { %v2333_v10 = vpop.f32.mrb[32].mxu1  ;;  %v2324_v32 = vadd.f32 %v2323_v63, %v382_v50  ;;  %v2325_v55 = vpop.f32.mrb[33].mxu0 }
 0x217   :  { %v2334_v27 = vadd.f32 %v2333_v10, %v382_v50  ;;  %v2335_v38 = vpop.f32.mrb[33].mxu1  ;;  %v2326_v11 = vadd.f32 %v2325_v55, %v386_v41  ;;  %v2327_v8 = vpop.f32.mrb[34].mxu0 }
 0x218   :  { %v2336_v60 = vadd.f32 %v2335_v38, %v386_v41  ;;  %v2337_v5 = vpop.f32.mrb[34].mxu1  ;;  %v2358_v33 = vmul.f32 0.25, %v2324_v32  ;;  %v2328_v31 = vadd.f32 %v2327_v8, %v382_v50  ;;  %v2329_v30 = vpop.f32.mrb[35].mxu0  ;;  %v7241_v32 = vmax.f32 %v5878_v57, %v5880_v36 }
 0x219   :  { %v2394_v22 = vmul.f32 0.25, %v2334_v27  ;;  %v2338_v44 = vadd.f32 %v2337_v5, %v382_v50  ;;  %v2339_v49 = vpop.f32.mrb[35].mxu1  ;;  %v2359_v18 = vmul.f32 0.25, %v2326_v11  ;;  %v2330_v37 = vadd.f32 %v2329_v30, %v386_v41  ;;  %v6021_v5 = vpop.permute.xlu1 %3091 }
 0x21a   :  { %v2395_v56 = vmul.f32 0.25, %v2336_v60  ;;  %v5996_v63 = vmax.f32 %v7240_v0, %v2358_v33  ;;  %v2376_v55 = vmul.f32 0.25, %v2328_v31  ;;  %v2340_v38 = vadd.f32 %v2339_v49, %v386_v41  ;;  %v6007_v60 = vpop.permute.xlu0 %2951  ;;  %7242 = vst [vmem:[#allocation64_spill] sm:$0xff] %v6021_v5 }
 0x21b   :  { %v5998_v10 = vmax.f32 %v2474_v62, %v2394_v22  ;;  %v6003_v27 = vmax.f32 %v7241_v32, %v2359_v18  ;;  %v2412_v50 = vmul.f32 0.25, %v2338_v44  ;;  %v2377_v11 = vmul.f32 0.25, %v2330_v37 }
 0x21c   :  { %v6005_v8 = vmax.f32 %v2475_v9, %v2395_v56  ;;  %v2702_v30 = vsub.f32 %v5862_v53, %v5996_v63  ;;  %v2734_v54 = vsub.f32 %v2358_v33, %v5996_v63 }
 0x21d   :  { %v2706_v31 = vsub.f32 %v5912_v39, %v5998_v10  ;;  %v2738_v62 = vsub.f32 %v2394_v22, %v5998_v10  ;;  %v2703_v57 = vsub.f32 %v5880_v36, %v6003_v27  ;;  %v2735_v9 = vsub.f32 %v2359_v18, %v6003_v27 }
 0x21e   :  { %v2707_v37 = vsub.f32 %v5916_v14, %v6005_v8  ;;  %v2739_v41 = vsub.f32 %v2395_v56, %v6005_v8  ;;  %v2710_v53 = vmul.f32 1.442695, %v2702_v30  ;;  %v2742_v0 = vmul.f32 1.442695, %v2734_v54 }
 0x21f   :  { %v2718_v33 = vmul.f32 1.442695, %v2706_v31  ;;  %v7243_v39 = vmax.f32 %v5892_v45, %v5894_v17  ;;  %v2750_v22 = vmul.f32 1.442695, %v2738_v62  ;;  %v7244_v36 = vmax.f32 %v5938_v47, %v5924_v35  ;;  %v6040_v31 = vpop.permute.xlu0 %2991 }
 0x220   :  { %v2413_v18 = vmul.f32 0.25, %v2340_v38  ;;  %4246 = vpow2.f32 %v2710_v53  ;;  %v2712_v14 = vmul.f32 1.442695, %v2703_v57  ;;  %v2744_v56 = vmul.f32 1.442695, %v2735_v9  ;;  %7245 = vst [vmem:[#allocation65_spill] sm:$0xff] %v6040_v31  ;;  %v6048_v9 = vpop.permute.xlu1 %3131 }
 0x221   :  { %v6026_v44 = vmax.f32 %v7243_v39, %v2376_v55  ;;  %v6031_v49 = vmax.f32 %v7244_v36, %v2412_v50  ;;  %4248 = vpow2.f32 %v2742_v0  ;;  %v2720_v47 = vmul.f32 1.442695, %v2707_v37  ;;  %7247 = vst [vmem:[#allocation66_spill] sm:$0xff] %v6048_v9 }
 0x222   :  { %4250 = vpow2.f32 %v2718_v33  ;;  %v7246_v62 = vmax.f32 %v5902_v26, %v5904_v42 }
 0x223   :  { %v2704_v32 = vsub.f32 %v5894_v17, %v6026_v44  ;;  %v2736_v30 = vsub.f32 %v2376_v55, %v6026_v44  ;;  %v2644_v45 = vsub.f32 %v5798_v59, %v6031_v49  ;;  %v2708_v54 = vsub.f32 %v5924_v35, %v6031_v49 }
 0x224   :  { %v2740_v38 = vsub.f32 %v2412_v50, %v6031_v49  ;;  %v6046_v57 = vmax.f32 %v7246_v62, %v2377_v11  ;;  %4252 = vpow2.f32 %v2750_v22  ;;  %v2752_v17 = vmul.f32 1.442695, %v2739_v41  ;;  %v6069_v22 = vpop.permute.xlu0 %3011 }
 0x225   :  { %v2714_v55 = vmul.f32 1.442695, %v2704_v32  ;;  %4254 = vpow2.f32 %v2712_v14  ;;  %v2746_v59 = vmul.f32 1.442695, %v2736_v30  ;;  %v7248_v50 = vmax.f32 %v5945_v34, %v5932_v1  ;;  %7249 = vst [vmem:[#allocation67_spill] sm:$0xff] %v6069_v22 }
 0x226   :  { %v2705_v35 = vsub.f32 %v5904_v42, %v6046_v57  ;;  %v2737_v53 = vsub.f32 %v2377_v11, %v6046_v57  ;;  %4256 = vpow2.f32 %v2744_v56  ;;  %v2492_v26 = vsub.f32 %v5520_v19, %v6031_v49 }
 0x227   :  { %v6056_v37 = vmax.f32 %v7248_v50, %v2413_v18  ;;  %v2516_v41 = vsub.f32 %v5522_v52, %v6031_v49  ;;  %4258 = vpow2.f32 %v2720_v47  ;;  %v2658_v0 = vmul.f32 1.442695, %v2644_v45 }
 0x228   :  { %v2722_v33 = vmul.f32 1.442695, %v2708_v54  ;;  %v2548_v42 = vsub.f32 %v5663_v48, %v6031_v49  ;;  %4260 = vpow2.f32 %v2752_v17  ;;  %v2754_v19 = vmul.f32 1.442695, %v2740_v38  ;;  %v6099_v17 = vpop.permute.xlu0 %3023 }
 0x229   :  { %v2645_v11 = vsub.f32 %v5808_v7, %v6056_v37  ;;  %v2709_v34 = vsub.f32 %v5932_v1, %v6056_v37  ;;  %v2741_v39 = vsub.f32 %v2413_v18, %v6056_v37  ;;  %4262 = vpow2.f32 %v2714_v55  ;;  %v6077_v7 = vpop.permute.xlu1 %3139 }
 0x22a   :  { %v2493_v52 = vsub.f32 %v5530_v20, %v6056_v37  ;;  %v2517_v36 = vsub.f32 %v5532_v3, %v6056_v37  ;;  %4264 = vpow2.f32 %v2746_v59  ;;  %v2716_v48 = vmul.f32 1.442695, %v2705_v35  ;;  %v6075_v14 = vpop.eup %4246  ;;  %7251 = vst [vmem:[#allocation69_spill] sm:$0xff] %v6077_v7 }
 0x22b   :  { %7250 = vst [vmem:[#allocation68_spill] sm:$0xff] %v6075_v14  ;;  %4266 = vpow2.f32 %v2658_v0  ;;  %v2748_v1 = vmul.f32 1.442695, %v2737_v53  ;;  %v2660_v56 = vmul.f32 1.442695, %v2645_v11  ;;  %v6079_v18 = vpop.eup %4248  ;;  %v2549_v30 = vsub.f32 %v5674_v40, %v6056_v37 }
 0x22c   :  { %7252 = vst [vmem:[#allocation70_spill] sm:$0xff] %v6079_v18  ;;  %4268 = vpow2.f32 %v2722_v33  ;;  %v2724_v32 = vmul.f32 1.442695, %v2709_v34  ;;  %v2580_v20 = vsub.f32 %v5665_v25, %v6031_v49  ;;  %v6085_v3 = vpop.eup %4250  ;;  %v2581_v45 = vsub.f32 %v5676_v51, %v6056_v37 }
 0x22d   :  { %7253 = vst [vmem:[#allocation71_spill] sm:$0xff] %v6085_v3  ;;  %4270 = vpow2.f32 %v2754_v19  ;;  %v2612_v54 = vsub.f32 %v5794_v58, %v6031_v49  ;;  %v2613_v47 = vsub.f32 %v5806_v46, %v6056_v37  ;;  %v2756_v62 = vmul.f32 1.442695, %v2741_v39  ;;  %v6131_v39 = vpop.permute.xlu0 %3063 }
 0x22e   :  { %v6093_v38 = vpop.eup %4252  ;;  %4272 = vpow2.f32 %v2716_v48  ;;  %v2676_v40 = vsub.f32 %v5922_v43, %v6031_v49  ;;  %v2506_v55 = vmul.f32 1.442695, %v2492_v26  ;;  %v2508_v51 = vmul.f32 1.442695, %v2493_v52  ;;  %v6109_v43 = vpop.permute.xlu1 %3143  ;;  %7262 = vst [vmem:[#allocation80_spill] sm:$0xff] %v6131_v39 }
 0x22f   :  { %7254 = vst [vmem:[#allocation72_spill] sm:$0xff] %v6093_v38  ;;  %v6097_v25 = vpop.eup %4254  ;;  %4274 = vpow2.f32 %v2748_v1  ;;  %v2530_v58 = vmul.f32 1.442695, %v2516_v41  ;;  %v2677_v46 = vsub.f32 %v5930_v15, %v6056_v37  ;;  %v2488_v35 = vsub.f32 %v5446_v23, %v6026_v44  ;;  %7258 = vst [vmem:[#allocation76_spill] sm:$0xff] %v6109_v43 }
 0x230   :  { %7255 = vst [vmem:[#allocation73_spill] sm:$0xff] %v6097_v25  ;;  %v6101_v59 = vpop.eup %4256  ;;  %4276 = vpow2.f32 %v2660_v56  ;;  %v2489_v49 = vsub.f32 %v5453_v28, %v6046_v57  ;;  %v2512_v50 = vsub.f32 %v5448_v24, %v6026_v44  ;;  %v2513_v26 = vsub.f32 %v5455_v29, %v6046_v57 }
 0x231   :  { %7256 = vst [vmem:[#allocation74_spill] sm:$0xff] %v6101_v59  ;;  %v6107_v53 = vpop.eup %4258  ;;  %4278 = vpow2.f32 %v2724_v32  ;;  %v2532_v15 = vmul.f32 1.442695, %v2517_v36  ;;  %v2544_v23 = vsub.f32 %v5611_v61, %v6026_v44  ;;  %v2562_v0 = vmul.f32 1.442695, %v2548_v42 }
 0x232   :  { %7257 = vst [vmem:[#allocation75_spill] sm:$0xff] %v6107_v53  ;;  %v6117_v41 = vpop.eup %4260  ;;  %4280 = vpow2.f32 %v2756_v62  ;;  %v2564_v33 = vmul.f32 1.442695, %v2549_v30  ;;  %v2594_v28 = vmul.f32 1.442695, %v2580_v20  ;;  %v2545_v24 = vsub.f32 %v5622_v2, %v6046_v57  ;;  %v6145_v1 = vpop.permute.xlu1 %3159  ;;  %v7267_v20 = vld [vmem:[#allocation41_spill] sm:$0xff] }
 0x233   :  { %7259 = vst [vmem:[#allocation77_spill] sm:$0xff] %v6117_v41  ;;  %v6121_v37 = vpop.eup %4262  ;;  %4282 = vpow2.f32 %v2506_v55  ;;  %v2576_v29 = vsub.f32 %v5632_v4, %v6026_v44  ;;  %v2577_v61 = vsub.f32 %v5642_v6, %v6046_v57  ;;  %v2608_v42 = vsub.f32 %v5742_v13, %v6026_v44  ;;  %7265 = vst [vmem:[#allocation83_spill] sm:$0xff] %v6145_v1  ;;  %v7271_v55 = vld [vmem:[#allocation8_spill] sm:$0xff] }
 0x234   :  { %7260 = vst [vmem:[#allocation78_spill] sm:$0xff] %v6121_v37  ;;  %v6123_v11 = vpop.eup %4264  ;;  %4284 = vpow2.f32 %v2508_v51  ;;  %v2609_v19 = vsub.f32 %v5752_v12, %v6046_v57  ;;  %v2596_v2 = vmul.f32 1.442695, %v2581_v45  ;;  %v2626_v36 = vmul.f32 1.442695, %v2612_v54 }
 0x235   :  { %7261 = vst [vmem:[#allocation79_spill] sm:$0xff] %v6123_v11  ;;  %v6129_v34 = vpop.eup %4266  ;;  %4286 = vpow2.f32 %v2530_v58  ;;  %v2640_v4 = vsub.f32 %v5762_v21, %v6026_v44  ;;  %v2628_v6 = vmul.f32 1.442695, %v2613_v47  ;;  %v2690_v56 = vmul.f32 1.442695, %v2676_v40  ;;  %v7269_v21 = vld [vmem:[#allocation42_spill] sm:$0xff] }
 0x236   :  { %v6139_v52 = vpop.eup %4268  ;;  %4288 = vpow2.f32 %v2532_v15  ;;  %v2692_v32 = vmul.f32 1.442695, %v2677_v46  ;;  %v2498_v12 = vmul.f32 1.442695, %v2488_v35  ;;  %v2641_v30 = vsub.f32 %v5774_v16, %v6046_v57  ;;  %v7270_v47 = vld [vmem:[#allocation6_spill] sm:$0xff]  ;;  %v7273_v35 = vld [vmem:[#allocation7_spill] sm:$0xff] }
 0x237   :  { %7263 = vst [vmem:[#allocation81_spill] sm:$0xff] %v6139_v52  ;;  %v6143_v48 = vpop.eup %4270  ;;  %4290 = vpow2.f32 %v2562_v0  ;;  %v2672_v45 = vsub.f32 %v7267_v20, %v6026_v44  ;;  %v2673_v62 = vsub.f32 %v7269_v21, %v6046_v57  ;;  %v2490_v40 = vsub.f32 %v7270_v47, %v5998_v10  ;;  %v6167_v0 = vpop.permute.xlu0 %3083  ;;  %v7276_v47 = vld [vmem:[#allocation9_spill] sm:$0xff] }
 0x238   :  { %7264 = vst [vmem:[#allocation82_spill] sm:$0xff] %v6143_v48  ;;  %v6147_v13 = vpop.eup %4272  ;;  %4292 = vpow2.f32 %v2564_v33  ;;  %v2491_v51 = vsub.f32 %v7271_v55, %v6005_v8  ;;  %v2500_v46 = vmul.f32 1.442695, %v2489_v49  ;;  %v2522_v16 = vmul.f32 1.442695, %v2512_v50  ;;  %7274 = vst [vmem:[#allocation6_spill] sm:$0xff] %v6167_v0 }
 0x239   :  { %7266 = vst [vmem:[#allocation84_spill] sm:$0xff] %v6147_v13  ;;  %v6153_v54 = vpop.eup %4274  ;;  %4294 = vpow2.f32 %v2594_v28  ;;  %v2514_v44 = vsub.f32 %v7273_v35, %v5998_v10  ;;  %v2524_v57 = vmul.f32 1.442695, %v2513_v26  ;;  %v2554_v33 = vmul.f32 1.442695, %v2544_v23  ;;  %v7277_v49 = vld [vmem:[#allocation14_spill] sm:$0xff]  ;;  %v6177_v35 = vpop.permute.xlu1 %3163 }
 0x23a   :  { %7268 = vst [vmem:[#allocation41_spill] sm:$0xff] %v6153_v54  ;;  %v6161_v58 = vpop.eup %4276  ;;  %4296 = vpow2.f32 %v2596_v2  ;;  %v2556_v28 = vmul.f32 1.442695, %v2545_v24  ;;  %v2586_v21 = vmul.f32 1.442695, %v2576_v29  ;;  %v2515_v2 = vsub.f32 %v7276_v47, %v6005_v8  ;;  %7278 = vst [vmem:[#allocation7_spill] sm:$0xff] %v6177_v35 }
 0x23b   :  { %7272 = vst [vmem:[#allocation42_spill] sm:$0xff] %v6161_v58  ;;  %v6165_v15 = vpop.eup %4278  ;;  %4298 = vpow2.f32 %v2626_v36  ;;  %v2546_v50 = vsub.f32 %v7277_v49, %v5998_v10  ;;  %v7279_v36 = vld [vmem:[#allocation16_spill] sm:$0xff]  ;;  %v7280_v23 = vld [vmem:[#allocation15_spill] sm:$0xff]  ;;  %v2588_v47 = vmul.f32 1.442695, %v2577_v61  ;;  %v7282_v49 = vld [vmem:[#allocation25_spill] sm:$0xff]  ;;  %v6199_v25 = vpop.permute.xlu0 %3095 }
 0x23c   :  { %v6169_v20 = vpop.eup %4280  ;;  %4300 = vpow2.f32 %v2628_v6  ;;  %v2547_v26 = vsub.f32 %v7279_v36, %v6005_v8  ;;  %v2578_v24 = vsub.f32 %v7280_v23, %v5998_v10  ;;  %v7281_v6 = vld [vmem:[#allocation17_spill] sm:$0xff]  ;;  %v2618_v0 = vmul.f32 1.442695, %v2608_v42 }
 0x23d   :  { %7275 = vst [vmem:[#allocation8_spill] sm:$0xff] %v6169_v20  ;;  %v6175_v55 = vpop.eup %4282  ;;  %4302 = vpow2.f32 %v2690_v56  ;;  %v2620_v56 = vmul.f32 1.442695, %v2609_v19  ;;  %v2650_v7 = vmul.f32 1.442695, %v2640_v4  ;;  %v7284_v19 = vld [vmem:[#allocation26_spill] sm:$0xff]  ;;  %v6214_v41 = vpop.permute.xlu1 %3203 }
 0x23e   :  { %v6185_v9 = vpop.eup %4284  ;;  %4304 = vpow2.f32 %v2692_v32  ;;  %v2652_v36 = vmul.f32 1.442695, %v2641_v30  ;;  %v2682_v29 = vmul.f32 1.442695, %v2672_v45  ;;  %v7283_v32 = vld [vmem:[#allocation27_spill] sm:$0xff]  ;;  %v7285_v30 = vld [vmem:[#allocation28_spill] sm:$0xff] }
 0x23f   :  { %v6189_v59 = vpop.eup %4286  ;;  %4306 = vpow2.f32 %v2498_v12  ;;  %v2611_v61 = vsub.f32 %v7283_v32, %v6005_v8  ;;  %v7286_v32 = vld [vmem:[#allocation44_spill] sm:$0xff]  ;;  %7287 = vst [vmem:[#allocation9_spill] sm:$0xff] %v6214_v41  ;;  %v2502_v4 = vmul.f32 1.442695, %v2490_v40  ;;  %v2504_v38 = vmul.f32 1.442695, %v2491_v51 }
 0x240   :  { %v6191_v18 = vpop.eup %4288  ;;  %v2540_v23 = vadd.f32 %v6189_v59, %v6175_v55  ;;  %4308 = vpow2.f32 %v2500_v46  ;;  %v2684_v46 = vmul.f32 1.442695, %v2673_v62  ;;  %v7288_v62 = vld [vmem:[#allocation45_spill] sm:$0xff]  ;;  %v7289_v41 = vld [vmem:[#allocation2_spill] sm:$0xff]  ;;  %v7290_v40 = vld [vmem:[#allocation4_spill] sm:$0xff] }
 0x241   :  { %v6197_v42 = vpop.eup %4290  ;;  %v2541_v12 = vadd.f32 %v6191_v18, %v6185_v9  ;;  %4310 = vpow2.f32 %v2522_v16  ;;  %v6241_v31 = vmul.f32 1.442695, %v2547_v26  ;;  %v6252_v43 = vpop.permute.xlu1 %3211  ;;  %v7297_v26 = vld [vmem:[#allocation12_spill] sm:$0xff] }
 0x242   :  { %v6207_v14 = vpop.eup %4292  ;;  %v2572_v45 = vadd.f32 %v6197_v42, %v2540_v23  ;;  %4312 = vpow2.f32 %v2524_v57  ;;  %v2526_v23 = vmul.f32 1.442695, %v2514_v44  ;;  %v6232_v44 = vmul.f32 1.442695, %v2515_v2  ;;  %7295 = vst [vmem:[#allocation15_spill] sm:$0xff] %v6252_v43  ;;  %v7300_v43 = vld [vmem:[#allocation11_spill] sm:$0xff] }
 0x243   :  { %v6212_v5 = vpop.eup %4294  ;;  %v2573_v16 = vadd.f32 %v6207_v14, %v2541_v12  ;;  %4314 = vpow2.f32 %v2554_v33  ;;  %v2558_v12 = vmul.f32 1.442695, %v2546_v50  ;;  %v6246_v2 = vmul.f32 1.442695, %v2578_v24  ;;  %v7296_v50 = vld [vmem:[#allocation10_spill] sm:$0xff] }
 0x244   :  { %v6217_v53 = vpop.eup %4296  ;;  %v2604_v22 = vadd.f32 %v6212_v5, %v2572_v45  ;;  %4316 = vpow2.f32 %v2556_v28  ;;  %v7291_v28 = vld [vmem:[#allocation3_spill] sm:$0xff] }
 0x245   :  { %v6222_v3 = vpop.eup %4298  ;;  %v2605_v35 = vadd.f32 %v6217_v53, %v2573_v16  ;;  %4318 = vpow2.f32 %v2586_v21  ;;  %v6239_v16 = vpop.permute.xlu0 %3135 }
 0x246   :  { %v6229_v33 = vpop.eup %4300  ;;  %v2636_v45 = vadd.f32 %v6222_v3, %v2604_v22  ;;  %4320 = vpow2.f32 %v2588_v47  ;;  %7293 = vst [vmem:[#allocation16_spill] sm:$0xff] %v6239_v16  ;;  %v7294_v47 = vld [vmem:[#allocation5_spill] sm:$0xff]  ;;  %v7302_v16 = vsub.f32 %v7282_v49, %v5998_v10 }
 0x247   :  { %v6236_v39 = vpop.eup %4302  ;;  %v2637_v21 = vadd.f32 %v6229_v33, %v2605_v35  ;;  %4322 = vpow2.f32 %v2618_v0 }
 0x248   :  { %7292 = vst [vmem:[#allocation14_spill] sm:$0xff] %v6236_v39  ;;  %v6243_v51 = vpop.eup %4304  ;;  %v2668_v22 = vadd.f32 %v6129_v34, %v2636_v45  ;;  %4324 = vpow2.f32 %v2620_v56  ;;  %v7299_v56 = vsub.f32 %v7281_v6, %v6005_v8 }
 0x249   :  { %v6250_v1 = vpop.eup %4306  ;;  %v2669_v0 = vadd.f32 %v6161_v58, %v2637_v21  ;;  %4326 = vpow2.f32 %v2650_v7  ;;  %v6275_v58 = vmul.f32 1.442695, %v7302_v16  ;;  %v7304_v21 = vld [vmem:[#allocation13_spill] sm:$0xff] }
 0x24a   :  { %v6259_v45 = vpop.eup %4308  ;;  %v2700_v24 = vadd.f32 %v6236_v39, %v2668_v22  ;;  %4328 = vpow2.f32 %v2652_v36  ;;  %v6265_v57 = vmul.f32 1.442695, %v7299_v56  ;;  %v6277_v22 = vmul.f32 1.442695, %v2611_v61 }
 0x24b   :  { %7298 = vst [vmem:[#allocation17_spill] sm:$0xff] %v6259_v45  ;;  %v6269_v7 = vpop.eup %4310  ;;  %v2701_v35 = vadd.f32 %v6243_v51, %v2669_v0  ;;  %4330 = vpow2.f32 %v2682_v29  ;;  %v2575_v39 = vsub.f32 %v7304_v21, %v6003_v27  ;;  %v7306_v61 = vsub.f32 %v7284_v19, %v5998_v10 }
 0x24c   :  { %7301 = vst [vmem:[#allocation25_spill] sm:$0xff] %v6269_v7  ;;  %v6279_v36 = vpop.eup %4312  ;;  %v2732_v6 = vadd.f32 %v6139_v52, %v2700_v24  ;;  %v2536_v56 = vadd.f32 %v6269_v7, %v6250_v1  ;;  %4332 = vpow2.f32 %v2684_v46  ;;  %v6294_v24 = vpop.permute.xlu0 %3155 }
 0x24d   :  { %7303 = vst [vmem:[#allocation27_spill] sm:$0xff] %v6279_v36  ;;  %v6286_v0 = vpop.eup %4314  ;;  %v2733_v29 = vadd.f32 %v6165_v15, %v2701_v35  ;;  %v2537_v49 = vadd.f32 %v6279_v36, %v6259_v45  ;;  %4334 = vpow2.f32 %v2502_v4  ;;  %v2654_v16 = vmul.f32 1.442695, %v7306_v61  ;;  %7307 = vst [vmem:[#allocation28_spill] sm:$0xff] %v6294_v24  ;;  %v6307_v4 = vpop.permute.xlu1 %3215  ;;  %v7309_v24 = vld [vmem:[#allocation20_spill] sm:$0xff] }
 0x24e   :  { %7305 = vst [vmem:[#allocation26_spill] sm:$0xff] %v6286_v0  ;;  %v6296_v52 = vpop.eup %4316  ;;  %v2764_v46 = vadd.f32 %v6143_v48, %v2732_v6  ;;  %v2568_v21 = vadd.f32 %v6286_v0, %v2536_v56  ;;  %4336 = vpow2.f32 %v2504_v38  ;;  %v7308_v35 = vsub.f32 %v7285_v30, %v6005_v8  ;;  %v7310_v30 = vld [vmem:[#allocation22_spill] sm:$0xff] }
 0x24f   :  { %v6305_v36 = vpop.eup %4318  ;;  %v2765_v19 = vadd.f32 %v6169_v20, %v2733_v29  ;;  %v2569_v61 = vadd.f32 %v6296_v52, %v2537_v49  ;;  %4338 = vpow2.f32 %v2526_v23  ;;  %v2606_v6 = vsub.f32 %v7309_v24, %v5996_v63  ;;  %v7313_v24 = vld [vmem:[#allocation23_spill] sm:$0xff] }
 0x250   :  { %v6303_v7 = vmul.f32 1.442695, %v7308_v35  ;;  %v6313_v48 = vpop.eup %4320  ;;  %4340 = vrcp.f32 %v2764_v46  ;;  %v2600_v38 = vadd.f32 %v6305_v36, %v2568_v21  ;;  %v2607_v56 = vsub.f32 %v7310_v30, %v6003_v27  ;;  %v7311_v35 = vld [vmem:[#allocation21_spill] sm:$0xff] }
 0x251   :  { %v2638_v45 = vsub.f32 %v7311_v35, %v5996_v63  ;;  %v6320_v0 = vpop.eup %4322  ;;  %4342 = vrcp.f32 %v2765_v19  ;;  %v2601_v29 = vadd.f32 %v6313_v48, %v2569_v61  ;;  %v7312_v23 = vsub.f32 %v7286_v32, %v5998_v10  ;;  %v6369_v20 = vpop.permute.xlu1 %3231 }
 0x252   :  { %v2639_v46 = vsub.f32 %v7313_v24, %v6003_v27  ;;  %v6330_v21 = vpop.eup %4324  ;;  %v2632_v30 = vadd.f32 %v6320_v0, %v2600_v38  ;;  %4344 = vpow2.f32 %v6232_v44  ;;  %v7315_v35 = vsub.f32 %v7288_v62, %v6005_v8  ;;  %v7318_v44 = vld [vmem:[#allocation39_spill] sm:$0xff]  ;;  %v6354_v62 = vpop.permute.xlu0 %3167  ;;  %7321 = vst [vmem:[#allocation45_spill] sm:$0xff] %v6369_v20 }
 0x253   :  { %v6326_v49 = vmul.f32 1.442695, %v7312_v23  ;;  %7314 = vst [vmem:[#allocation44_spill] sm:$0xff] %v6330_v21  ;;  %v7316_v61 = vsub.f32 %v7289_v41, %v5996_v63  ;;  %v6344_v32 = vpop.eup %4326  ;;  %v2633_v23 = vadd.f32 %v6330_v21, %v2601_v29  ;;  %4346 = vpow2.f32 %v2558_v12 }
 0x254   :  { %v6337_v19 = vmul.f32 1.442695, %v7315_v35  ;;  %v7317_v38 = vsub.f32 %v7290_v40, %v6003_v27  ;;  %v2670_v8 = vsub.f32 %v7318_v44, %v5996_v63  ;;  %v6356_v35 = vpop.eup %4328  ;;  %v2664_v41 = vadd.f32 %v6344_v32, %v2632_v30  ;;  %v7320_v40 = vld [vmem:[#allocation40_spill] sm:$0xff] }
 0x255   :  { %v6342_v10 = vmul.f32 1.442695, %v7316_v61  ;;  %4348 = vpow2.f32 %v6241_v31  ;;  %v7319_v29 = vsub.f32 %v7291_v28, %v5996_v63  ;;  %v2671_v61 = vsub.f32 %v7320_v40, %v6003_v27 }
 0x256   :  { %v6350_v24 = vmul.f32 1.442695, %v7317_v38  ;;  %v6367_v38 = vpop.eup %4330  ;;  %v2665_v44 = vadd.f32 %v6356_v35, %v2633_v23  ;;  %4350 = vpow2.f32 %v6246_v2  ;;  %v7322_v30 = vsub.f32 %v7294_v47, %v6003_v27 }
 0x257   :  { %v6363_v12 = vmul.f32 1.442695, %v7319_v29  ;;  %v7323_v28 = vsub.f32 %v7296_v50, %v5996_v63  ;;  %v6383_v21 = vpop.eup %4332  ;;  %v2696_v40 = vadd.f32 %v6367_v38, %v2664_v41  ;;  %4352 = vpow2.f32 %v6265_v57 }
 0x258   :  { %v6376_v31 = vmul.f32 1.442695, %v7322_v30  ;;  %v7324_v23 = vsub.f32 %v7297_v26, %v6003_v27  ;;  %v7325_v47 = vsub.f32 %v7300_v43, %v5996_v63  ;;  %v6397_v20 = vpop.eup %4334  ;;  %v2697_v50 = vadd.f32 %v6383_v21, %v2665_v44 }
 0x259   :  { %v6381_v29 = vmul.f32 1.442695, %v7323_v28  ;;  %7327 = vst [vmem:[#allocation4_spill] sm:$0xff] %v6397_v20  ;;  %4354 = vpow2.f32 %v6275_v58  ;;  %v6401_v28 = vmul.f32 1.442695, %v2575_v39  ;;  %v6405_v57 = vpop.eup %4336  ;;  %v2728_v27 = vadd.f32 %v6121_v37, %v2696_v40 }
 0x25a   :  { %v6390_v2 = vmul.f32 1.442695, %v7324_v23  ;;  %v6395_v30 = vmul.f32 1.442695, %v7325_v47  ;;  %v6403_v41 = vmul.f32 1.442695, %v2606_v6  ;;  %4356 = vpow2.f32 %v6277_v22  ;;  %v6413_v43 = vpop.eup %4338  ;;  %v6420_v6 = vpop.permute.xlu0 %3207 }
 0x25b   :  { %7328 = vst [vmem:[#allocation3_spill] sm:$0xff] %v6401_v28  ;;  %7330 = vst [vmem:[#allocation10_spill] sm:$0xff] %v6405_v57  ;;  %v6409_v26 = vmul.f32 1.442695, %v2607_v56  ;;  %v6411_v63 = vmul.f32 1.442695, %v2638_v45  ;;  %v2729_v44 = vadd.f32 %v6147_v13, %v2697_v50  ;;  %4358 = vpow2.f32 %v2654_v16  ;;  %v6422_v23 = vpop.eup %4340  ;;  %v6442_v50 = vpop.permute.xlu1 %3235 }
 0x25c   :  { %7326 = vst [vmem:[#allocation2_spill] sm:$0xff] %v6395_v30  ;;  %7329 = vst [vmem:[#allocation5_spill] sm:$0xff] %v6403_v41  ;;  %v6416_v58 = vmul.f32 1.442695, %v2639_v46  ;;  %v6418_v39 = vmul.f32 1.442695, %v2670_v8  ;;  %v2760_v40 = vadd.f32 %v6123_v11, %v2728_v27  ;;  %v6427_v22 = vadd.f32 %v6413_v43, %v6397_v20  ;;  %v6432_v56 = vpop.eup %4342 }
 0x25d   :  { %7331 = vst [vmem:[#allocation12_spill] sm:$0xff] %v6409_v26  ;;  %7332 = vst [vmem:[#allocation11_spill] sm:$0xff] %v6411_v63  ;;  %4360 = vpow2.f32 %v6303_v7  ;;  %v6430_v45 = vmul.f32 1.442695, %v2671_v61  ;;  %v2780_v16 = vmul.f32 %v6422_v23, %v6175_v55  ;;  %v2840_v46 = vmul.f32 %v6422_v23, %v6189_v59  ;;  %v6444_v27 = vpop.eup %4344  ;;  %v7344_v20 = vld [vmem:[#allocation53_spill] sm:$0xff]  ;;  %v7345_v11 = vld [vmem:[#allocation32_spill] sm:$0xff] }
 0x25e   :  { %7333 = vst [vmem:[#allocation13_spill] sm:$0xff] %v6413_v43  ;;  %7334 = vst [vmem:[#allocation20_spill] sm:$0xff] %v6416_v58  ;;  %v2912_v8 = vmul.f32 %v6422_v23, %v6197_v42  ;;  %v2984_v47 = vmul.f32 %v6422_v23, %v6212_v5  ;;  %v2781_v7 = vmul.f32 %v6432_v56, %v6185_v9  ;;  %v6454_v42 = vpop.eup %4346  ;;  %v7343_v43 = vld [vmem:[#allocation19_spill] sm:$0xff]  ;;  %v7349_v41 = vld [vmem:[#allocation37_spill] sm:$0xff]  ;;  %v6470_v28 = vpop.permute.xlu0 %3227  ;;  %4362 = vrcp.f32 %v2760_v40 }
 0x25f   :  { %7335 = vst [vmem:[#allocation22_spill] sm:$0xff] %v6418_v39  ;;  %7336 = vst [vmem:[#allocation21_spill] sm:$0xff] %v6420_v6  ;;  %v2841_v61 = vmul.f32 %v6432_v56, %v6191_v18  ;;  %v2913_v55 = vmul.f32 %v6432_v56, %v6207_v14  ;;  %v2985_v59 = vmul.f32 %v6432_v56, %v6217_v53  ;;  %v7346_v39 = vld [vmem:[#allocation59_spill] sm:$0xff]  ;;  %v6460_v9 = vpop.eup %4348 }
 0x260   :  { %7337 = vst [vmem:[#allocation23_spill] sm:$0xff] %v6422_v23  ;;  %7338 = vst [vmem:[#allocation39_spill] sm:$0xff] %v6430_v45  ;;  %v2808_v5 = vmul.f32 %v7343_v43, %v2780_v16  ;;  %v2864_v45 = vmul.f32 %v7345_v11, %v2840_v46  ;;  %v2888_v58 = vmul.f32 %v7346_v39, %v2840_v46  ;;  %v6466_v13 = vpop.eup %4350 }
 0x261   :  { %7339 = vst [vmem:[#allocation40_spill] sm:$0xff] %v6432_v56  ;;  %7340 = vst [vmem:[#allocation85_spill] sm:$0xff] %v6442_v50  ;;  %v2832_v50 = vmul.f32 %v7344_v20, %v2780_v16  ;;  %v2809_v18 = vmul.f32 %v7343_v43, %v2781_v7  ;;  %v2833_v63 = vmul.f32 %v7344_v20, %v2781_v7  ;;  %v6472_v46 = vpop.eup %4352 }
 0x262   :  { %7341 = vst [vmem:[#allocation86_spill] sm:$0xff] %v6444_v27  ;;  %7342 = vst [vmem:[#allocation87_spill] sm:$0xff] %v6454_v42  ;;  %v2865_v14 = vmul.f32 %v7345_v11, %v2841_v61  ;;  %v2889_v53 = vmul.f32 %v7346_v39, %v2841_v61  ;;  %v2896_v26 = vadd.f32 %v2864_v45, %v2808_v5  ;;  %v7353_v61 = vld [vmem:[#allocation50_spill] sm:$0xff] }
 0x263   :  { %7347 = vst [vmem:[#allocation19_spill] sm:$0xff] %v6460_v9  ;;  %7348 = vst [vmem:[#allocation53_spill] sm:$0xff] %v6466_v13  ;;  %v2904_v37 = vadd.f32 %v2888_v58, %v2832_v50  ;;  %v2936_v16 = vmul.f32 %v7349_v41, %v2912_v8  ;;  %v2937_v6 = vmul.f32 %v7349_v41, %v2913_v55  ;;  %v6476_v7 = vpop.eup %4354  ;;  %v6481_v41 = vpop.permute.xlu1 %3275 }
 0x264   :  { %7350 = vst [vmem:[#allocation32_spill] sm:$0xff] %v6470_v28  ;;  %7351 = vst [vmem:[#allocation59_spill] sm:$0xff] %v6472_v46  ;;  %v2897_v30 = vadd.f32 %v2865_v14, %v2809_v18  ;;  %v2905_v43 = vadd.f32 %v2889_v53, %v2833_v63  ;;  %v2960_v20 = vmul.f32 %v6007_v60, %v2912_v8  ;;  %v6483_v5 = vpop.eup %4356 }
 0x265   :  { %v2961_v11 = vmul.f32 %v6007_v60, %v2913_v55  ;;  %7352 = vst [vmem:[#allocation37_spill] sm:$0xff] %v6476_v7  ;;  %v2968_v39 = vadd.f32 %v2936_v16, %v2896_v26  ;;  %v3008_v45 = vmul.f32 %v7353_v61, %v2984_v47  ;;  %v3009_v58 = vmul.f32 %v7353_v61, %v2985_v59  ;;  %v6486_v14 = vpop.eup %4358 }
 0x266   :  { %v3032_v50 = vmul.f32 %v6099_v17, %v2984_v47  ;;  %7354 = vst [vmem:[#allocation50_spill] sm:$0xff] %v6481_v41  ;;  %7355 = vst [vmem:[#allocation88_spill] sm:$0xff] %v6483_v5  ;;  %v2969_v28 = vadd.f32 %v2937_v6, %v2897_v30  ;;  %v2976_v18 = vadd.f32 %v2960_v20, %v2904_v37  ;;  %v7358_v37 = vld [vmem:[#allocation60_spill] sm:$0xff] }
 0x267   :  { %v2977_v63 = vadd.f32 %v2961_v11, %v2905_v43  ;;  %v3033_v8 = vmul.f32 %v6099_v17, %v2985_v59  ;;  %7356 = vst [vmem:[#allocation89_spill] sm:$0xff] %v6486_v14  ;;  %v3040_v60 = vadd.f32 %v3008_v45, %v2968_v39  ;;  %v3056_v26 = vmul.f32 %v6422_v23, %v6222_v3  ;;  %v6493_v53 = vpop.eup %4360  ;;  %v6499_v3 = vpop.permute.xlu0 %3239 }
 0x268   :  { %v3057_v55 = vmul.f32 %v6432_v56, %v6229_v33  ;;  %v2761_v47 = vadd.f32 %v6153_v54, %v2729_v44  ;;  %7357 = vst [vmem:[#allocation90_spill] sm:$0xff] %v6493_v53  ;;  %v3041_v16 = vadd.f32 %v3009_v58, %v2969_v28  ;;  %v3048_v61 = vadd.f32 %v3032_v50, %v2976_v18  ;;  %v6507_v45 = vpop.permute.xlu1 %3283  ;;  %v7360_v50 = vld [vmem:[#allocation42_spill] sm:$0xff] }
 0x269   :  { %v3049_v30 = vadd.f32 %v3033_v8, %v2977_v63  ;;  %v3080_v6 = vmul.f32 %v7358_v37, %v3056_v26  ;;  %v3104_v59 = vmul.f32 %v6199_v25, %v3056_v26  ;;  %v2539_v33 = vadd.f32 %v6444_v27, %v6405_v57  ;;  %7359 = vst [vmem:[#allocation60_spill] sm:$0xff] %v6507_v45  ;;  %v7362_v8 = vld [vmem:[#allocation14_spill] sm:$0xff] }
 0x26a   :  { %v3081_v17 = vmul.f32 %v7358_v37, %v3057_v55  ;;  %v3105_v43 = vmul.f32 %v6199_v25, %v3057_v55  ;;  %4364 = vrcp.f32 %v2761_v47  ;;  %v2570_v28 = vadd.f32 %v6454_v42, %v6427_v22  ;;  %v7361_v22 = vld [vmem:[#allocation76_spill] sm:$0xff]  ;;  %v7386_v42 = vld [vmem:[#allocation61_spill] sm:$0xff] }
 0x26b   :  { %v3128_v44 = vmul.f32 %v6422_v23, %v6129_v34  ;;  %v3112_v40 = vadd.f32 %v3080_v6, %v3040_v60  ;;  %v3120_v11 = vadd.f32 %v3104_v59, %v3048_v61  ;;  %v2571_v25 = vadd.f32 %v6460_v9, %v2539_v33  ;;  %v6531_v61 = vpop.permute.xlu0 %3279  ;;  %v6553_v59 = vpop.eup %4362  ;;  %v7381_v9 = vld [vmem:[#allocation49_spill] sm:$0xff] }
 0x26c   :  { %v3113_v20 = vadd.f32 %v3081_v17, %v3041_v16  ;;  %v3121_v39 = vadd.f32 %v3105_v43, %v3049_v30  ;;  %v2602_v58 = vadd.f32 %v6466_v13, %v2570_v28  ;;  %4366 = vpow2.f32 %v6326_v49  ;;  %v7365_v28 = vld [vmem:[#allocation25_spill] sm:$0xff] }
 0x26d   :  { %v3129_v18 = vmul.f32 %v6432_v56, %v7360_v50  ;;  %4368 = vpow2.f32 %v6337_v19  ;;  %v3152_v63 = vmul.f32 %v7361_v22, %v3128_v44  ;;  %v3176_v34 = vmul.f32 %v6354_v62, %v3128_v44  ;;  %v7368_v50 = vld [vmem:[#allocation24_spill] sm:$0xff] }
 0x26e   :  { %v6519_v60 = vmul.f32 %v6422_v23, %v7362_v8  ;;  %v2603_v26 = vadd.f32 %v6472_v46, %v2571_v25  ;;  %v2634_v55 = vadd.f32 %v6476_v7, %v2602_v58  ;;  %4370 = vpow2.f32 %v6342_v10  ;;  %v7367_v25 = vld [vmem:[#allocation17_spill] sm:$0xff] }
 0x26f   :  { %v3153_v49 = vmul.f32 %v7361_v22, %v3129_v18  ;;  %4372 = vpow2.f32 %v6350_v24  ;;  %v3177_v19 = vmul.f32 %v6354_v62, %v3129_v18  ;;  %v6527_v47 = vadd.f32 %v3176_v34, %v3120_v11  ;;  %v6543_v62 = vpop.permute.xlu1 %3287 }
 0x270   :  { %v6529_v16 = vadd.f32 %v3152_v63, %v3112_v40  ;;  %v2635_v30 = vadd.f32 %v6483_v5, %v2603_v26  ;;  %v6535_v37 = vadd.f32 %v6486_v14, %v2634_v55  ;;  %4374 = vpow2.f32 %v6363_v12  ;;  %v7366_v40 = vld [vmem:[#allocation26_spill] sm:$0xff]  ;;  %v7370_v63 = vld [vmem:[#allocation33_spill] sm:$0xff]  ;;  %v7373_v55 = vld [vmem:[#allocation52_spill] sm:$0xff] }
 0x271   :  { %v6538_v10 = vadd.f32 %v3153_v49, %v3113_v20  ;;  %4376 = vpow2.f32 %v6376_v31  ;;  %v6541_v24 = vadd.f32 %v3177_v19, %v3121_v39  ;;  %v6547_v6 = vmul.f32 %v6432_v56, %v6243_v51  ;;  %v7364_v31 = vld [vmem:[#allocation81_spill] sm:$0xff] }
 0x272   :  { %v6551_v17 = vmul.f32 %v6307_v4, %v6519_v60  ;;  %v6556_v12 = vadd.f32 %v6493_v53, %v2635_v30  ;;  %4378 = vpow2.f32 %v6381_v29  ;;  %v6561_v43 = vmul.f32 %v6422_v23, %v7364_v31 }
 0x273   :  { %7363 = vst [vmem:[#allocation42_spill] sm:$0xff] %v6541_v24  ;;  %v6565_v33 = vmul.f32 %v6432_v56, %v6165_v15  ;;  %v2776_v51 = vmul.f32 %v6553_v59, %v6250_v1  ;;  %v2836_v44 = vmul.f32 %v6553_v59, %v7365_v28  ;;  %v2908_v20 = vmul.f32 %v6553_v59, %v7366_v40  ;;  %v7374_v40 = vld [vmem:[#allocation44_spill] sm:$0xff] }
 0x274   :  { %v2980_v29 = vmul.f32 %v6553_v59, %v6305_v36  ;;  %v6575_v11 = vpop.eup %4364  ;;  %v3052_v39 = vmul.f32 %v6553_v59, %v6320_v0  ;;  %v3124_v15 = vmul.f32 %v6553_v59, %v6344_v32  ;;  %v6583_v1 = vmul.f32 %v6553_v59, %v6367_v38  ;;  %v7369_v36 = vld [vmem:[#allocation27_spill] sm:$0xff]  ;;  %v6592_v0 = vpop.permute.xlu0 %3299  ;;  %v7372_v38 = vld [vmem:[#allocation38_spill] sm:$0xff] }
 0x275   :  { %4380 = vpow2.f32 %v6390_v2  ;;  %v2777_v58 = vmul.f32 %v6575_v11, %v7367_v25  ;;  %v2828_v18 = vmul.f32 %v7368_v50, %v2776_v51  ;;  %v2837_v22 = vmul.f32 %v6575_v11, %v7369_v36  ;;  %7371 = vst [vmem:[#allocation76_spill] sm:$0xff] %v6592_v0  ;;  %v6608_v36 = vpop.permute.xlu1 %3303  ;;  %v7376_v0 = vld [vmem:[#allocation62_spill] sm:$0xff] }
 0x276   :  { %v2884_v34 = vmul.f32 %v7370_v63, %v2836_v44  ;;  %v6594_v8 = vpop.eup %4366  ;;  %v2909_v32 = vmul.f32 %v6575_v11, %v6296_v52  ;;  %v2956_v26 = vmul.f32 %v7372_v38, %v2908_v20  ;;  %v2981_v2 = vmul.f32 %v6575_v11, %v6313_v48 }
 0x277   :  { %v3028_v49 = vmul.f32 %v7373_v55, %v2980_v29  ;;  %v6602_v19 = vpop.eup %4368  ;;  %v2829_v30 = vmul.f32 %v7368_v50, %v2777_v58  ;;  %v2885_v31 = vmul.f32 %v7370_v63, %v2837_v22  ;;  %v3053_v25 = vmul.f32 %v6575_v11, %v7374_v40  ;;  %v7378_v40 = vld [vmem:[#allocation83_spill] sm:$0xff] }
 0x278   :  { %v2900_v28 = vadd.f32 %v2884_v34, %v2828_v18  ;;  %v6610_v52 = vpop.eup %4370  ;;  %v2957_v41 = vmul.f32 %v7372_v38, %v2909_v32  ;;  %v3029_v48 = vmul.f32 %v7373_v55, %v2981_v2  ;;  %v3100_v45 = vmul.f32 %v7376_v0, %v3052_v39  ;;  %v7380_v55 = vld [vmem:[#allocation45_spill] sm:$0xff]  ;;  %v6633_v57 = vpop.permute.xlu0 %3311 }
 0x279   :  { %7375 = vst [vmem:[#allocation14_spill] sm:$0xff] %v6610_v52  ;;  %v3125_v53 = vmul.f32 %v6575_v11, %v6356_v35  ;;  %v6617_v50 = vpop.eup %4372  ;;  %v2901_v63 = vadd.f32 %v2885_v31, %v2829_v30  ;;  %v3101_v34 = vmul.f32 %v7376_v0, %v3053_v25  ;;  %v3172_v14 = vmul.f32 %v7378_v40, %v3124_v15  ;;  %v7383_v31 = vld [vmem:[#allocation55_spill] sm:$0xff] }
 0x27a   :  { %7377 = vst [vmem:[#allocation81_spill] sm:$0xff] %v6617_v50  ;;  %v2972_v18 = vadd.f32 %v2956_v26, %v2900_v28  ;;  %v6621_v5 = vpop.eup %4374  ;;  %v3197_v38 = vmul.f32 %v6575_v11, %v6383_v21  ;;  %v3244_v46 = vmul.f32 %v7380_v55, %v6583_v1  ;;  %v2804_v35 = vmul.f32 %v7381_v9, %v2776_v51 }
 0x27b   :  { %7379 = vst [vmem:[#allocation25_spill] sm:$0xff] %v6621_v5  ;;  %v3173_v7 = vmul.f32 %v7378_v40, %v3125_v53  ;;  %v6629_v27 = vpop.eup %4376  ;;  %v2973_v30 = vadd.f32 %v2957_v41, %v2901_v63  ;;  %v2805_v0 = vmul.f32 %v7381_v9, %v2777_v58  ;;  %v2860_v28 = vmul.f32 %v7383_v31, %v2836_v44  ;;  %v6642_v9 = vpop.permute.xlu1 %3307 }
 0x27c   :  { %7382 = vst [vmem:[#allocation26_spill] sm:$0xff] %v6629_v27  ;;  %v3044_v26 = vadd.f32 %v3028_v49, %v2972_v18  ;;  %7384 = vst [vmem:[#allocation17_spill] sm:$0xff] %v6633_v57  ;;  %v6635_v13 = vpop.eup %4378  ;;  %v3245_v40 = vmul.f32 %v7380_v55, %v3197_v38  ;;  %v2861_v21 = vmul.f32 %v7383_v31, %v2837_v22  ;;  %v7387_v49 = vld [vmem:[#allocation65_spill] sm:$0xff]  ;;  %v7389_v57 = vld [vmem:[#allocation80_spill] sm:$0xff] }
 0x27d   :  { %7385 = vst [vmem:[#allocation24_spill] sm:$0xff] %v6635_v13  ;;  %v2932_v54 = vmul.f32 %v7386_v42, %v2908_v20  ;;  %v2933_v51 = vmul.f32 %v7386_v42, %v2909_v32  ;;  %v3045_v56 = vadd.f32 %v3029_v48, %v2973_v30  ;;  %v2892_v41 = vadd.f32 %v2860_v28, %v2804_v35  ;;  %v7390_v42 = vld [vmem:[#allocation16_spill] sm:$0xff]  ;;  %v7396_v28 = vld [vmem:[#allocation77_spill] sm:$0xff] }
 0x27e   :  { %v3116_v23 = vadd.f32 %v3100_v45, %v3044_v26  ;;  %v3004_v63 = vmul.f32 %v7387_v49, %v2980_v29  ;;  %v2893_v58 = vadd.f32 %v2861_v21, %v2805_v0  ;;  %v3005_v18 = vmul.f32 %v7387_v49, %v2981_v2  ;;  %v7397_v49 = vld [vmem:[#allocation3_spill] sm:$0xff] }
 0x27f   :  { %v6644_v44 = vpop.eup %4380  ;;  %v3076_v55 = vmul.f32 %v7389_v57, %v3052_v39  ;;  %v3077_v22 = vmul.f32 %v7389_v57, %v3053_v25  ;;  %v3117_v31 = vadd.f32 %v3101_v34, %v3045_v56  ;;  %v2964_v24 = vadd.f32 %v2932_v54, %v2892_v41  ;;  %v6657_v56 = vpop.permute.xlu0 %3351  ;;  %v7392_v39 = vld [vmem:[#allocation75_spill] sm:$0xff]  ;;  %v7395_v34 = vld [vmem:[#allocation72_spill] sm:$0xff] }
 0x280   :  { %7388 = vst [vmem:[#allocation27_spill] sm:$0xff] %v6644_v44  ;;  %v3188_v20 = vadd.f32 %v3172_v14, %v3116_v23  ;;  %v3148_v32 = vmul.f32 %v7390_v42, %v3124_v15  ;;  %v2965_v45 = vadd.f32 %v2933_v51, %v2893_v58  ;;  %v3149_v48 = vmul.f32 %v7390_v42, %v3125_v53  ;;  %v7391_v23 = vld [vmem:[#allocation71_spill] sm:$0xff] }
 0x281   :  { %v2698_v29 = vadd.f32 %v6594_v8, %v6535_v37  ;;  %v2699_v35 = vadd.f32 %v6602_v19, %v6556_v12  ;;  %v3189_v30 = vadd.f32 %v3173_v7, %v3117_v31  ;;  %v3036_v26 = vadd.f32 %v3004_v63, %v2964_v24  ;;  %v7393_v7 = vld [vmem:[#allocation2_spill] sm:$0xff]  ;;  %v7398_v63 = vld [vmem:[#allocation21_spill] sm:$0xff] }
 0x282   :  { %v3260_v2 = vadd.f32 %v3244_v46, %v3188_v20  ;;  %v2534_v57 = vadd.f32 %v6621_v5, %v6610_v52  ;;  %v3037_v54 = vadd.f32 %v3005_v18, %v2965_v45  ;;  %v2535_v53 = vadd.f32 %v6629_v27, %v6617_v50  ;;  %v6665_v46 = vpop.permute.xlu1 %3347  ;;  %v7441_v27 = vld [vmem:[#allocation64_spill] sm:$0xff]  ;;  %v7444_v52 = vld [vmem:[#allocation85_spill] sm:$0xff] }
 0x283   :  { %v2730_v14 = vadd.f32 %v7391_v23, %v2698_v29  ;;  %v2731_v15 = vadd.f32 %v7392_v39, %v2699_v35  ;;  %v3261_v37 = vadd.f32 %v3245_v40, %v3189_v30  ;;  %v3108_v25 = vadd.f32 %v3076_v55, %v3036_v26  ;;  %7394 = vst [vmem:[#allocation33_spill] sm:$0xff] %v6665_v46  ;;  %v7402_v29 = vld [vmem:[#allocation12_spill] sm:$0xff]  ;;  %v7404_v26 = vld [vmem:[#allocation11_spill] sm:$0xff] }
 0x284   :  { %v2566_v12 = vadd.f32 %v6635_v13, %v2534_v57  ;;  %4382 = vpow2.f32 %v7393_v7  ;;  %v3109_v24 = vadd.f32 %v3077_v22, %v3037_v54  ;;  %v2567_v51 = vadd.f32 %v6644_v44, %v2535_v53 }
 0x285   :  { %v2762_v0 = vadd.f32 %v7395_v34, %v2730_v14  ;;  %v2763_v21 = vadd.f32 %v7396_v28, %v2731_v15  ;;  %v3180_v41 = vadd.f32 %v3148_v32, %v3108_v25  ;;  %4384 = vpow2.f32 %v7397_v49  ;;  %v6682_v32 = vpop.permute.xlu0 %3371  ;;  %v7405_v14 = vld [vmem:[#allocation20_spill] sm:$0xff]  ;;  %v7410_v49 = vld [vmem:[#allocation39_spill] sm:$0xff] }
 0x286   :  { %v3220_v40 = vmul.f32 %v7398_v63, %v6583_v1  ;;  %v3221_v58 = vmul.f32 %v7398_v63, %v3197_v38  ;;  %v3181_v18 = vadd.f32 %v3149_v48, %v3109_v24  ;;  %v3225_v55 = vmul.f32 %v6307_v4, %v6547_v6  ;;  %7399 = vst [vmem:[#allocation38_spill] sm:$0xff] %v6682_v32  ;;  %v7400_v1 = vld [vmem:[#allocation5_spill] sm:$0xff]  ;;  %v7401_v48 = vld [vmem:[#allocation78_spill] sm:$0xff]  ;;  %v6695_v30 = vpop.permute.xlu1 %3355 }
 0x287   :  { %4386 = vrcp.f32 %v2762_v0  ;;  %v3256_v22 = vadd.f32 %v6551_v17, %v6529_v16  ;;  %v3296_v20 = vmul.f32 %v6543_v62, %v6561_v43  ;;  %v3297_v42 = vmul.f32 %v6543_v62, %v6565_v33  ;;  %v7403_v17 = vld [vmem:[#allocation84_spill] sm:$0xff]  ;;  %v7408_v24 = vld [vmem:[#allocation42_spill] sm:$0xff] }
 0x288   :  { %4388 = vrcp.f32 %v2763_v21  ;;  %v3252_v31 = vadd.f32 %v3220_v40, %v3180_v41  ;;  %v3253_v38 = vadd.f32 %v3221_v58, %v3181_v18  ;;  %v3257_v45 = vadd.f32 %v3225_v55, %v6538_v10  ;;  %v7415_v58 = vld [vmem:[#allocation82_spill] sm:$0xff]  ;;  %v7416_v18 = vld [vmem:[#allocation23_spill] sm:$0xff] }
 0x289   :  { %4390 = vpow2.f32 %v7400_v1  ;;  %v3268_v4 = vmul.f32 %v6553_v59, %v7401_v48  ;;  %v6689_v16 = vadd.f32 %v3296_v20, %v3256_v22  ;;  %v3269_v35 = vmul.f32 %v6575_v11, %v7403_v17  ;;  %v6721_v63 = vpop.permute.xlu0 %3383  ;;  %v7419_v20 = vld [vmem:[#allocation8_spill] sm:$0xff]  ;;  %v7421_v1 = vld [vmem:[#allocation79_spill] sm:$0xff] }
 0x28a   :  { %4392 = vpow2.f32 %v7402_v29  ;;  %v3248_v62 = vmul.f32 %v6499_v3, %v6519_v60  ;;  %v6698_v57 = vadd.f32 %v3297_v42, %v3257_v45  ;;  %v3249_v54 = vmul.f32 %v6499_v3, %v6547_v6  ;;  %v7406_v60 = vld [vmem:[#allocation22_spill] sm:$0xff]  ;;  %7413 = vst [vmem:[#allocation83_spill] sm:$0xff] %v6721_v63 }
 0x28b   :  { %4394 = vpow2.f32 %v7404_v26  ;;  %v3316_v10 = vmul.f32 %v6608_v36, %v3268_v4  ;;  %v3317_v15 = vmul.f32 %v6608_v36, %v3269_v35  ;;  %v3292_v25 = vmul.f32 %v6531_v61, %v3268_v4  ;;  %v7426_v26 = vld [vmem:[#allocation13_spill] sm:$0xff] }
 0x28c   :  { %4396 = vpow2.f32 %v7405_v14  ;;  %v3264_v53 = vadd.f32 %v3248_v62, %v6527_v47  ;;  %v3265_v0 = vadd.f32 %v3249_v54, %v7408_v24  ;;  %v3293_v21 = vmul.f32 %v6531_v61, %v3269_v35  ;;  %v7412_v47 = vld [vmem:[#allocation17_spill] sm:$0xff] }
 0x28d   :  { %4398 = vpow2.f32 %v7406_v60  ;;  %v6708_v7 = vadd.f32 %v3316_v10, %v3260_v2  ;;  %v6715_v3 = vadd.f32 %v3317_v15, %v3261_v37  ;;  %v6717_v6 = vadd.f32 %v3292_v25, %v3252_v31  ;;  %v6734_v31 = vpop.permute.xlu1 %3359  ;;  %v7427_v10 = vld [vmem:[#allocation87_spill] sm:$0xff]  ;;  %v7430_v60 = vld [vmem:[#allocation86_spill] sm:$0xff] }
 0x28e   :  { %v6712_v41 = vpop.eup %4382  ;;  %4400 = vpow2.f32 %v7410_v49  ;;  %v3320_v36 = vmul.f32 %v7412_v47, %v6561_v43  ;;  %v6724_v40 = vadd.f32 %v3293_v21, %v3253_v38  ;;  %v3321_v61 = vmul.f32 %v7412_v47, %v6565_v33  ;;  %v7420_v43 = vld [vmem:[#allocation40_spill] sm:$0xff]  ;;  %v7422_v38 = vld [vmem:[#allocation41_spill] sm:$0xff]  ;;  %v7432_v49 = vld [vmem:[#allocation59_spill] sm:$0xff] }
 0x28f   :  { %7407 = vst [vmem:[#allocation52_spill] sm:$0xff] %v6708_v7  ;;  %7409 = vst [vmem:[#allocation44_spill] sm:$0xff] %v6712_v41  ;;  %v2598_v2 = vadd.f32 %v6712_v41, %v2566_v12  ;;  %v3344_v55 = vmul.f32 %v7416_v18, %v7415_v58  ;;  %v6730_v22 = vpop.eup %4384  ;;  %v6738_v42 = vmul.f32 %v7420_v43, %v7419_v20  ;;  %v7434_v18 = vld [vmem:[#allocation34_spill] sm:$0xff]  ;;  %v7435_v20 = vld [vmem:[#allocation43_spill] sm:$0xff] }
 0x290   :  { %7411 = vst [vmem:[#allocation62_spill] sm:$0xff] %v6715_v3  ;;  %7414 = vst [vmem:[#allocation45_spill] sm:$0xff] %v6724_v40  ;;  %v6732_v37 = vadd.f32 %v3320_v36, %v3264_v53  ;;  %v6742_v12 = vmul.f32 %v6553_v59, %v7421_v1  ;;  %v6746_v33 = vmul.f32 %v6575_v11, %v7422_v38  ;;  %v7425_v59 = vld [vmem:[#allocation4_spill] sm:$0xff]  ;;  %v7429_v53 = vld [vmem:[#allocation10_spill] sm:$0xff] }
 0x291   :  { %7417 = vst [vmem:[#allocation49_spill] sm:$0xff] %v6730_v22  ;;  %v6748_v45 = vpop.eup %4386  ;;  %v2599_v48 = vadd.f32 %v6730_v22, %v2567_v51  ;;  %v6751_v4 = vadd.f32 %v3321_v61, %v3265_v0  ;;  %v6754_v29 = vmul.f32 %v6734_v31, %v3344_v55  ;;  %v6757_v17 = vmul.f32 %v6721_v63, %v3344_v55  ;;  %v7428_v51 = vld [vmem:[#allocation53_spill] sm:$0xff]  ;;  %v7431_v0 = vld [vmem:[#allocation19_spill] sm:$0xff]  ;;  %v7436_v1 = vld [vmem:[#allocation54_spill] sm:$0xff] }
 0x292   :  { %7418 = vst [vmem:[#allocation55_spill] sm:$0xff] %v6732_v37  ;;  %v6759_v35 = vpop.eup %4388  ;;  %v2778_v62 = vmul.f32 %v6748_v45, %v7425_v59  ;;  %v2838_v11 = vmul.f32 %v6748_v45, %v7426_v26  ;;  %v2910_v54 = vmul.f32 %v6748_v45, %v7427_v10  ;;  %v2982_v14 = vmul.f32 %v6748_v45, %v7428_v51  ;;  %v7433_v61 = vld [vmem:[#allocation29_spill] sm:$0xff]  ;;  %v7446_v7 = vld [vmem:[#allocation31_spill] sm:$0xff] }
 0x293   :  { %7423 = vst [vmem:[#allocation61_spill] sm:$0xff] %v6751_v4  ;;  %7424 = vst [vmem:[#allocation65_spill] sm:$0xff] %v6757_v17  ;;  %v6769_v15 = vpop.eup %4390  ;;  %v2779_v25 = vmul.f32 %v6759_v35, %v7429_v53  ;;  %v2839_v24 = vmul.f32 %v6759_v35, %v7430_v60  ;;  %v2911_v21 = vmul.f32 %v6759_v35, %v7431_v0  ;;  %v7438_v4 = vld [vmem:[#allocation88_spill] sm:$0xff]  ;;  %v7439_v63 = vld [vmem:[#allocation89_spill] sm:$0xff] }
 0x294   :  { %v2983_v47 = vmul.f32 %v6759_v35, %v7432_v49  ;;  %v6779_v36 = vpop.eup %4392  ;;  %v2830_v58 = vmul.f32 %v7433_v61, %v2778_v62  ;;  %v2886_v55 = vmul.f32 %v7434_v18, %v2838_v11  ;;  %v2958_v43 = vmul.f32 %v7435_v20, %v2910_v54  ;;  %v7437_v49 = vld [vmem:[#allocation37_spill] sm:$0xff] }
 0x295   :  { %v3030_v38 = vmul.f32 %v7436_v1, %v2982_v14  ;;  %v6785_v59 = vpop.eup %4394  ;;  %v2831_v26 = vmul.f32 %v7433_v61, %v2779_v25  ;;  %v2887_v10 = vmul.f32 %v7434_v18, %v2839_v24  ;;  %v2959_v51 = vmul.f32 %v7435_v20, %v2911_v21  ;;  %v7440_v18 = vld [vmem:[#allocation90_spill] sm:$0xff] }
 0x296   :  { %v3031_v53 = vmul.f32 %v7436_v1, %v2983_v47  ;;  %v6791_v60 = vpop.eup %4396  ;;  %v2902_v0 = vadd.f32 %v2886_v55, %v2830_v58  ;;  %v3054_v46 = vmul.f32 %v6748_v45, %v7437_v49  ;;  %v3055_v32 = vmul.f32 %v6759_v35, %v7438_v4 }
 0x297   :  { %v3126_v22 = vmul.f32 %v6748_v45, %v7439_v63  ;;  %v6799_v44 = vpop.eup %4398  ;;  %v2903_v61 = vadd.f32 %v2887_v10, %v2831_v26  ;;  %v3127_v20 = vmul.f32 %v6759_v35, %v7440_v18  ;;  %v3198_v1 = vmul.f32 %v6748_v45, %v6594_v8  ;;  %v7442_v63 = vld [vmem:[#allocation7_spill] sm:$0xff] }
 0x298   :  { %v3199_v58 = vmul.f32 %v6759_v35, %v6602_v19  ;;  %v6807_v55 = vpop.eup %4400  ;;  %v2974_v49 = vadd.f32 %v2958_v43, %v2902_v0  ;;  %v3102_v4 = vmul.f32 %v7441_v27, %v3054_v46  ;;  %v3103_v50 = vmul.f32 %v7441_v27, %v3055_v32  ;;  %v7443_v10 = vld [vmem:[#allocation15_spill] sm:$0xff]  ;;  %v7445_v27 = vld [vmem:[#allocation18_spill] sm:$0xff] }
 0x299   :  { %v3174_v41 = vmul.f32 %v7442_v63, %v3126_v22  ;;  %v2975_v13 = vadd.f32 %v2959_v51, %v2903_v61  ;;  %v3175_v26 = vmul.f32 %v7442_v63, %v3127_v20  ;;  %v3222_v18 = vmul.f32 %v7443_v10, %v3198_v1 }
 0x29a   :  { %v3223_v5 = vmul.f32 %v7443_v10, %v3199_v58  ;;  %v3046_v8 = vadd.f32 %v3030_v38, %v2974_v49  ;;  %v3246_v17 = vmul.f32 %v7444_v52, %v3198_v1  ;;  %v3247_v19 = vmul.f32 %v7444_v52, %v3199_v58  ;;  %v7447_v52 = vld [vmem:[#allocation36_spill] sm:$0xff] }
 0x29b   :  { %v2630_v43 = vadd.f32 %v6769_v15, %v2598_v2  ;;  %v3047_v0 = vadd.f32 %v3031_v53, %v2975_v13  ;;  %v2631_v37 = vadd.f32 %v6779_v36, %v2599_v48  ;;  %v2806_v3 = vmul.f32 %v7445_v27, %v2778_v62  ;;  %v7448_v10 = vld [vmem:[#allocation48_spill] sm:$0xff] }
 0x29c   :  { %v2807_v51 = vmul.f32 %v7445_v27, %v2779_v25  ;;  %v3118_v61 = vadd.f32 %v3102_v4, %v3046_v8  ;;  %v2862_v40 = vmul.f32 %v7446_v7, %v2838_v11  ;;  %v2863_v38 = vmul.f32 %v7446_v7, %v2839_v24 }
 0x29d   :  { %v2662_v63 = vadd.f32 %v6785_v59, %v2630_v43  ;;  %v3119_v49 = vadd.f32 %v3103_v50, %v3047_v0  ;;  %v2663_v1 = vadd.f32 %v6791_v60, %v2631_v37  ;;  %v2934_v58 = vmul.f32 %v7447_v52, %v2910_v54  ;;  %v7449_v50 = vld [vmem:[#allocation68_spill] sm:$0xff]  ;;  %v7450_v0 = vld [vmem:[#allocation73_spill] sm:$0xff] }
 0x29e   :  { %v2935_v13 = vmul.f32 %v7447_v52, %v2911_v21  ;;  %v3190_v2 = vadd.f32 %v3174_v41, %v3118_v61  ;;  %v2894_v62 = vadd.f32 %v2862_v40, %v2806_v3  ;;  %v2895_v53 = vadd.f32 %v2863_v38, %v2807_v51  ;;  %v7451_v41 = vld [vmem:[#allocation58_spill] sm:$0xff]  ;;  %v3376_v40 = vpop.permute.xlu1 %3375 }
 0x29f   :  { %v2694_v48 = vadd.f32 %v6799_v44, %v2662_v63  ;;  %v3191_v25 = vadd.f32 %v3175_v26, %v3119_v49  ;;  %v2695_v4 = vadd.f32 %v6807_v55, %v2663_v1  ;;  %v3006_v8 = vmul.f32 %v7448_v10, %v2982_v14  ;;  %v7452_v26 = vld [vmem:[#allocation70_spill] sm:$0xff]  ;;  %v7453_v14 = vld [vmem:[#allocation69_spill] sm:$0xff] }
 0x2a0   :  { %v3007_v11 = vmul.f32 %v7448_v10, %v2983_v47  ;;  %v3262_v7 = vadd.f32 %v3246_v17, %v3190_v2  ;;  %v2966_v37 = vadd.f32 %v2934_v58, %v2894_v62  ;;  %v2967_v43 = vadd.f32 %v2935_v13, %v2895_v53  ;;  %v7454_v47 = vld [vmem:[#allocation74_spill] sm:$0xff]  ;;  %v7455_v58 = vld [vmem:[#allocation60_spill] sm:$0xff] }
 0x2a1   :  { %v2726_v24 = vadd.f32 %v7449_v50, %v2694_v48  ;;  %v3263_v54 = vadd.f32 %v3247_v19, %v3191_v25  ;;  %v2727_v21 = vadd.f32 %v7450_v0, %v2695_v4  ;;  %v3078_v27 = vmul.f32 %v7451_v41, %v3054_v46 }
 0x2a2   :  { %v3079_v3 = vmul.f32 %v7451_v41, %v3055_v32  ;;  %v3038_v61 = vadd.f32 %v3006_v8, %v2966_v37  ;;  %v3039_v63 = vadd.f32 %v3007_v11, %v2967_v43  ;;  %v3150_v38 = vmul.f32 %v7453_v14, %v3126_v22  ;;  %v3380_v25 = vpop.permute.xlu1 %3379 }
 0x2a3   :  { %v2758_v51 = vadd.f32 %v7452_v26, %v2726_v24  ;;  %v2759_v17 = vadd.f32 %v7454_v47, %v2727_v21  ;;  %v3151_v49 = vmul.f32 %v7453_v14, %v3127_v20  ;;  %v3270_v19 = vmul.f32 %v6748_v45, %v7391_v23  ;;  %v7457_v24 = vld [vmem:[#allocation52_spill] sm:$0xff]  ;;  %v7458_v21 = vld [vmem:[#allocation62_spill] sm:$0xff]  ;;  %v7462_v14 = vld [vmem:[#allocation25_spill] sm:$0xff] }
 0x2a4   :  { %v3271_v1 = vmul.f32 %v6759_v35, %v7392_v39  ;;  %v3110_v46 = vadd.f32 %v3078_v27, %v3038_v61  ;;  %v3111_v32 = vadd.f32 %v3079_v3, %v3039_v63  ;;  %v3342_v52 = vmul.f32 %v6748_v45, %v7395_v34  ;;  %v7460_v27 = vld [vmem:[#allocation65_spill] sm:$0xff]  ;;  %v7461_v61 = vld [vmem:[#allocation14_spill] sm:$0xff] }
 0x2a5   :  { %4402 = vrcp.f32 %v2758_v51  ;;  %v3294_v13 = vmul.f32 %v7455_v58, %v3270_v19  ;;  %v3318_v2 = vmul.f32 %v6642_v9, %v3270_v19  ;;  %v3343_v39 = vmul.f32 %v6759_v35, %v7396_v28  ;;  %v7464_v19 = vld [vmem:[#allocation44_spill] sm:$0xff] }
 0x2a6   :  { %4404 = vrcp.f32 %v2759_v17  ;;  %v3295_v22 = vmul.f32 %v7455_v58, %v3271_v1  ;;  %v3182_v20 = vadd.f32 %v3150_v38, %v3110_v46  ;;  %v3183_v48 = vadd.f32 %v3151_v49, %v3111_v32  ;;  %v7463_v17 = vld [vmem:[#allocation24_spill] sm:$0xff]  ;;  %v7465_v46 = vld [vmem:[#allocation81_spill] sm:$0xff] }
 0x2a7   :  { %v3319_v23 = vmul.f32 %v6642_v9, %v3271_v1  ;;  %v3334_v62 = vadd.f32 %v3318_v2, %v3262_v7  ;;  %v3366_v53 = vmul.f32 %v6695_v30, %v3342_v52  ;;  %v3369_v34 = vmul.f32 %v6734_v31, %v6738_v42  ;;  %v7468_v2 = vld [vmem:[#allocation49_spill] sm:$0xff] }
 0x2a8   :  { %v3400_v45 = vadd.f32 %v6754_v29, %v6689_v16  ;;  %v3254_v4 = vadd.f32 %v3222_v18, %v3182_v20  ;;  %v3255_v10 = vadd.f32 %v3223_v5, %v3183_v48  ;;  %v3367_v11 = vmul.f32 %v6695_v30, %v3343_v39  ;;  %v7469_v48 = vld [vmem:[#allocation51_spill] sm:$0xff] }
 0x2a9   :  { %v3335_v8 = vadd.f32 %v3319_v23, %v3263_v54  ;;  %v3401_v9 = vadd.f32 %v3369_v34, %v6698_v57  ;;  %v3364_v28 = vmul.f32 %v6657_v56, %v6742_v12  ;;  %v3365_v31 = vmul.f32 %v6657_v56, %v6746_v33  ;;  %v7456_v57 = vld [vmem:[#allocation45_spill] sm:$0xff] }
 0x2aa   :  { %3416 = vst [vmem:[%s7001_s4 + $0x60] sm:$0xff] %v3400_v45  ;;  %v3388_v16 = vmul.f32 %v3376_v40, %v6742_v12  ;;  %v3326_v29 = vadd.f32 %v3294_v13, %v3254_v4  ;;  %v3327_v35 = vadd.f32 %v3295_v22, %v3255_v10  ;;  %v3389_v5 = vmul.f32 %v3376_v40, %v6746_v33  ;;  %v7459_v33 = vld [vmem:[#allocation55_spill] sm:$0xff] }
 0x2ab   :  { %v3390_v18 = vmul.f32 %v3380_v25, %v3342_v52  ;;  %3417 = vst [vmem:[%s7001_s4 + $0x68] sm:$0xff] %v3401_v9  ;;  %v3396_v30 = vadd.f32 %v3364_v28, %v6717_v6  ;;  %v3397_v7 = vadd.f32 %v3365_v31, %v7456_v57  ;;  %v3391_v43 = vmul.f32 %v3380_v25, %v3343_v39  ;;  %v7466_v52 = vld [vmem:[#allocation26_spill] sm:$0xff]  ;;  %v7467_v13 = vld [vmem:[#allocation27_spill] sm:$0xff]  ;;  %v7470_v39 = vld [vmem:[#allocation57_spill] sm:$0xff] }
 0x2ac   :  { %v3404_v37 = vadd.f32 %v3388_v16, %v7457_v24  ;;  %v3398_v54 = vadd.f32 %v3366_v53, %v3326_v29  ;;  %v3399_v56 = vadd.f32 %v3367_v11, %v3327_v35  ;;  %v3405_v12 = vadd.f32 %v3389_v5, %v7458_v21  ;;  %v7471_v45 = vld [vmem:[#allocation63_spill] sm:$0xff]  ;;  %v7477_v21 = vld [vmem:[#allocation30_spill] sm:$0xff] }
 0x2ad   :  { %v3406_v41 = vadd.f32 %v3390_v18, %v3334_v62  ;;  %3412 = vst [vmem:[%s7001_s4 + $0x20] sm:$0xff] %v3396_v30  ;;  %3413 = vst [vmem:[%s7001_s4 + $0x28] sm:$0xff] %v3397_v7  ;;  %v3407_v6 = vadd.f32 %v3391_v43, %v3335_v8  ;;  %v3408_v3 = vadd.f32 %v7460_v27, %v7459_v33  ;;  %v7472_v4 = vld [vmem:[#allocation67_spill] sm:$0xff]  ;;  %v7474_v30 = vld [vmem:[#allocation6_spill] sm:$0xff] }
 0x2ae   :  { %3420 = vst [vmem:[%s7001_s4 + $0x30] sm:$0xff] %v3404_v37  ;;  %3414 = vst [vmem:[%s7001_s4 + $0x40] sm:$0xff] %v3398_v54  ;;  %v7473_v35 = vld [vmem:[#allocation47_spill] sm:$0xff]  ;;  %v7476_v54 = vld [vmem:[#allocation28_spill] sm:$0xff] }
 0x2af   :  { %v6885_v40 = vpop.eup %4402  ;;  %3415 = vst [vmem:[%s7001_s4 + $0x48] sm:$0xff] %v3399_v56  ;;  %3421 = vst [vmem:[%s7001_s4 + $0x38] sm:$0xff] %v3405_v12  ;;  %v7478_v33 = vld [vmem:[#allocation35_spill] sm:$0xff] }
 0x2b0   :  { %3422 = vst [vmem:[%s7001_s4 + $0x50] sm:$0xff] %v3406_v41  ;;  %v6899_v51 = vpop.eup %4404  ;;  %v2774_v63 = vmul.f32 %v6885_v40, %v7461_v61  ;;  %v2834_v38 = vmul.f32 %v6885_v40, %v7462_v14  ;;  %v2906_v49 = vmul.f32 %v6885_v40, %v7463_v17  ;;  %v2978_v1 = vmul.f32 %v6885_v40, %v7464_v19  ;;  %v7479_v17 = vld [vmem:[#allocation46_spill] sm:$0xff] }
 0x2b1   :  { %3423 = vst [vmem:[%s7001_s4 + $0x58] sm:$0xff] %v3407_v6  ;;  %3424 = vst [vmem:[%s7001_s4 + $0x70] sm:$0xff] %v3408_v3  ;;  %v2775_v32 = vmul.f32 %v6899_v51, %v7465_v46  ;;  %v2835_v58 = vmul.f32 %v6899_v51, %v7466_v52  ;;  %v2907_v22 = vmul.f32 %v6899_v51, %v7467_v13 }
 0x2b2   :  { %v2979_v20 = vmul.f32 %v6899_v51, %v7468_v2  ;;  %v2826_v23 = vmul.f32 %v7469_v48, %v2774_v63  ;;  %v2882_v62 = vmul.f32 %v7470_v39, %v2834_v38  ;;  %v2954_v25 = vmul.f32 %v7471_v45, %v2906_v49 }
 0x2b3   :  { %v2827_v53 = vmul.f32 %v7469_v48, %v2775_v32  ;;  %v2883_v34 = vmul.f32 %v7470_v39, %v2835_v58  ;;  %v3026_v10 = vmul.f32 %v7472_v4, %v2978_v1  ;;  %v3050_v11 = vmul.f32 %v6885_v40, %v6769_v15 }
 0x2b4   :  { %v2898_v8 = vadd.f32 %v2882_v62, %v2826_v23  ;;  %v3051_v9 = vmul.f32 %v6899_v51, %v6779_v36  ;;  %v3122_v28 = vmul.f32 %v6885_v40, %v6785_v59  ;;  %v2955_v16 = vmul.f32 %v7471_v45, %v2907_v22  ;;  %v7475_v59 = vld [vmem:[#allocation83_spill] sm:$0xff]  ;;  %v7481_v23 = vld [vmem:[#allocation56_spill] sm:$0xff] }
 0x2b5   :  { %v2899_v31 = vadd.f32 %v2883_v34, %v2827_v53  ;;  %v3123_v29 = vmul.f32 %v6899_v51, %v6791_v60  ;;  %v2802_v5 = vmul.f32 %v7473_v35, %v2774_v63  ;;  %v3098_v57 = vmul.f32 %v7474_v30, %v3050_v11  ;;  %v7482_v53 = vld [vmem:[#allocation32_spill] sm:$0xff] }
 0x2b6   :  { %v2970_v18 = vadd.f32 %v2954_v25, %v2898_v8  ;;  %v3099_v7 = vmul.f32 %v7474_v30, %v3051_v9  ;;  %v2803_v15 = vmul.f32 %v7473_v35, %v2775_v32  ;;  %v3027_v36 = vmul.f32 %v7472_v4, %v2979_v20  ;;  %v7485_v30 = vld [vmem:[#allocation38_spill] sm:$0xff] }
 0x2b7   :  { %v2971_v24 = vadd.f32 %v2955_v16, %v2899_v31  ;;  %v3393_v37 = vmul.f32 %v7475_v59, %v6738_v42  ;;  %v3170_v56 = vmul.f32 %v7476_v54, %v3122_v28  ;;  %v2858_v60 = vmul.f32 %v7477_v21, %v2834_v38 }
 0x2b8   :  { %v3042_v43 = vadd.f32 %v3026_v10, %v2970_v18  ;;  %v2859_v12 = vmul.f32 %v7477_v21, %v2835_v58  ;;  %v3171_v6 = vmul.f32 %v7476_v54, %v3123_v29  ;;  %v2930_v27 = vmul.f32 %v7478_v33, %v2906_v49 }
 0x2b9   :  { %v3043_v41 = vadd.f32 %v3027_v36, %v2971_v24  ;;  %v2931_v3 = vmul.f32 %v7478_v33, %v2907_v22  ;;  %v2890_v63 = vadd.f32 %v2858_v60, %v2802_v5  ;;  %v3002_v19 = vmul.f32 %v7479_v17, %v2978_v1  ;;  %v7480_v22 = vld [vmem:[#allocation66_spill] sm:$0xff]  ;;  %v7488_v60 = vld [vmem:[#allocation33_spill] sm:$0xff] }
 0x2ba   :  { %v3114_v61 = vadd.f32 %v3098_v57, %v3042_v43  ;;  %v2891_v14 = vadd.f32 %v2859_v12, %v2803_v15  ;;  %v3003_v46 = vmul.f32 %v7479_v17, %v2979_v20  ;;  %v3194_v38 = vmul.f32 %v6885_v40, %v6799_v44 }
 0x2bb   :  { %v3115_v42 = vadd.f32 %v3099_v7, %v3043_v41  ;;  %v3195_v32 = vmul.f32 %v6899_v51, %v6807_v55  ;;  %v2962_v58 = vadd.f32 %v2930_v27, %v2890_v63  ;;  %v3266_v49 = vmul.f32 %v6885_v40, %v7449_v50  ;;  %v7487_v7 = vld [vmem:[#allocation61_spill] sm:$0xff] }
 0x2bc   :  { %v3186_v52 = vadd.f32 %v3170_v56, %v3114_v61  ;;  %v2963_v13 = vadd.f32 %v2931_v3, %v2891_v14  ;;  %v3146_v2 = vmul.f32 %v7480_v22, %v3122_v28  ;;  %v3074_v1 = vmul.f32 %v7481_v23, %v3050_v11  ;;  %v7484_v28 = vld [vmem:[#allocation9_spill] sm:$0xff] }
 0x2bd   :  { %v3187_v48 = vadd.f32 %v3171_v6, %v3115_v42  ;;  %v3267_v20 = vmul.f32 %v6899_v51, %v7450_v0  ;;  %v3034_v39 = vadd.f32 %v3002_v19, %v2962_v58  ;;  %v3075_v44 = vmul.f32 %v7481_v23, %v3051_v9  ;;  %v7483_v0 = vld [vmem:[#allocation76_spill] sm:$0xff] }
 0x2be   :  { %v3035_v62 = vadd.f32 %v3003_v46, %v2963_v13  ;;  %v3242_v55 = vmul.f32 %v7482_v53, %v3194_v38  ;;  %v3147_v34 = vmul.f32 %v7480_v22, %v3123_v29  ;;  %v3243_v45 = vmul.f32 %v7482_v53, %v3195_v32 }
 0x2bf   :  { %v3338_v50 = vmul.f32 %v6885_v40, %v7452_v26  ;;  %v3339_v25 = vmul.f32 %v6899_v51, %v7454_v47  ;;  %v3106_v4 = vadd.f32 %v3074_v1, %v3034_v39  ;;  %v3314_v11 = vmul.f32 %v7483_v0, %v3266_v49  ;;  %v7486_v40 = vld [vmem:[#allocation50_spill] sm:$0xff] }
 0x2c0   :  { %v3107_v10 = vadd.f32 %v3075_v44, %v3035_v62  ;;  %v3258_v8 = vadd.f32 %v3242_v55, %v3186_v52  ;;  %v3218_v31 = vmul.f32 %v7484_v28, %v3194_v38  ;;  %v3219_v9 = vmul.f32 %v7484_v28, %v3195_v32 }
 0x2c1   :  { %v3259_v16 = vadd.f32 %v3243_v45, %v3187_v48  ;;  %v3315_v29 = vmul.f32 %v7483_v0, %v3267_v20  ;;  %v3178_v35 = vadd.f32 %v3146_v2, %v3106_v4  ;;  %v3386_v26 = vmul.f32 %v7485_v30, %v3338_v50 }
 0x2c2   :  { %v3179_v5 = vadd.f32 %v3147_v34, %v3107_v10  ;;  %v3330_v18 = vadd.f32 %v3314_v11, %v3258_v8  ;;  %v3290_v57 = vmul.f32 %v7486_v40, %v3266_v49  ;;  %v3387_v51 = vmul.f32 %v7485_v30, %v3339_v25 }
 0x2c3   :  { %v3331_v47 = vadd.f32 %v3315_v29, %v3259_v16  ;;  %v3409_v15 = vadd.f32 %v3393_v37, %v7487_v7  ;;  %v3250_v24 = vadd.f32 %v3218_v31, %v3178_v35  ;;  %v3291_v59 = vmul.f32 %v7486_v40, %v3267_v20 }
 0x2c4   :  { %v3251_v36 = vadd.f32 %v3219_v9, %v3179_v5  ;;  %v3402_v43 = vadd.f32 %v3386_v26, %v3330_v18  ;;  %v3362_v12 = vmul.f32 %v7488_v60, %v3338_v50  ;;  %v3363_v41 = vmul.f32 %v7488_v60, %v3339_v25 }
 0x2c5   :  { %v3403_v54 = vadd.f32 %v3387_v51, %v3331_v47  ;;  %3425 = vst [vmem:[%s7001_s4 + $0x78] sm:$0xff] %v3409_v15  ;;  %v3322_v56 = vadd.f32 %v3290_v57, %v3250_v24 }
 0x2c6   :  { %v3323_v21 = vadd.f32 %v3291_v59, %v3251_v36  ;;  %3418 = vst [vmem:[%s7001_s4 + $0x10] sm:$0xff] %v3402_v43 }
 0x2c7   :  { %3419 = vst [vmem:[%s7001_s4 + $0x18] sm:$0xff] %v3403_v54  ;;  %v3394_v37 = vadd.f32 %v3362_v12, %v3322_v56 }
 0x2c8   :  { %v3395_v6 = vadd.f32 %v3363_v41, %v3323_v21 }
 0x2c9   :  { %3410 = vst [vmem:[%s7001_s4] sm:$0xff] %v3394_v37 }
 0x2ca   :  { %3411 = vst [vmem:[%s7001_s4 + $0x8] sm:$0xff] %v3395_v6 }

</bundles_post_ra>
